<compile_context>
chip_gen: v5e
topology: v5e:2x2
jax: 0.10.0
libtpu: 0.0.40
codegen_flags: <defaults>
</compile_context>

<pallas_src>
import functools

import jax
import jax.numpy as jnp
import numpy as np
from jax.experimental import pallas as pl
from jax.experimental.pallas import tpu as pltpu

NUM_LABELS = 10          # stand-in for len(class_names)

# Static network geometry implied by the PyTorch module (1x28x28 input).
K = 5                    # conv kernel size
C1, C2 = 10, 20          # conv1 / conv2 output channels
W1P = 12                 # conv1 pooled output height/width
H2P, W2P = 4, 4          # conv2 pooled output height/width
FC1 = 50                 # fc1 output features
HALF = 128               # lane-aligned column stride of each pool-parity half
LPAD = 128               # lane-padded logits width (>= num_labels)
IN_W = 28                # input image height/width
KROW = K * IN_W          # 140 = concatenated conv1 contraction width


# ------------------------------ fused kernel ------------------------------- #

def _net_fused_kernel(x_ref, c1w_ref, c1b_ref, c2w_ref, c2b_ref,
                      fc1w_ref, fc1b_ref, fc2w_ref, fc2b_ref,
                      o_ref, h1_scr, acc2_scr):
    """Full forward pass for a tile of BT images; intermediates stay in VMEM."""
    f32, bf16 = jnp.float32, jnp.bfloat16
    bt = o_ref.shape[0]                            # images per grid step

    # ---- conv1 (single folded-kh dot per pool offset) + 2x2 max-pool + ReLU --
    # x_ref[0, b] rows are ordered (i, img): row i*bt+img holds input rows
    # 4i+b+kh (kh=0..4) concatenated along 140 (zero-padded 256) lanes.
    # h1_scr[e][i*bt+img, pw*10+c] == relu(maxpool(conv1+b1))[img, c, 2i+e, pw]
    for e in (0, 1):                               # row parity of pooled conv1 output
        z0 = jnp.dot(x_ref[0, 2 * e + 0], c1w_ref[...], preferred_element_type=f32)
        z1 = jnp.dot(x_ref[0, 2 * e + 1], c1w_ref[...], preferred_element_type=f32)
        z = jnp.maximum(z0, z1) + c1b_ref[...]                       # (6*bt, 256)
        # W-pooling = max of the two 128-aligned lane halves, then ReLU.
        h1_scr[e] = jnp.maximum(jnp.maximum(z[:, :HALF], z[:, HALF:]),
                                0.0).astype(bf16)                    # (6*bt, 128)

    # ---- conv2 (banded matmuls, kh accumulated in VMEM scratch) + pool + ReLU
    # TODO(synk): training-mode Dropout2d (inference identity here).
    for d2 in (0, 1):                              # H offset inside the 2x2 pool window
        for kh in range(K):
            u = d2 + kh                            # needed h1 pooled row = 2*r + u
            lhs = h1_scr[u % 2, (u // 2) * bt:(u // 2 + 4) * bt, :]  # (4*bt, 128)
            contrib = jnp.dot(lhs, c2w_ref[kh], preferred_element_type=f32)
            if kh == 0:
                acc2_scr[d2] = contrib
            else:
                acc2_scr[d2] = acc2_scr[d2] + contrib
    z2 = jnp.maximum(acc2_scr[0], acc2_scr[1]) + c2b_ref[...]        # (4*bt, 256)
    h2 = jnp.maximum(jnp.maximum(z2[:, :HALF], z2[:, HALF:]), 0.0).astype(bf16)
    # h2[r*bt+img, w*20+c] == relu(maxpool(conv2+b2))[img, c, r, w]; lanes 80..127 = 0.

    # ---- fc1 + ReLU: sum of per-row matmuls == flatten @ W (no reshape) ------
    f1 = jnp.zeros((bt, FC1), f32)
    for r in range(H2P):
        f1 = f1 + jnp.dot(h2[r * bt:(r + 1) * bt, :],
                          fc1w_ref[r * HALF:(r + 1) * HALF, :],
                          preferred_element_type=f32)
    f1 = jnp.maximum(f1 + fc1b_ref[...], 0.0)
    # TODO(synk): training-mode F.dropout (inference identity here).

    # ---- fc2 + log_softmax (lane-padded to 128; padded biases are -1e30) -----
    logits = jnp.dot(f1.astype(bf16), fc2w_ref[...],
                     preferred_element_type=f32) + fc2b_ref[...]     # (bt, 128)
    m = jnp.max(logits, axis=-1, keepdims=True)
    zl = logits - m
    lse = jnp.log(jnp.sum(jnp.exp(zl), axis=-1, keepdims=True))
    o_ref[...] = zl - lse


# ----------------------- one-time weight preprocessing ---------------------- #

def prepare_params(params):
    """Banded / permuted / lane-padded bf16 weight slabs (host, once)."""
    w1 = np.asarray(params["conv1_w"], np.float32)    # (10, 1, 5, 5)
    b1 = np.asarray(params["conv1_b"], np.float32)    # (10,)
    w2 = np.asarray(params["conv2_w"], np.float32)    # (20, 10, 5, 5)
    b2 = np.asarray(params["conv2_b"], np.float32)    # (20,)
    fc1_w = np.asarray(params["fc1_w"], np.float32)   # (50, 320)
    fc1_b = np.asarray(params["fc1_b"], np.float32)   # (50,)
    fc2_w = np.asarray(params["fc2_w"], np.float32)   # (L, 50)
    fc2_b = np.asarray(params["fc2_b"], np.float32)   # (L,)
    L = fc2_w.shape[0]
    assert L <= LPAD

    # conv1: ONE (256, 256) slab; row = kh*28 + input_col, col = dw*128 + pw*10 + c.
    c1w = np.zeros((2 * HALF, 2 * HALF), np.float32)
    c1b = np.zeros((1, 2 * HALF), np.float32)
    for dw in range(2):
        for pw in range(W1P):
            col = dw * HALF + pw * C1
            c1b[0, col:col + C1] = b1
            for kh in range(K):
                for kw in range(K):
                    icol = 2 * pw + dw + kw                     # input column
                    c1w[kh * IN_W + icol, col:col + C1] = w1[:, 0, kh, kw]

    # conv2 banded weights: (K, 128, 256); row = iw*10 + ci, col = dw*128 + pw*20 + co.
    c2w = np.zeros((K, HALF, 2 * HALF), np.float32)
    c2b = np.zeros((1, 2 * HALF), np.float32)
    for dw in range(2):
        for pw in range(W2P):
            col = dw * HALF + pw * C2
            c2b[0, col:col + C2] = b2
            for kh in range(K):
                for kw in range(K):
                    iw = 2 * pw + dw + kw                       # h1 width position
                    for ci in range(C1):
                        c2w[kh, iw * C1 + ci, col:col + C2] = w2[:, ci, kh, kw]

    # fc1: permute torch's NCHW flatten (c*16 + h*4 + w) into the kernel's
    # (h*128 + w*20 + c) layout; dead lanes 80..127 of h2 get zero rows.
    fc1w = np.zeros((H2P * HALF, FC1), np.float32)
    for h in range(H2P):
        for w in range(W2P):
            for c in range(C2):
                fc1w[h * HALF + w * C2 + c, :] = fc1_w[:, c * 16 + h * 4 + w]

    # fc2: lane-pad to 128 output columns; padded biases are -1e30 so the
    # in-kernel log_softmax over 128 lanes equals log_softmax over the real L.
    fc2w = np.zeros((FC1, LPAD), np.float32)
    fc2w[:, :L] = fc2_w.T
    fc2b = np.full((1, LPAD), -1e30, np.float32)
    fc2b[0, :L] = fc2_b

    return {
        "c1w": jnp.asarray(c1w, jnp.bfloat16),
        "c1b": jnp.asarray(c1b, jnp.float32),
        "c2w": jnp.asarray(c2w, jnp.bfloat16),
        "c2b": jnp.asarray(c2b, jnp.float32),
        "fc1w": jnp.asarray(fc1w, jnp.bfloat16),
        "fc1b": jnp.asarray(fc1_b.reshape(1, FC1), jnp.float32),
        "fc2w": jnp.asarray(fc2w, jnp.bfloat16),
        "fc2b": jnp.asarray(fc2b, jnp.float32),
    }


# --------------------------- host-side layout glue -------------------------- #

def _choose_bt(n):
    """Images per grid step: multiple of 8 (keeps 6*BT/4*BT/BT sublane-aligned),
    capped at 128 so M dims land on 768/512/128 (256-multiples for the v6e/v7x
    MXU, 128-multiples for v5e) with a ~10 MiB VMEM footprint."""
    return max(8, min(128, ((n + 7) // 8) * 8))


# rows[b, i, kh] = input row feeding pooled-conv1 row 2i+e (with b = 2e+d1)
_ROW_GATHER = (4 * np.arange(6)[None, :, None]
               + np.arange(4)[:, None, None]
               + np.arange(K)[None, None, :])             # (4, 6, 5), values 0..27


def _prep_inputs(x, bt):
    """(N,1,28,28) float -> bf16 (NB, 4, 6*BT, 256) conv1-LHS slabs (layout only)."""
    n = x.shape[0]
    nb = -(-n // bt)
    npad = nb * bt
    x = x.reshape(n, IN_W, IN_W)
    if npad > n:
        x = jnp.concatenate([x, jnp.zeros((npad - n, IN_W, IN_W), x.dtype)], axis=0)
    xg = x[:, _ROW_GATHER, :]                             # (Np, 4, 6, 5, 28)
    xg = xg.reshape(npad, 4, 6, KROW)                     # concat kh slabs along lanes
    xg = jnp.pad(xg, ((0, 0), (0, 0), (0, 0), (0, 2 * HALF - KROW)))   # 140 -> 256
    # Block by BT images and order rows (i, img) so every in-kernel slice is a
    # contiguous, sublane-aligned multiple of BT.
    xg = xg.reshape(nb, bt, 4, 6, 2 * HALF).transpose(0, 2, 3, 1, 4)
    xg = xg.reshape(nb, 4, 6 * bt, 2 * HALF)
    return xg.astype(jnp.bfloat16), nb, npad


# --------------------------------- forward ---------------------------------- #

def net_forward(x, prep, num_labels=NUM_LABELS):
    """x: (N, 1, 28, 28) float -> (N, num_labels) log-probabilities."""
    n = x.shape[0]
    bt = _choose_bt(n)
    x_lhs, nb, npad = _prep_inputs(x, bt)

    out = pl.pallas_call(
        _net_fused_kernel,
        grid=(nb,),
        in_specs=[
            # input slabs: one (4, 6*BT, 256) block per grid step
            pl.BlockSpec((1, 4, 6 * bt, 2 * HALF), lambda i: (i, 0, 0, 0)),
            # weights/biases: constant block index -> fetched once, not re-DMA'd
            pl.BlockSpec((2 * HALF, 2 * HALF), lambda i: (0, 0)),      # conv1 folded W
            pl.BlockSpec((1, 2 * HALF), lambda i: (0, 0)),             # conv1 bias row
            pl.BlockSpec((K, HALF, 2 * HALF), lambda i: (0, 0, 0)),    # conv2 banded W
            pl.BlockSpec((1, 2 * HALF), lambda i: (0, 0)),             # conv2 bias row
            pl.BlockSpec((H2P * HALF, FC1), lambda i: (0, 0)),         # fc1 W (permuted)
            pl.BlockSpec((1, FC1), lambda i: (0, 0)),                  # fc1 bias
            pl.BlockSpec((FC1, LPAD), lambda i: (0, 0)),               # fc2 W (lane-padded)
            pl.BlockSpec((1, LPAD), lambda i: (0, 0)),                 # fc2 bias
        ],
        out_specs=pl.BlockSpec((bt, LPAD), lambda i: (i, 0)),
        out_shape=jax.ShapeDtypeStruct((npad, LPAD), jnp.float32),
        scratch_shapes=[
            pltpu.VMEM((2, 6 * bt, HALF), jnp.bfloat16),      # pooled conv1 activations
            pltpu.VMEM((2, 4 * bt, 2 * HALF), jnp.float32),   # conv2 pool-offset accs
        ],
        compiler_params=pltpu.CompilerParams(
            dimension_semantics=("parallel",),                # both TCs on v7x if nb >= 2
            vmem_limit_bytes=32 * 1024 * 1024),
    )(x_lhs, prep["c1w"], prep["c1b"], prep["c2w"], prep["c2b"],
      prep["fc1w"], prep["fc1b"], prep["fc2w"], prep["fc2b"])
    return out[:n, :num_labels]


# ----------------------------- init & reference ----------------------------- #

def init_params(key, num_labels=NUM_LABELS):
    ks = jax.random.split(key, 8)

    def uinit(k, shape, fan_in):
        bound = 1.0 / np.sqrt(fan_in)
        return jax.random.uniform(k, shape, jnp.float32, -bound, bound)

    return {
        "conv1_w": uinit(ks[0], (C1, 1, K, K), 1 * K * K),
        "conv1_b": uinit(ks[1], (C1,), 1 * K * K),
        "conv2_w": uinit(ks[2], (C2, C1, K, K), C1 * K * K),
        "conv2_b": uinit(ks[3], (C2,), C1 * K * K),
        "fc1_w": uinit(ks[4], (FC1, 320), 320),
        "fc1_b": uinit(ks[5], (FC1,), 320),
        "fc2_w": uinit(ks[6], (num_labels, FC1), FC1),
        "fc2_b": uinit(ks[7], (num_labels,), FC1),
    }


def reference_forward(x, params):
    """Plain-JAX (f32, highest precision) replica of the PyTorch module."""
    hp = jax.lax.Precision.HIGHEST
    dn = ("NCHW", "OIHW", "NCHW")
    n = x.shape[0]
    c1 = jax.lax.conv_general_dilated(x, params["conv1_w"], (1, 1), "VALID",
                                      dimension_numbers=dn, precision=hp)
    c1 = c1 + params["conv1_b"][None, :, None, None]
    h1 = jnp.maximum(jnp.max(c1.reshape(n, C1, W1P, 2, W1P, 2), axis=(3, 5)), 0.0)
    c2 = jax.lax.conv_general_dilated(h1, params["conv2_w"], (1, 1), "VALID",
                                      dimension_numbers=dn, precision=hp)
    c2 = c2 + params["conv2_b"][None, :, None, None]
    h2 = jnp.maximum(jnp.max(c2.reshape(n, C2, H2P, 2, W2P, 2), axis=(3, 5)), 0.0)
    flat = h2.reshape(n, 320)
    f1 = jnp.maximum(jnp.dot(flat, params["fc1_w"].T, precision=hp)
                     + params["fc1_b"], 0.0)
    logits = jnp.dot(f1, params["fc2_w"].T, precision=hp) + params["fc2_b"]
    return jax.nn.log_softmax(logits, axis=-1)


if __name__ == "__main__":
    key = jax.random.PRNGKey(0)
    k_x1, k_x2, k_p = jax.random.split(key, 3)
    params = init_params(k_p, NUM_LABELS)
    prep = prepare_params(params)          # one-time host-side weight preprocessing

    fwd = jax.jit(net_forward, static_argnames=("num_labels",))

    def check(x, tag):
        out = jax.block_until_ready(fwd(x, prep))
        assert out.shape == (x.shape[0], NUM_LABELS), (tag, out.shape)
        # log_softmax rows must exponentiate to ~1
        row_sums = np.asarray(jnp.exp(out).sum(axis=-1))
        assert np.allclose(row_sums, 1.0, atol=1e-4), (tag, row_sums)
        # match the plain-JAX f32 reference (bf16 matmul tolerance)
        ref = np.asarray(reference_forward(x, params))
        err = np.abs(np.asarray(out) - ref)
        assert err.max() < 8e-2 and err.mean() < 1e-2, (tag, err.max(), err.mean())

    # small batch (BT=8, single grid step, exercises batch padding)
    check(jax.random.normal(k_x1, (2, 1, 28, 28), dtype=jnp.float32), "small")
    # larger batch (BT=128 -> M dims 768/512/128, two grid steps, N not a tile multiple)
    check(jax.random.normal(k_x2, (160, 1, 28, 28), dtype=jnp.float32), "batched")

    print("KERNEL_OK")
</pallas_src>

<mosaic_0001>
module attributes {stable_mosaic.version = 11 : i64} {
  func.func @_net_fused_kernel(%arg0: i32, %arg1: memref<1x4x48x256xbf16, #tpu.memory_space<vmem>>, %arg2: memref<256x256xbf16, #tpu.memory_space<vmem>>, %arg3: memref<1x256xf32, #tpu.memory_space<vmem>>, %arg4: memref<5x128x256xbf16, #tpu.memory_space<vmem>>, %arg5: memref<1x256xf32, #tpu.memory_space<vmem>>, %arg6: memref<512x50xbf16, #tpu.memory_space<vmem>>, %arg7: memref<1x50xf32, #tpu.memory_space<vmem>>, %arg8: memref<50x128xbf16, #tpu.memory_space<vmem>>, %arg9: memref<1x128xf32, #tpu.memory_space<vmem>>, %arg10: memref<8x128xf32, #tpu.memory_space<vmem>>, %arg11: memref<2x48x128xbf16, #tpu.memory_space<vmem>>, %arg12: memref<2x32x256xf32, #tpu.memory_space<vmem>>) attributes {dimension_semantics = [#tpu.dimension_semantics<parallel>], iteration_bounds = array<i64: 1>, scalar_prefetch = 0 : i64, scratch_operands = 2 : i64, tpu.core_type = #tpu.core_type<tc>, window_params = [{transform_indices = @transform_0, window_bounds = array<i64: 1, 4, 48, 256>}, {pipeline_mode = #tpu.pipeline_mode<synchronous>, transform_indices = @transform_1, window_bounds = array<i64: 256, 256>}, {pipeline_mode = #tpu.pipeline_mode<synchronous>, transform_indices = @transform_2, window_bounds = array<i64: 1, 256>}, {pipeline_mode = #tpu.pipeline_mode<synchronous>, transform_indices = @transform_3, window_bounds = array<i64: 5, 128, 256>}, {pipeline_mode = #tpu.pipeline_mode<synchronous>, transform_indices = @transform_4, window_bounds = array<i64: 1, 256>}, {pipeline_mode = #tpu.pipeline_mode<synchronous>, transform_indices = @transform_5, window_bounds = array<i64: 512, 50>}, {pipeline_mode = #tpu.pipeline_mode<synchronous>, transform_indices = @transform_6, window_bounds = array<i64: 1, 50>}, {pipeline_mode = #tpu.pipeline_mode<synchronous>, transform_indices = @transform_7, window_bounds = array<i64: 50, 128>}, {pipeline_mode = #tpu.pipeline_mode<synchronous>, transform_indices = @transform_8, window_bounds = array<i64: 1, 128>}, {transform_indices = @transform_9, window_bounds = array<i64: 8, 128>}]} {
    %c0 = arith.constant 0 : index
    %c0_0 = arith.constant 0 : index
    %c0_1 = arith.constant 0 : index
    %c0_2 = arith.constant 0 : index
    %0 = vector.load %arg1[%c0, %c0_0, %c0_1, %c0_2] : memref<1x4x48x256xbf16, #tpu.memory_space<vmem>>, vector<1x1x48x256xbf16>
    %1 = vector.shape_cast %0 : vector<1x1x48x256xbf16> to vector<48x256xbf16>
    %c0_3 = arith.constant 0 : index
    %c0_4 = arith.constant 0 : index
    %2 = vector.load %arg2[%c0_3, %c0_4] : memref<256x256xbf16, #tpu.memory_space<vmem>>, vector<256x256xbf16>
    %cst = arith.constant dense<0.000000e+00> : vector<48x256xf32>
    %3 = tpu.matmul %1, %2, %cst {dimension_numbers = #tpu.dot_dimension_numbers<[1], [0], [0], [1], [0, 0, 1, 1], [], []>} : vector<48x256xbf16>, vector<256x256xbf16>, vector<48x256xf32> -> vector<48x256xf32>
    %c0_5 = arith.constant 0 : index
    %c1 = arith.constant 1 : index
    %c0_6 = arith.constant 0 : index
    %c0_7 = arith.constant 0 : index
    %4 = vector.load %arg1[%c0_5, %c1, %c0_6, %c0_7] : memref<1x4x48x256xbf16, #tpu.memory_space<vmem>>, vector<1x1x48x256xbf16>
    %5 = vector.shape_cast %4 : vector<1x1x48x256xbf16> to vector<48x256xbf16>
    %c0_8 = arith.constant 0 : index
    %c0_9 = arith.constant 0 : index
    %6 = vector.load %arg2[%c0_8, %c0_9] : memref<256x256xbf16, #tpu.memory_space<vmem>>, vector<256x256xbf16>
    %cst_10 = arith.constant dense<0.000000e+00> : vector<48x256xf32>
    %7 = tpu.matmul %5, %6, %cst_10 {dimension_numbers = #tpu.dot_dimension_numbers<[1], [0], [0], [1], [0, 0, 1, 1], [], []>} : vector<48x256xbf16>, vector<256x256xbf16>, vector<48x256xf32> -> vector<48x256xf32>
    %8 = arith.maximumf %3, %7 : vector<48x256xf32>
    %c0_11 = arith.constant 0 : index
    %c0_12 = arith.constant 0 : index
    %9 = vector.load %arg3[%c0_11, %c0_12] : memref<1x256xf32, #tpu.memory_space<vmem>>, vector<1x256xf32>
    %10 = vector.broadcast %9 : vector<1x256xf32> to vector<48x256xf32>
    %11 = arith.addf %8, %10 : vector<48x256xf32>
    %12 = vector.extract_strided_slice %11 {offsets = [0, 0], sizes = [48, 128], strides = [1, 1]} : vector<48x256xf32> to vector<48x128xf32>
    %13 = vector.extract_strided_slice %11 {offsets = [0, 128], sizes = [48, 128], strides = [1, 1]} : vector<48x256xf32> to vector<48x128xf32>
    %14 = arith.maximumf %12, %13 : vector<48x128xf32>
    %cst_13 = arith.constant 0.000000e+00 : f32
    %15 = vector.broadcast %cst_13 : f32 to vector<48x128xf32>
    %16 = arith.maximumf %14, %15 : vector<48x128xf32>
    %17 = arith.truncf %16 : vector<48x128xf32> to vector<48x128xbf16>
    %c0_14 = arith.constant 0 : index
    %c0_15 = arith.constant 0 : index
    %c0_16 = arith.constant 0 : index
    %18 = vector.load %arg11[%c0_14, %c0_15, %c0_16] : memref<2x48x128xbf16, #tpu.memory_space<vmem>>, vector<1x48x128xbf16>
    %19 = vector.shape_cast %18 : vector<1x48x128xbf16> to vector<48x128xbf16>
    %20 = vector.shape_cast %17 : vector<48x128xbf16> to vector<1x48x128xbf16>
    tpu.vector_store %arg11[%c0_14, %c0_15, %c0_16], %20 {strides = array<i32>} : memref<2x48x128xbf16, #tpu.memory_space<vmem>>, vector<1x48x128xbf16>,
    %c0_17 = arith.constant 0 : index
    %c2 = arith.constant 2 : index
    %c0_18 = arith.constant 0 : index
    %c0_19 = arith.constant 0 : index
    %21 = vector.load %arg1[%c0_17, %c2, %c0_18, %c0_19] : memref<1x4x48x256xbf16, #tpu.memory_space<vmem>>, vector<1x1x48x256xbf16>
    %22 = vector.shape_cast %21 : vector<1x1x48x256xbf16> to vector<48x256xbf16>
    %c0_20 = arith.constant 0 : index
    %c0_21 = arith.constant 0 : index
    %23 = vector.load %arg2[%c0_20, %c0_21] : memref<256x256xbf16, #tpu.memory_space<vmem>>, vector<256x256xbf16>
    %cst_22 = arith.constant dense<0.000000e+00> : vector<48x256xf32>
    %24 = tpu.matmul %22, %23, %cst_22 {dimension_numbers = #tpu.dot_dimension_numbers<[1], [0], [0], [1], [0, 0, 1, 1], [], []>} : vector<48x256xbf16>, vector<256x256xbf16>, vector<48x256xf32> -> vector<48x256xf32>
    %c0_23 = arith.constant 0 : index
    %c3 = arith.constant 3 : index
    %c0_24 = arith.constant 0 : index
    %c0_25 = arith.constant 0 : index
    %25 = vector.load %arg1[%c0_23, %c3, %c0_24, %c0_25] : memref<1x4x48x256xbf16, #tpu.memory_space<vmem>>, vector<1x1x48x256xbf16>
    %26 = vector.shape_cast %25 : vector<1x1x48x256xbf16> to vector<48x256xbf16>
    %c0_26 = arith.constant 0 : index
    %c0_27 = arith.constant 0 : index
    %27 = vector.load %arg2[%c0_26, %c0_27] : memref<256x256xbf16, #tpu.memory_space<vmem>>, vector<256x256xbf16>
    %cst_28 = arith.constant dense<0.000000e+00> : vector<48x256xf32>
    %28 = tpu.matmul %26, %27, %cst_28 {dimension_numbers = #tpu.dot_dimension_numbers<[1], [0], [0], [1], [0, 0, 1, 1], [], []>} : vector<48x256xbf16>, vector<256x256xbf16>, vector<48x256xf32> -> vector<48x256xf32>
    %29 = arith.maximumf %24, %28 : vector<48x256xf32>
    %c0_29 = arith.constant 0 : index
    %c0_30 = arith.constant 0 : index
    %30 = vector.load %arg3[%c0_29, %c0_30] : memref<1x256xf32, #tpu.memory_space<vmem>>, vector<1x256xf32>
    %31 = vector.broadcast %30 : vector<1x256xf32> to vector<48x256xf32>
    %32 = arith.addf %29, %31 : vector<48x256xf32>
    %33 = vector.extract_strided_slice %32 {offsets = [0, 0], sizes = [48, 128], strides = [1, 1]} : vector<48x256xf32> to vector<48x128xf32>
    %34 = vector.extract_strided_slice %32 {offsets = [0, 128], sizes = [48, 128], strides = [1, 1]} : vector<48x256xf32> to vector<48x128xf32>
    %35 = arith.maximumf %33, %34 : vector<48x128xf32>
    %cst_31 = arith.constant 0.000000e+00 : f32
    %36 = vector.broadcast %cst_31 : f32 to vector<48x128xf32>
    %37 = arith.maximumf %35, %36 : vector<48x128xf32>
    %38 = arith.truncf %37 : vector<48x128xf32> to vector<48x128xbf16>
    %c1_32 = arith.constant 1 : index
    %c0_33 = arith.constant 0 : index
    %c0_34 = arith.constant 0 : index
    %39 = vector.load %arg11[%c1_32, %c0_33, %c0_34] : memref<2x48x128xbf16, #tpu.memory_space<vmem>>, vector<1x48x128xbf16>
    %40 = vector.shape_cast %39 : vector<1x48x128xbf16> to vector<48x128xbf16>
    %41 = vector.shape_cast %38 : vector<48x128xbf16> to vector<1x48x128xbf16>
    tpu.vector_store %arg11[%c1_32, %c0_33, %c0_34], %41 {strides = array<i32>} : memref<2x48x128xbf16, #tpu.memory_space<vmem>>, vector<1x48x128xbf16>,
    %c0_35 = arith.constant 0 : index
    %c0_36 = arith.constant 0 : index
    %c0_37 = arith.constant 0 : index
    %42 = vector.load %arg11[%c0_35, %c0_36, %c0_37] : memref<2x48x128xbf16, #tpu.memory_space<vmem>>, vector<1x32x128xbf16>
    %43 = vector.shape_cast %42 : vector<1x32x128xbf16> to vector<32x128xbf16>
    %c0_38 = arith.constant 0 : index
    %c0_39 = arith.constant 0 : index
    %c0_40 = arith.constant 0 : index
    %44 = vector.load %arg4[%c0_38, %c0_39, %c0_40] : memref<5x128x256xbf16, #tpu.memory_space<vmem>>, vector<1x128x256xbf16>
    %45 = vector.shape_cast %44 : vector<1x128x256xbf16> to vector<128x256xbf16>
    %cst_41 = arith.constant dense<0.000000e+00> : vector<32x256xf32>
    %46 = tpu.matmul %43, %45, %cst_41 {dimension_numbers = #tpu.dot_dimension_numbers<[1], [0], [0], [1], [0, 0, 1, 1], [], []>} : vector<32x128xbf16>, vector<128x256xbf16>, vector<32x256xf32> -> vector<32x256xf32>
    %c0_42 = arith.constant 0 : index
    %c0_43 = arith.constant 0 : index
    %c0_44 = arith.constant 0 : index
    %47 = vector.load %arg12[%c0_42, %c0_43, %c0_44] : memref<2x32x256xf32, #tpu.memory_space<vmem>>, vector<1x32x256xf32>
    %48 = vector.shape_cast %47 : vector<1x32x256xf32> to vector<32x256xf32>
    %49 = vector.shape_cast %46 : vector<32x256xf32> to vector<1x32x256xf32>
    tpu.vector_store %arg12[%c0_42, %c0_43, %c0_44], %49 {strides = array<i32>} : memref<2x32x256xf32, #tpu.memory_space<vmem>>, vector<1x32x256xf32>,
    %c1_45 = arith.constant 1 : index
    %c0_46 = arith.constant 0 : index
    %c0_47 = arith.constant 0 : index
    %50 = vector.load %arg11[%c1_45, %c0_46, %c0_47] : memref<2x48x128xbf16, #tpu.memory_space<vmem>>, vector<1x32x128xbf16>
    %51 = vector.shape_cast %50 : vector<1x32x128xbf16> to vector<32x128xbf16>
    %c1_48 = arith.constant 1 : index
    %c0_49 = arith.constant 0 : index
    %c0_50 = arith.constant 0 : index
    %52 = vector.load %arg4[%c1_48, %c0_49, %c0_50] : memref<5x128x256xbf16, #tpu.memory_space<vmem>>, vector<1x128x256xbf16>
    %53 = vector.shape_cast %52 : vector<1x128x256xbf16> to vector<128x256xbf16>
    %cst_51 = arith.constant dense<0.000000e+00> : vector<32x256xf32>
    %54 = tpu.matmul %51, %53, %cst_51 {dimension_numbers = #tpu.dot_dimension_numbers<[1], [0], [0], [1], [0, 0, 1, 1], [], []>} : vector<32x128xbf16>, vector<128x256xbf16>, vector<32x256xf32> -> vector<32x256xf32>
    %c0_52 = arith.constant 0 : index
    %c0_53 = arith.constant 0 : index
    %c0_54 = arith.constant 0 : index
    %55 = vector.load %arg12[%c0_52, %c0_53, %c0_54] : memref<2x32x256xf32, #tpu.memory_space<vmem>>, vector<1x32x256xf32>
    %56 = vector.shape_cast %55 : vector<1x32x256xf32> to vector<32x256xf32>
    %57 = arith.addf %56, %54 : vector<32x256xf32>
    %c0_55 = arith.constant 0 : index
    %c0_56 = arith.constant 0 : index
    %c0_57 = arith.constant 0 : index
    %58 = vector.load %arg12[%c0_55, %c0_56, %c0_57] : memref<2x32x256xf32, #tpu.memory_space<vmem>>, vector<1x32x256xf32>
    %59 = vector.shape_cast %58 : vector<1x32x256xf32> to vector<32x256xf32>
    %60 = vector.shape_cast %57 : vector<32x256xf32> to vector<1x32x256xf32>
    tpu.vector_store %arg12[%c0_55, %c0_56, %c0_57], %60 {strides = array<i32>} : memref<2x32x256xf32, #tpu.memory_space<vmem>>, vector<1x32x256xf32>,
    %c0_58 = arith.constant 0 : index
    %c8 = arith.constant 8 : index
    %c0_59 = arith.constant 0 : index
    %61 = vector.load %arg11[%c0_58, %c8, %c0_59] : memref<2x48x128xbf16, #tpu.memory_space<vmem>>, vector<1x32x128xbf16>
    %62 = vector.shape_cast %61 : vector<1x32x128xbf16> to vector<32x128xbf16>
    %c2_60 = arith.constant 2 : index
    %c0_61 = arith.constant 0 : index
    %c0_62 = arith.constant 0 : index
    %63 = vector.load %arg4[%c2_60, %c0_61, %c0_62] : memref<5x128x256xbf16, #tpu.memory_space<vmem>>, vector<1x128x256xbf16>
    %64 = vector.shape_cast %63 : vector<1x128x256xbf16> to vector<128x256xbf16>
    %cst_63 = arith.constant dense<0.000000e+00> : vector<32x256xf32>
    %65 = tpu.matmul %62, %64, %cst_63 {dimension_numbers = #tpu.dot_dimension_numbers<[1], [0], [0], [1], [0, 0, 1, 1], [], []>} : vector<32x128xbf16>, vector<128x256xbf16>, vector<32x256xf32> -> vector<32x256xf32>
    %c0_64 = arith.constant 0 : index
    %c0_65 = arith.constant 0 : index
    %c0_66 = arith.constant 0 : index
    %66 = vector.load %arg12[%c0_64, %c0_65, %c0_66] : memref<2x32x256xf32, #tpu.memory_space<vmem>>, vector<1x32x256xf32>
    %67 = vector.shape_cast %66 : vector<1x32x256xf32> to vector<32x256xf32>
    %68 = arith.addf %67, %65 : vector<32x256xf32>
    %c0_67 = arith.constant 0 : index
    %c0_68 = arith.constant 0 : index
    %c0_69 = arith.constant 0 : index
    %69 = vector.load %arg12[%c0_67, %c0_68, %c0_69] : memref<2x32x256xf32, #tpu.memory_space<vmem>>, vector<1x32x256xf32>
    %70 = vector.shape_cast %69 : vector<1x32x256xf32> to vector<32x256xf32>
    %71 = vector.shape_cast %68 : vector<32x256xf32> to vector<1x32x256xf32>
    tpu.vector_store %arg12[%c0_67, %c0_68, %c0_69], %71 {strides = array<i32>} : memref<2x32x256xf32, #tpu.memory_space<vmem>>, vector<1x32x256xf32>,
    %c1_70 = arith.constant 1 : index
    %c8_71 = arith.constant 8 : index
    %c0_72 = arith.constant 0 : index
    %72 = vector.load %arg11[%c1_70, %c8_71, %c0_72] : memref<2x48x128xbf16, #tpu.memory_space<vmem>>, vector<1x32x128xbf16>
    %73 = vector.shape_cast %72 : vector<1x32x128xbf16> to vector<32x128xbf16>
    %c3_73 = arith.constant 3 : index
    %c0_74 = arith.constant 0 : index
    %c0_75 = arith.constant 0 : index
    %74 = vector.load %arg4[%c3_73, %c0_74, %c0_75] : memref<5x128x256xbf16, #tpu.memory_space<vmem>>, vector<1x128x256xbf16>
    %75 = vector.shape_cast %74 : vector<1x128x256xbf16> to vector<128x256xbf16>
    %cst_76 = arith.constant dense<0.000000e+00> : vector<32x256xf32>
    %76 = tpu.matmul %73, %75, %cst_76 {dimension_numbers = #tpu.dot_dimension_numbers<[1], [0], [0], [1], [0, 0, 1, 1], [], []>} : vector<32x128xbf16>, vector<128x256xbf16>, vector<32x256xf32> -> vector<32x256xf32>
    %c0_77 = arith.constant 0 : index
    %c0_78 = arith.constant 0 : index
    %c0_79 = arith.constant 0 : index
    %77 = vector.load %arg12[%c0_77, %c0_78, %c0_79] : memref<2x32x256xf32, #tpu.memory_space<vmem>>, vector<1x32x256xf32>
    %78 = vector.shape_cast %77 : vector<1x32x256xf32> to vector<32x256xf32>
    %79 = arith.addf %78, %76 : vector<32x256xf32>
    %c0_80 = arith.constant 0 : index
    %c0_81 = arith.constant 0 : index
    %c0_82 = arith.constant 0 : index
    %80 = vector.load %arg12[%c0_80, %c0_81, %c0_82] : memref<2x32x256xf32, #tpu.memory_space<vmem>>, vector<1x32x256xf32>
    %81 = vector.shape_cast %80 : vector<1x32x256xf32> to vector<32x256xf32>
    %82 = vector.shape_cast %79 : vector<32x256xf32> to vector<1x32x256xf32>
    tpu.vector_store %arg12[%c0_80, %c0_81, %c0_82], %82 {strides = array<i32>} : memref<2x32x256xf32, #tpu.memory_space<vmem>>, vector<1x32x256xf32>,
    %c0_83 = arith.constant 0 : index
    %c16 = arith.constant 16 : index
    %c0_84 = arith.constant 0 : index
    %83 = vector.load %arg11[%c0_83, %c16, %c0_84] : memref<2x48x128xbf16, #tpu.memory_space<vmem>>, vector<1x32x128xbf16>
    %84 = vector.shape_cast %83 : vector<1x32x128xbf16> to vector<32x128xbf16>
    %c4 = arith.constant 4 : index
    %c0_85 = arith.constant 0 : index
    %c0_86 = arith.constant 0 : index
    %85 = vector.load %arg4[%c4, %c0_85, %c0_86] : memref<5x128x256xbf16, #tpu.memory_space<vmem>>, vector<1x128x256xbf16>
    %86 = vector.shape_cast %85 : vector<1x128x256xbf16> to vector<128x256xbf16>
    %cst_87 = arith.constant dense<0.000000e+00> : vector<32x256xf32>
    %87 = tpu.matmul %84, %86, %cst_87 {dimension_numbers = #tpu.dot_dimension_numbers<[1], [0], [0], [1], [0, 0, 1, 1], [], []>} : vector<32x128xbf16>, vector<128x256xbf16>, vector<32x256xf32> -> vector<32x256xf32>
    %c0_88 = arith.constant 0 : index
    %c0_89 = arith.constant 0 : index
    %c0_90 = arith.constant 0 : index
    %88 = vector.load %arg12[%c0_88, %c0_89, %c0_90] : memref<2x32x256xf32, #tpu.memory_space<vmem>>, vector<1x32x256xf32>
    %89 = vector.shape_cast %88 : vector<1x32x256xf32> to vector<32x256xf32>
    %90 = arith.addf %89, %87 : vector<32x256xf32>
    %c0_91 = arith.constant 0 : index
    %c0_92 = arith.constant 0 : index
    %c0_93 = arith.constant 0 : index
    %91 = vector.load %arg12[%c0_91, %c0_92, %c0_93] : memref<2x32x256xf32, #tpu.memory_space<vmem>>, vector<1x32x256xf32>
    %92 = vector.shape_cast %91 : vector<1x32x256xf32> to vector<32x256xf32>
    %93 = vector.shape_cast %90 : vector<32x256xf32> to vector<1x32x256xf32>
    tpu.vector_store %arg12[%c0_91, %c0_92, %c0_93], %93 {strides = array<i32>} : memref<2x32x256xf32, #tpu.memory_space<vmem>>, vector<1x32x256xf32>,
    %c1_94 = arith.constant 1 : index
    %c0_95 = arith.constant 0 : index
    %c0_96 = arith.constant 0 : index
    %94 = vector.load %arg11[%c1_94, %c0_95, %c0_96] : memref<2x48x128xbf16, #tpu.memory_space<vmem>>, vector<1x32x128xbf16>
    %95 = vector.shape_cast %94 : vector<1x32x128xbf16> to vector<32x128xbf16>
    %c0_97 = arith.constant 0 : index
    %c0_98 = arith.constant 0 : index
    %c0_99 = arith.constant 0 : index
    %96 = vector.load %arg4[%c0_97, %c0_98, %c0_99] : memref<5x128x256xbf16, #tpu.memory_space<vmem>>, vector<1x128x256xbf16>
    %97 = vector.shape_cast %96 : vector<1x128x256xbf16> to vector<128x256xbf16>
    %cst_100 = arith.constant dense<0.000000e+00> : vector<32x256xf32>
    %98 = tpu.matmul %95, %97, %cst_100 {dimension_numbers = #tpu.dot_dimension_numbers<[1], [0], [0], [1], [0, 0, 1, 1], [], []>} : vector<32x128xbf16>, vector<128x256xbf16>, vector<32x256xf32> -> vector<32x256xf32>
    %c1_101 = arith.constant 1 : index
    %c0_102 = arith.constant 0 : index
    %c0_103 = arith.constant 0 : index
    %99 = vector.load %arg12[%c1_101, %c0_102, %c0_103] : memref<2x32x256xf32, #tpu.memory_space<vmem>>, vector<1x32x256xf32>
    %100 = vector.shape_cast %99 : vector<1x32x256xf32> to vector<32x256xf32>
    %101 = vector.shape_cast %98 : vector<32x256xf32> to vector<1x32x256xf32>
    tpu.vector_store %arg12[%c1_101, %c0_102, %c0_103], %101 {strides = array<i32>} : memref<2x32x256xf32, #tpu.memory_space<vmem>>, vector<1x32x256xf32>,
    %c0_104 = arith.constant 0 : index
    %c8_105 = arith.constant 8 : index
    %c0_106 = arith.constant 0 : index
    %102 = vector.load %arg11[%c0_104, %c8_105, %c0_106] : memref<2x48x128xbf16, #tpu.memory_space<vmem>>, vector<1x32x128xbf16>
    %103 = vector.shape_cast %102 : vector<1x32x128xbf16> to vector<32x128xbf16>
    %c1_107 = arith.constant 1 : index
    %c0_108 = arith.constant 0 : index
    %c0_109 = arith.constant 0 : index
    %104 = vector.load %arg4[%c1_107, %c0_108, %c0_109] : memref<5x128x256xbf16, #tpu.memory_space<vmem>>, vector<1x128x256xbf16>
    %105 = vector.shape_cast %104 : vector<1x128x256xbf16> to vector<128x256xbf16>
    %cst_110 = arith.constant dense<0.000000e+00> : vector<32x256xf32>
    %106 = tpu.matmul %103, %105, %cst_110 {dimension_numbers = #tpu.dot_dimension_numbers<[1], [0], [0], [1], [0, 0, 1, 1], [], []>} : vector<32x128xbf16>, vector<128x256xbf16>, vector<32x256xf32> -> vector<32x256xf32>
    %c1_111 = arith.constant 1 : index
    %c0_112 = arith.constant 0 : index
    %c0_113 = arith.constant 0 : index
    %107 = vector.load %arg12[%c1_111, %c0_112, %c0_113] : memref<2x32x256xf32, #tpu.memory_space<vmem>>, vector<1x32x256xf32>
    %108 = vector.shape_cast %107 : vector<1x32x256xf32> to vector<32x256xf32>
    %109 = arith.addf %108, %106 : vector<32x256xf32>
    %c1_114 = arith.constant 1 : index
    %c0_115 = arith.constant 0 : index
    %c0_116 = arith.constant 0 : index
    %110 = vector.load %arg12[%c1_114, %c0_115, %c0_116] : memref<2x32x256xf32, #tpu.memory_space<vmem>>, vector<1x32x256xf32>
    %111 = vector.shape_cast %110 : vector<1x32x256xf32> to vector<32x256xf32>
    %112 = vector.shape_cast %109 : vector<32x256xf32> to vector<1x32x256xf32>
    tpu.vector_store %arg12[%c1_114, %c0_115, %c0_116], %112 {strides = array<i32>} : memref<2x32x256xf32, #tpu.memory_space<vmem>>, vector<1x32x256xf32>,
    %c1_117 = arith.constant 1 : index
    %c8_118 = arith.constant 8 : index
    %c0_119 = arith.constant 0 : index
    %113 = vector.load %arg11[%c1_117, %c8_118, %c0_119] : memref<2x48x128xbf16, #tpu.memory_space<vmem>>, vector<1x32x128xbf16>
    %114 = vector.shape_cast %113 : vector<1x32x128xbf16> to vector<32x128xbf16>
    %c2_120 = arith.constant 2 : index
    %c0_121 = arith.constant 0 : index
    %c0_122 = arith.constant 0 : index
    %115 = vector.load %arg4[%c2_120, %c0_121, %c0_122] : memref<5x128x256xbf16, #tpu.memory_space<vmem>>, vector<1x128x256xbf16>
    %116 = vector.shape_cast %115 : vector<1x128x256xbf16> to vector<128x256xbf16>
    %cst_123 = arith.constant dense<0.000000e+00> : vector<32x256xf32>
    %117 = tpu.matmul %114, %116, %cst_123 {dimension_numbers = #tpu.dot_dimension_numbers<[1], [0], [0], [1], [0, 0, 1, 1], [], []>} : vector<32x128xbf16>, vector<128x256xbf16>, vector<32x256xf32> -> vector<32x256xf32>
    %c1_124 = arith.constant 1 : index
    %c0_125 = arith.constant 0 : index
    %c0_126 = arith.constant 0 : index
    %118 = vector.load %arg12[%c1_124, %c0_125, %c0_126] : memref<2x32x256xf32, #tpu.memory_space<vmem>>, vector<1x32x256xf32>
    %119 = vector.shape_cast %118 : vector<1x32x256xf32> to vector<32x256xf32>
    %120 = arith.addf %119, %117 : vector<32x256xf32>
    %c1_127 = arith.constant 1 : index
    %c0_128 = arith.constant 0 : index
    %c0_129 = arith.constant 0 : index
    %121 = vector.load %arg12[%c1_127, %c0_128, %c0_129] : memref<2x32x256xf32, #tpu.memory_space<vmem>>, vector<1x32x256xf32>
    %122 = vector.shape_cast %121 : vector<1x32x256xf32> to vector<32x256xf32>
    %123 = vector.shape_cast %120 : vector<32x256xf32> to vector<1x32x256xf32>
    tpu.vector_store %arg12[%c1_127, %c0_128, %c0_129], %123 {strides = array<i32>} : memref<2x32x256xf32, #tpu.memory_space<vmem>>, vector<1x32x256xf32>,
    %c0_130 = arith.constant 0 : index
    %c16_131 = arith.constant 16 : index
    %c0_132 = arith.constant 0 : index
    %124 = vector.load %arg11[%c0_130, %c16_131, %c0_132] : memref<2x48x128xbf16, #tpu.memory_space<vmem>>, vector<1x32x128xbf16>
    %125 = vector.shape_cast %124 : vector<1x32x128xbf16> to vector<32x128xbf16>
    %c3_133 = arith.constant 3 : index
    %c0_134 = arith.constant 0 : index
    %c0_135 = arith.constant 0 : index
    %126 = vector.load %arg4[%c3_133, %c0_134, %c0_135] : memref<5x128x256xbf16, #tpu.memory_space<vmem>>, vector<1x128x256xbf16>
    %127 = vector.shape_cast %126 : vector<1x128x256xbf16> to vector<128x256xbf16>
    %cst_136 = arith.constant dense<0.000000e+00> : vector<32x256xf32>
    %128 = tpu.matmul %125, %127, %cst_136 {dimension_numbers = #tpu.dot_dimension_numbers<[1], [0], [0], [1], [0, 0, 1, 1], [], []>} : vector<32x128xbf16>, vector<128x256xbf16>, vector<32x256xf32> -> vector<32x256xf32>
    %c1_137 = arith.constant 1 : index
    %c0_138 = arith.constant 0 : index
    %c0_139 = arith.constant 0 : index
    %129 = vector.load %arg12[%c1_137, %c0_138, %c0_139] : memref<2x32x256xf32, #tpu.memory_space<vmem>>, vector<1x32x256xf32>
    %130 = vector.shape_cast %129 : vector<1x32x256xf32> to vector<32x256xf32>
    %131 = arith.addf %130, %128 : vector<32x256xf32>
    %c1_140 = arith.constant 1 : index
    %c0_141 = arith.constant 0 : index
    %c0_142 = arith.constant 0 : index
    %132 = vector.load %arg12[%c1_140, %c0_141, %c0_142] : memref<2x32x256xf32, #tpu.memory_space<vmem>>, vector<1x32x256xf32>
    %133 = vector.shape_cast %132 : vector<1x32x256xf32> to vector<32x256xf32>
    %134 = vector.shape_cast %131 : vector<32x256xf32> to vector<1x32x256xf32>
    tpu.vector_store %arg12[%c1_140, %c0_141, %c0_142], %134 {strides = array<i32>} : memref<2x32x256xf32, #tpu.memory_space<vmem>>, vector<1x32x256xf32>,
    %c1_143 = arith.constant 1 : index
    %c16_144 = arith.constant 16 : index
    %c0_145 = arith.constant 0 : index
    %135 = vector.load %arg11[%c1_143, %c16_144, %c0_145] : memref<2x48x128xbf16, #tpu.memory_space<vmem>>, vector<1x32x128xbf16>
    %136 = vector.shape_cast %135 : vector<1x32x128xbf16> to vector<32x128xbf16>
    %c4_146 = arith.constant 4 : index
    %c0_147 = arith.constant 0 : index
    %c0_148 = arith.constant 0 : index
    %137 = vector.load %arg4[%c4_146, %c0_147, %c0_148] : memref<5x128x256xbf16, #tpu.memory_space<vmem>>, vector<1x128x256xbf16>
    %138 = vector.shape_cast %137 : vector<1x128x256xbf16> to vector<128x256xbf16>
    %cst_149 = arith.constant dense<0.000000e+00> : vector<32x256xf32>
    %139 = tpu.matmul %136, %138, %cst_149 {dimension_numbers = #tpu.dot_dimension_numbers<[1], [0], [0], [1], [0, 0, 1, 1], [], []>} : vector<32x128xbf16>, vector<128x256xbf16>, vector<32x256xf32> -> vector<32x256xf32>
    %c1_150 = arith.constant 1 : index
    %c0_151 = arith.constant 0 : index
    %c0_152 = arith.constant 0 : index
    %140 = vector.load %arg12[%c1_150, %c0_151, %c0_152] : memref<2x32x256xf32, #tpu.memory_space<vmem>>, vector<1x32x256xf32>
    %141 = vector.shape_cast %140 : vector<1x32x256xf32> to vector<32x256xf32>
    %142 = arith.addf %141, %139 : vector<32x256xf32>
    %c1_153 = arith.constant 1 : index
    %c0_154 = arith.constant 0 : index
    %c0_155 = arith.constant 0 : index
    %143 = vector.load %arg12[%c1_153, %c0_154, %c0_155] : memref<2x32x256xf32, #tpu.memory_space<vmem>>, vector<1x32x256xf32>
    %144 = vector.shape_cast %143 : vector<1x32x256xf32> to vector<32x256xf32>
    %145 = vector.shape_cast %142 : vector<32x256xf32> to vector<1x32x256xf32>
    tpu.vector_store %arg12[%c1_153, %c0_154, %c0_155], %145 {strides = array<i32>} : memref<2x32x256xf32, #tpu.memory_space<vmem>>, vector<1x32x256xf32>,
    %c0_156 = arith.constant 0 : index
    %c0_157 = arith.constant 0 : index
    %c0_158 = arith.constant 0 : index
    %146 = vector.load %arg12[%c0_156, %c0_157, %c0_158] : memref<2x32x256xf32, #tpu.memory_space<vmem>>, vector<1x32x256xf32>
    %147 = vector.shape_cast %146 : vector<1x32x256xf32> to vector<32x256xf32>
    %c1_159 = arith.constant 1 : index
    %c0_160 = arith.constant 0 : index
    %c0_161 = arith.constant 0 : index
    %148 = vector.load %arg12[%c1_159, %c0_160, %c0_161] : memref<2x32x256xf32, #tpu.memory_space<vmem>>, vector<1x32x256xf32>
    %149 = vector.shape_cast %148 : vector<1x32x256xf32> to vector<32x256xf32>
    %150 = arith.maximumf %147, %149 : vector<32x256xf32>
    %c0_162 = arith.constant 0 : index
    %c0_163 = arith.constant 0 : index
    %151 = vector.load %arg5[%c0_162, %c0_163] : memref<1x256xf32, #tpu.memory_space<vmem>>, vector<1x256xf32>
    %152 = vector.broadcast %151 : vector<1x256xf32> to vector<32x256xf32>
    %153 = arith.addf %150, %152 : vector<32x256xf32>
    %154 = vector.extract_strided_slice %153 {offsets = [0, 0], sizes = [32, 128], strides = [1, 1]} : vector<32x256xf32> to vector<32x128xf32>
    %155 = vector.extract_strided_slice %153 {offsets = [0, 128], sizes = [32, 128], strides = [1, 1]} : vector<32x256xf32> to vector<32x128xf32>
    %156 = arith.maximumf %154, %155 : vector<32x128xf32>
    %cst_164 = arith.constant 0.000000e+00 : f32
    %157 = vector.broadcast %cst_164 : f32 to vector<32x128xf32>
    %158 = arith.maximumf %156, %157 : vector<32x128xf32>
    %159 = arith.truncf %158 : vector<32x128xf32> to vector<32x128xbf16>
    %cst_165 = arith.constant 0.000000e+00 : f32
    %160 = vector.broadcast %cst_165 : f32 to vector<8x50xf32>
    %161 = vector.extract_strided_slice %159 {offsets = [0, 0], sizes = [8, 128], strides = [1, 1]} : vector<32x128xbf16> to vector<8x128xbf16>
    %c0_166 = arith.constant 0 : index
    %c0_167 = arith.constant 0 : index
    %162 = vector.load %arg6[%c0_166, %c0_167] : memref<512x50xbf16, #tpu.memory_space<vmem>>, vector<128x50xbf16>
    %cst_168 = arith.constant dense<0.000000e+00> : vector<8x50xf32>
    %163 = tpu.matmul %161, %162, %cst_168 {dimension_numbers = #tpu.dot_dimension_numbers<[1], [0], [0], [1], [0, 0, 1, 1], [], []>} : vector<8x128xbf16>, vector<128x50xbf16>, vector<8x50xf32> -> vector<8x50xf32>
    %164 = arith.addf %160, %163 : vector<8x50xf32>
    %165 = vector.extract_strided_slice %159 {offsets = [8, 0], sizes = [8, 128], strides = [1, 1]} : vector<32x128xbf16> to vector<8x128xbf16>
    %c128 = arith.constant 128 : index
    %c0_169 = arith.constant 0 : index
    %166 = vector.load %arg6[%c128, %c0_169] : memref<512x50xbf16, #tpu.memory_space<vmem>>, vector<128x50xbf16>
    %cst_170 = arith.constant dense<0.000000e+00> : vector<8x50xf32>
    %167 = tpu.matmul %165, %166, %cst_170 {dimension_numbers = #tpu.dot_dimension_numbers<[1], [0], [0], [1], [0, 0, 1, 1], [], []>} : vector<8x128xbf16>, vector<128x50xbf16>, vector<8x50xf32> -> vector<8x50xf32>
    %168 = arith.addf %164, %167 : vector<8x50xf32>
    %169 = vector.extract_strided_slice %159 {offsets = [16, 0], sizes = [8, 128], strides = [1, 1]} : vector<32x128xbf16> to vector<8x128xbf16>
    %c256 = arith.constant 256 : index
    %c0_171 = arith.constant 0 : index
    %170 = vector.load %arg6[%c256, %c0_171] : memref<512x50xbf16, #tpu.memory_space<vmem>>, vector<128x50xbf16>
    %cst_172 = arith.constant dense<0.000000e+00> : vector<8x50xf32>
    %171 = tpu.matmul %169, %170, %cst_172 {dimension_numbers = #tpu.dot_dimension_numbers<[1], [0], [0], [1], [0, 0, 1, 1], [], []>} : vector<8x128xbf16>, vector<128x50xbf16>, vector<8x50xf32> -> vector<8x50xf32>
    %172 = arith.addf %168, %171 : vector<8x50xf32>
    %173 = vector.extract_strided_slice %159 {offsets = [24, 0], sizes = [8, 128], strides = [1, 1]} : vector<32x128xbf16> to vector<8x128xbf16>
    %c384 = arith.constant 384 : index
    %c0_173 = arith.constant 0 : index
    %174 = vector.load %arg6[%c384, %c0_173] : memref<512x50xbf16, #tpu.memory_space<vmem>>, vector<128x50xbf16>
    %cst_174 = arith.constant dense<0.000000e+00> : vector<8x50xf32>
    %175 = tpu.matmul %173, %174, %cst_174 {dimension_numbers = #tpu.dot_dimension_numbers<[1], [0], [0], [1], [0, 0, 1, 1], [], []>} : vector<8x128xbf16>, vector<128x50xbf16>, vector<8x50xf32> -> vector<8x50xf32>
    %176 = arith.addf %172, %175 : vector<8x50xf32>
    %c0_175 = arith.constant 0 : index
    %c0_176 = arith.constant 0 : index
    %177 = vector.load %arg7[%c0_175, %c0_176] : memref<1x50xf32, #tpu.memory_space<vmem>>, vector<1x50xf32>
    %178 = vector.broadcast %177 : vector<1x50xf32> to vector<8x50xf32>
    %179 = arith.addf %176, %178 : vector<8x50xf32>
    %cst_177 = arith.constant 0.000000e+00 : f32
    %180 = vector.broadcast %cst_177 : f32 to vector<8x50xf32>
    %181 = arith.maximumf %179, %180 : vector<8x50xf32>
    %182 = arith.truncf %181 : vector<8x50xf32> to vector<8x50xbf16>
    %c0_178 = arith.constant 0 : index
    %c0_179 = arith.constant 0 : index
    %183 = vector.load %arg8[%c0_178, %c0_179] : memref<50x128xbf16, #tpu.memory_space<vmem>>, vector<50x128xbf16>
    %cst_180 = arith.constant dense<0.000000e+00> : vector<8x128xf32>
    %184 = tpu.matmul %182, %183, %cst_180 {dimension_numbers = #tpu.dot_dimension_numbers<[1], [0], [0], [1], [0, 0, 1, 1], [], []>} : vector<8x50xbf16>, vector<50x128xbf16>, vector<8x128xf32> -> vector<8x128xf32>
    %c0_181 = arith.constant 0 : index
    %c0_182 = arith.constant 0 : index
    %185 = vector.load %arg9[%c0_181, %c0_182] : memref<1x128xf32, #tpu.memory_space<vmem>>, vector<1x128xf32>
    %186 = vector.broadcast %185 : vector<1x128xf32> to vector<8x128xf32>
    %187 = arith.addf %184, %186 : vector<8x128xf32>
    %cst_183 = arith.constant dense<0xFF800000> : vector<8xf32>
    %188 = vector.multi_reduction <maximumf>, %187, %cst_183 [1] : vector<8x128xf32> to vector<8xf32>
    %189 = vector.shape_cast %188 : vector<8xf32> to vector<8x1xf32>
    %190 = vector.broadcast %189 : vector<8x1xf32> to vector<8x128xf32>
    %191 = arith.subf %187, %190 : vector<8x128xf32>
    %192 = math.exp %191 : vector<8x128xf32>
    %cst_184 = arith.constant dense<0.000000e+00> : vector<8xf32>
    %193 = vector.multi_reduction <add>, %192, %cst_184 [1] : vector<8x128xf32> to vector<8xf32>
    %194 = vector.shape_cast %193 : vector<8xf32> to vector<8x1xf32>
    %195 = math.log %194 : vector<8x1xf32>
    %196 = vector.broadcast %195 : vector<8x1xf32> to vector<8x128xf32>
    %197 = arith.subf %191, %196 : vector<8x128xf32>
    %c0_185 = arith.constant 0 : index
    %c0_186 = arith.constant 0 : index
    %198 = vector.load %arg10[%c0_185, %c0_186] : memref<8x128xf32, #tpu.memory_space<vmem>>, vector<8x128xf32>
    tpu.vector_store %arg10[%c0_185, %c0_186], %197 {strides = array<i32>} : memref<8x128xf32, #tpu.memory_space<vmem>>, vector<8x128xf32>,
    return
  }
  func.func @transform_0(%arg0: i32) -> (i32, i32, i32, i32) {
    %c0_i32 = arith.constant 0 : i32
    %c0_i32_0 = arith.constant 0 : i32
    %c0_i32_1 = arith.constant 0 : i32
    %c0_i32_2 = arith.constant 0 : i32
    return %arg0, %c0_i32, %c0_i32_0, %c0_i32_1 : i32, i32, i32, i32
  }
  func.func @transform_1(%arg0: i32) -> (i32, i32) {
    %c0_i32 = arith.constant 0 : i32
    %c0_i32_0 = arith.constant 0 : i32
    %c0_i32_1 = arith.constant 0 : i32
    return %c0_i32, %c0_i32_0 : i32, i32
  }
  func.func @transform_2(%arg0: i32) -> (i32, i32) {
    %c0_i32 = arith.constant 0 : i32
    %c0_i32_0 = arith.constant 0 : i32
    %c0_i32_1 = arith.constant 0 : i32
    return %c0_i32, %c0_i32_0 : i32, i32
  }
  func.func @transform_3(%arg0: i32) -> (i32, i32, i32) {
    %c0_i32 = arith.constant 0 : i32
    %c0_i32_0 = arith.constant 0 : i32
    %c0_i32_1 = arith.constant 0 : i32
    %c0_i32_2 = arith.constant 0 : i32
    return %c0_i32, %c0_i32_0, %c0_i32_1 : i32, i32, i32
  }
  func.func @transform_4(%arg0: i32) -> (i32, i32) {
    %c0_i32 = arith.constant 0 : i32
    %c0_i32_0 = arith.constant 0 : i32
    %c0_i32_1 = arith.constant 0 : i32
    return %c0_i32, %c0_i32_0 : i32, i32
  }
  func.func @transform_5(%arg0: i32) -> (i32, i32) {
    %c0_i32 = arith.constant 0 : i32
    %c0_i32_0 = arith.constant 0 : i32
    %c0_i32_1 = arith.constant 0 : i32
    return %c0_i32, %c0_i32_0 : i32, i32
  }
  func.func @transform_6(%arg0: i32) -> (i32, i32) {
    %c0_i32 = arith.constant 0 : i32
    %c0_i32_0 = arith.constant 0 : i32
    %c0_i32_1 = arith.constant 0 : i32
    return %c0_i32, %c0_i32_0 : i32, i32
  }
  func.func @transform_7(%arg0: i32) -> (i32, i32) {
    %c0_i32 = arith.constant 0 : i32
    %c0_i32_0 = arith.constant 0 : i32
    %c0_i32_1 = arith.constant 0 : i32
    return %c0_i32, %c0_i32_0 : i32, i32
  }
  func.func @transform_8(%arg0: i32) -> (i32, i32) {
    %c0_i32 = arith.constant 0 : i32
    %c0_i32_0 = arith.constant 0 : i32
    %c0_i32_1 = arith.constant 0 : i32
    return %c0_i32, %c0_i32_0 : i32, i32
  }
  func.func @transform_9(%arg0: i32) -> (i32, i32) {
    %c0_i32 = arith.constant 0 : i32
    %c0_i32_0 = arith.constant 0 : i32
    return %arg0, %c0_i32 : i32, i32
  }
}

</mosaic_0001>

<bundles_post_ra>
// kernel: net_forward.1
= control target key start
LH: loop header
LB: loop body
LE: loop exit
PB: predicated region body
PF: predicated region fallthrough
CT: control target
= control target key end

     0   :  { %vm3173_vm0 = vcmask 1040384   ;;  %vm3169_vm1 = vcmask 408576   ;;  %s7095_s1 = inlined_call_operand.vmem [shape: bf16[256,256], index: 1, kind: input, shape index: {}]   ;;  %s7096_s0 = inlined_call_operand.vmem [shape: bf16[1,4,48,256], index: 0, kind: input, shape index: {}]   ;;  %s7097_s3 = inlined_call_operand.vmem [shape: bf16[5,128,256], index: 3, kind: input, shape index: {}]   ;;  %s7098_s2 = inlined_call_operand.vmem [shape: f32[1,256], index: 2, kind: input, shape index: {}]   ;;  %s7099_s5 = inlined_call_operand.vmem [shape: bf16[512,50], index: 5, kind: input, shape index: {}]   ;;  %s7100_s4 = inlined_call_operand.vmem [shape: f32[1,256], index: 4, kind: input, shape index: {}]   ;;  %s7101_s6 = inlined_call_operand.vmem [shape: f32[1,50], index: 6, kind: input, shape index: {}]   ;;  %s7102_s8 = inlined_call_operand.vmem [shape: f32[1,128], index: 8, kind: input, shape index: {}]   ;;  %s7103_s7 = inlined_call_operand.vmem [shape: bf16[50,128], index: 7, kind: input, shape index: {}]   ;;  %s7104_s9 = inlined_call_operand.vmem [shape: f32[8,128], index: 9, kind: output, shape index: {}]  }
   0x1   :  { %v3287_v0 = vld [vmem:[%s7095_s1 + $0x70] sm:$0xf]  ;;  %v4585_v1 = vld [vmem:[%s7095_s1 + $0x74] sm:$0xf0]  ;;  %v4584_v5 = vld [vmem:[%s7095_s1 + $0x74] sm:$0xf] }
   0x2   :  { %v3351_v2 = vld [vmem:[%s7095_s1 + $0xf0] sm:$0xf]  ;;  %v4966_v3 = vor.u32 %v4585_v1, %v3287_v0  ;;  %v4601_v4 = vld [vmem:[%s7095_s1 + $0xf4] sm:$0xf0]  ;;  %v3289_v6 = vld [vmem:[%s7095_s1 + $0x78] sm:$0xf0] }
   0x3   :  { %v4977_v7 = vor.u32 %v4601_v4, %v3351_v2  ;;  %v4979_v8 = vor.u32 %v4584_v5, %v3289_v6  ;;  %v4600_v9 = vld [vmem:[%s7095_s1 + $0xf4] sm:$0xf]  ;;  %v3353_v10 = vld [vmem:[%s7095_s1 + $0xf8] sm:$0xf0]  ;;  %v3279_v11 = vld [vmem:[%s7095_s1 + $0x60] sm:$0xf] }
   0x4   :  { %261 = vmatpush.bf16.msra.mxu0 %v4966_v3  ;;  %v4991_v12 = vor.u32 %v4600_v9, %v3353_v10  ;;  %v4583_v13 = vld [vmem:[%s7095_s1 + $0x64] sm:$0xf0]  ;;  %v3343_v14 = vld [vmem:[%s7095_s1 + $0xe0] sm:$0xf]  ;;  %v4582_v18 = vld [vmem:[%s7095_s1 + $0x64] sm:$0xf] }
   0x5   :  { %v4599_v15 = vld [vmem:[%s7095_s1 + $0xe4] sm:$0xf0]  ;;  %285 = vmatpush.bf16.msra.mxu1 %v4977_v7  ;;  %309 = vmatpush.bf16.msra.mxu2 %v4979_v8  ;;  %v5004_v16 = vor.u32 %v4583_v13, %v3279_v11  ;;  %v3281_v19 = vld [vmem:[%s7095_s1 + $0x68] sm:$0xf0]  ;;  %v4598_v20 = vld [vmem:[%s7095_s1 + $0xe4] sm:$0xf] }
   0x6   :  { %v5006_v17 = vor.u32 %v4599_v15, %v3343_v14  ;;  %333 = vmatpush.bf16.msra.mxu3 %v4991_v12  ;;  %v5018_v21 = vor.u32 %v4582_v18, %v3281_v19  ;;  %v3345_v22 = vld [vmem:[%s7095_s1 + $0xe8] sm:$0xf0]  ;;  %v3271_v23 = vld [vmem:[%s7095_s1 + $0x50] sm:$0xf]  ;;  %v4581_v24 = vld [vmem:[%s7095_s1 + $0x54] sm:$0xf0] }
   0x7   :  { %v5029_v25 = vor.u32 %v4598_v20, %v3345_v22  ;;  %v3335_v26 = vld [vmem:[%s7095_s1 + $0xd0] sm:$0xf]  ;;  %v4597_v27 = vld [vmem:[%s7095_s1 + $0xd4] sm:$0xf0]  ;;  %v4580_v28 = vld [vmem:[%s7095_s1 + $0x54] sm:$0xf]  ;;  %v5041_v29 = vor.u32 %v4581_v24, %v3271_v23 }
   0x8   :  { %262 = vmatpush.bf16.msra.mxu0 %v5004_v16  ;;  %v3273_v30 = vld [vmem:[%s7095_s1 + $0x58] sm:$0xf0]  ;;  %v4596_v31 = vld [vmem:[%s7095_s1 + $0xd4] sm:$0xf]  ;;  %v5054_v33 = vor.u32 %v4597_v27, %v3335_v26  ;;  %v3263_v35 = vld [vmem:[%s7095_s1 + $0x40] sm:$0xf] }
   0x9   :  { %v3337_v32 = vld [vmem:[%s7095_s1 + $0xd8] sm:$0xf0]  ;;  %286 = vmatpush.bf16.msra.mxu1 %v5006_v17  ;;  %310 = vmatpush.bf16.msra.mxu2 %v5018_v21  ;;  %v5056_v34 = vor.u32 %v4580_v28, %v3273_v30  ;;  %v4579_v36 = vld [vmem:[%s7095_s1 + $0x44] sm:$0xf0]  ;;  %v3327_v37 = vld [vmem:[%s7095_s1 + $0xc0] sm:$0xf] }
   0xa   :  { %334 = vmatpush.bf16.msra.mxu3 %v5029_v25  ;;  %v5068_v38 = vor.u32 %v4596_v31, %v3337_v32  ;;  %v4595_v39 = vld [vmem:[%s7095_s1 + $0xc4] sm:$0xf0]  ;;  %v4578_v40 = vld [vmem:[%s7095_s1 + $0x44] sm:$0xf]  ;;  %v3265_v41 = vld [vmem:[%s7095_s1 + $0x48] sm:$0xf0]  ;;  %v5086_v44 = vor.u32 %v4579_v36, %v3263_v35 }
   0xb   :  { %v4594_v42 = vld [vmem:[%s7095_s1 + $0xc4] sm:$0xf]  ;;  %v3329_v43 = vld [vmem:[%s7095_s1 + $0xc8] sm:$0xf0]  ;;  %v5090_v45 = vor.u32 %v4595_v39, %v3327_v37  ;;  %v5092_v46 = vor.u32 %v4578_v40, %v3265_v41  ;;  %v3255_v47 = vld [vmem:[%s7095_s1 + $0x30] sm:$0xf] }
   0xc   :  { %263 = vmatpush.bf16.msra.mxu0 %v5041_v29  ;;  %v4577_v48 = vld [vmem:[%s7095_s1 + $0x34] sm:$0xf0]  ;;  %v3319_v49 = vld [vmem:[%s7095_s1 + $0xb0] sm:$0xf]  ;;  %v5104_v50 = vor.u32 %v4594_v42, %v3329_v43  ;;  %v4576_v52 = vld [vmem:[%s7095_s1 + $0x34] sm:$0xf] }
   0xd   :  { %287 = vmatpush.bf16.msra.mxu1 %v5054_v33  ;;  %311 = vmatpush.bf16.msra.mxu2 %v5056_v34  ;;  %v4593_v51 = vld [vmem:[%s7095_s1 + $0xb4] sm:$0xf0]  ;;  %v3257_v53 = vld [vmem:[%s7095_s1 + $0x38] sm:$0xf0]  ;;  %v4592_v54 = vld [vmem:[%s7095_s1 + $0xb4] sm:$0xf]  ;;  %v5122_v56 = vor.u32 %v4577_v48, %v3255_v47 }
   0xe   :  { %335 = vmatpush.bf16.msra.mxu3 %v5068_v38  ;;  %v3321_v55 = vld [vmem:[%s7095_s1 + $0xb8] sm:$0xf0]  ;;  %v5126_v57 = vor.u32 %v4593_v51, %v3319_v49  ;;  %v5128_v58 = vor.u32 %v4576_v52, %v3257_v53  ;;  %v3247_v59 = vld [vmem:[%s7095_s1 + $0x20] sm:$0xf]  ;;  %v4575_v60 = vld [vmem:[%s7095_s1 + $0x24] sm:$0xf0] }
   0xf   :  { %v3311_v61 = vld [vmem:[%s7095_s1 + $0xa0] sm:$0xf]  ;;  %v5140_v62 = vor.u32 %v4592_v54, %v3321_v55  ;;  %v4591_v63 = vld [vmem:[%s7095_s1 + $0xa4] sm:$0xf0]  ;;  %v4574_v0 = vld [vmem:[%s7095_s1 + $0x24] sm:$0xf]  ;;  %v5158_v5 = vor.u32 %v4575_v60, %v3247_v59 }
  0x10   :  { %264 = vmatpush.bf16.msra.mxu0 %v5086_v44  ;;  %v3249_v1 = vld [vmem:[%s7095_s1 + $0x28] sm:$0xf0]  ;;  %v4590_v2 = vld [vmem:[%s7095_s1 + $0xa4] sm:$0xf]  ;;  %v5162_v6 = vor.u32 %v4591_v63, %v3311_v61  ;;  %v3239_v10 = vld [vmem:[%s7095_s1 + $0x10] sm:$0xf] }
  0x11   :  { %288 = vmatpush.bf16.msra.mxu1 %v5090_v45  ;;  %312 = vmatpush.bf16.msra.mxu2 %v5092_v46  ;;  %v3313_v4 = vld [vmem:[%s7095_s1 + $0xa8] sm:$0xf0]  ;;  %v5164_v9 = vor.u32 %v4574_v0, %v3249_v1  ;;  %v4573_v11 = vld [vmem:[%s7095_s1 + $0x14] sm:$0xf0]  ;;  %v3303_v13 = vld [vmem:[%s7095_s1 + $0x90] sm:$0xf] }
  0x12   :  { %336 = vmatpush.bf16.msra.mxu3 %v5104_v50  ;;  %v5176_v14 = vor.u32 %v4590_v2, %v3313_v4  ;;  %v4589_v15 = vld [vmem:[%s7095_s1 + $0x94] sm:$0xf0]  ;;  %v4572_v18 = vld [vmem:[%s7095_s1 + $0x14] sm:$0xf]  ;;  %v3241_v19 = vld [vmem:[%s7095_s1 + $0x18] sm:$0xf0]  ;;  %v5194_v23 = vor.u32 %v4573_v11, %v3239_v10 }
  0x13   :  { %v4588_v20 = vld [vmem:[%s7095_s1 + $0x94] sm:$0xf]  ;;  %v3305_v22 = vld [vmem:[%s7095_s1 + $0x98] sm:$0xf0]  ;;  %v5198_v24 = vor.u32 %v4589_v15, %v3303_v13  ;;  %v5200_v26 = vor.u32 %v4572_v18, %v3241_v19  ;;  %v3231_v27 = vld [vmem:[%s7095_s1] sm:$0xf] }
  0x14   :  { %265 = vmatpush.bf16.msra.mxu0 %v5122_v56  ;;  %v4571_v28 = vld [vmem:[%s7095_s1 + $0x4] sm:$0xf0]  ;;  %v3295_v30 = vld [vmem:[%s7095_s1 + $0x80] sm:$0xf]  ;;  %v5212_v31 = vor.u32 %v4588_v20, %v3305_v22  ;;  %v4570_v35 = vld [vmem:[%s7095_s1 + $0x4] sm:$0xf] }
  0x15   :  { %289 = vmatpush.bf16.msra.mxu1 %v5126_v57  ;;  %313 = vmatpush.bf16.msra.mxu2 %v5128_v58  ;;  %v4587_v32 = vld [vmem:[%s7095_s1 + $0x84] sm:$0xf0]  ;;  %v3233_v36 = vld [vmem:[%s7095_s1 + $0x8] sm:$0xf0]  ;;  %v4586_v37 = vld [vmem:[%s7095_s1 + $0x84] sm:$0xf]  ;;  %v5230_v40 = vor.u32 %v4571_v28, %v3231_v27 }
  0x16   :  { %337 = vmatpush.bf16.msra.mxu3 %v5140_v62  ;;  %v3297_v39 = vld [vmem:[%s7095_s1 + $0x88] sm:$0xf0]  ;;  %v3207_v41 = vld [vmem:[%s7096_s0] sm:$0xf]  ;;  %v4565_v42 = vld [vmem:[%s7096_s0 + $0x4] sm:$0xf0]  ;;  %v5240_v43 = vor.u32 %v4587_v32, %v3295_v30  ;;  %v5242_v47 = vor.u32 %v4570_v35, %v3233_v36 }
  0x17   :  { %v4564_v48 = vld [vmem:[%s7096_s0 + $0x4] sm:$0xf]  ;;  %v3209_v49 = vld [vmem:[%s7096_s0 + $0x8] sm:$0xf0]  ;;  %v5251_v51 = vor.u32 %v4586_v37, %v3297_v39  ;;  %v3208_v52 = vor.u32 %v4565_v42, %v3207_v41  ;;  %v3539_v54 = vld [vmem:[%s7095_s1 + $0xf0] sm:$0xf] }
  0x18   :  { %266 = vmatpush.bf16.msra.mxu0 %v5158_v5  ;;  %v3212_v53 = vor.u32 %v4564_v48, %v3209_v49  ;;  %v4645_v55 = vld [vmem:[%s7095_s1 + $0xf4] sm:$0xf0]  ;;  %v4626_v59 = vld [vmem:[%s7095_s1 + $0x64] sm:$0xf]  ;;  %v3469_v60 = vld [vmem:[%s7095_s1 + $0x68] sm:$0xf0] }
  0x19   :  { %290 = vmatpush.bf16.msra.mxu1 %v5162_v6  ;;  %314 = vmatpush.bf16.msra.mxu2 %v5164_v9  ;;  %v4642_v61 = vld [vmem:[%s7095_s1 + $0xe4] sm:$0xf]  ;;  %v5351_v63 = vor.u32 %v4645_v55, %v3539_v54  ;;  %v3533_v0 = vld [vmem:[%s7095_s1 + $0xe8] sm:$0xf0]  ;;  %v3467_v1 = vld [vmem:[%s7095_s1 + $0x60] sm:$0xf] }
  0x1a   :  { %338 = vmatpush.bf16.msra.mxu3 %v5176_v14  ;;  %v4627_v2 = vld [vmem:[%s7095_s1 + $0x64] sm:$0xf0]  ;;  %v5374_v10 = vor.u32 %v4642_v61, %v3533_v0  ;;  %v4624_v13 = vld [vmem:[%s7095_s1 + $0x54] sm:$0xf]  ;;  %v3525_v19 = vld [vmem:[%s7095_s1 + $0xd8] sm:$0xf0] }
  0x1b   :  { %v5376_v11 = vor.u32 %v4627_v2, %v3467_v1  ;;  %v4640_v18 = vld [vmem:[%s7095_s1 + $0xd4] sm:$0xf]  ;;  %v3459_v22 = vld [vmem:[%s7095_s1 + $0x50] sm:$0xf]  ;;  %v4641_v28 = vld [vmem:[%s7095_s1 + $0xd4] sm:$0xf0] }
  0x1c   :  { %267 = vmatpush.bf16.msra.mxu0 %v5194_v23  ;;  %v4622_v30 = vld [vmem:[%s7095_s1 + $0x44] sm:$0xf]  ;;  %v3517_v36 = vld [vmem:[%s7095_s1 + $0xc8] sm:$0xf0]  ;;  %v3451_v37 = vld [vmem:[%s7095_s1 + $0x40] sm:$0xf] }
  0x1d   :  { %291 = vmatpush.bf16.msra.mxu1 %v5198_v24  ;;  %315 = vmatpush.bf16.msra.mxu2 %v5200_v26  ;;  %v4638_v35 = vld [vmem:[%s7095_s1 + $0xc4] sm:$0xf]  ;;  %v4623_v39 = vld [vmem:[%s7095_s1 + $0x44] sm:$0xf0]  ;;  %v4620_v49 = vld [vmem:[%s7095_s1 + $0x34] sm:$0xf] }
  0x1e   :  { %339 = vmatpush.bf16.msra.mxu3 %v5212_v31  ;;  %v4639_v41 = vld [vmem:[%s7095_s1 + $0xc4] sm:$0xf0]  ;;  %v5451_v48 = vor.u32 %v4623_v39, %v3451_v37  ;;  %v4634_v55 = vld [vmem:[%s7095_s1 + $0xa4] sm:$0xf]  ;;  %v3435_v61 = vld [vmem:[%s7095_s1 + $0x20] sm:$0xf] }
  0x1f   :  { %v3499_v0 = vld [vmem:[%s7095_s1 + $0xa0] sm:$0xf]  ;;  %v4635_v2 = vld [vmem:[%s7095_s1 + $0xa4] sm:$0xf0]  ;;  %v4630_v37 = vld [vmem:[%s7095_s1 + $0x84] sm:$0xf] }
  0x20   :  { %268 = vmatpush.bf16.msra.mxu0 %v5230_v40 }
  0x21   :  { %292 = vmatpush.bf16.msra.mxu1 %v5240_v43  ;;  %316 = vmatpush.bf16.msra.mxu2 %v5242_v47 }
  0x22   :  { %340 = vmatpush.bf16.msra.mxu3 %v5251_v51 }
  0x23   :  { %269 = vmatmul.bf16.vlgmr.msra.gmra.mxu0 %v3208_v52 }
  0x24   :  { %293 = vmatmul.bf16.vlgmr.msra.gmra.mxu1 %v3212_v53  ;;  %317 = vmatmul.bf16.vlgmr.msra.gmra.mxu2 %v3208_v52  ;;  %v4636_v52 = vld [vmem:[%s7095_s1 + $0xb4] sm:$0xf] }
  0x25   :  { %442 = vmatpush.bf16.msrb.mxu2 %v4979_v8  ;;  %341 = vmatmul.bf16.vlgmr.msra.gmra.mxu3 %v3212_v53  ;;  %v3215_v8 = vld [vmem:[%s7096_s0 + $0x10] sm:$0xf] }
  0x26   :  { %466 = vmatpush.bf16.msrb.mxu3 %v4991_v12  ;;  %394 = vmatpush.bf16.msrb.mxu0 %v4966_v3  ;;  %v4567_v3 = vld [vmem:[%s7096_s0 + $0x14] sm:$0xf0]  ;;  %v3217_v12 = vld [vmem:[%s7096_s0 + $0x18] sm:$0xf0] }
  0x27   :  { %418 = vmatpush.bf16.msrb.mxu1 %v4977_v7  ;;  %v4566_v7 = vld [vmem:[%s7096_s0 + $0x14] sm:$0xf] }
  0x29   :  { %443 = vmatpush.bf16.msrb.mxu2 %v5018_v21  ;;  %v4628_v21 = vld [vmem:[%s7095_s1 + $0x74] sm:$0xf] }
  0x2a   :  { %467 = vmatpush.bf16.msrb.mxu3 %v5029_v25  ;;  %395 = vmatpush.bf16.msrb.mxu0 %v5004_v16  ;;  %v3216_v16 = vor.u32 %v4567_v3, %v3215_v8  ;;  %v3477_v25 = vld [vmem:[%s7095_s1 + $0x78] sm:$0xf0]  ;;  %v3443_v3 = vld [vmem:[%s7095_s1 + $0x30] sm:$0xf] }
  0x2b   :  { %419 = vmatpush.bf16.msrb.mxu1 %v5006_v17  ;;  %v3220_v17 = vor.u32 %v4566_v7, %v3217_v12  ;;  %v3509_v8 = vld [vmem:[%s7095_s1 + $0xb8] sm:$0xf0]  ;;  %v4621_v7 = vld [vmem:[%s7095_s1 + $0x34] sm:$0xf0] }
  0x2c   :  { %v4603_v12 = vld [vmem:[%s7096_s0 + $0x34] sm:$0xf0] }
  0x2d   :  { %444 = vmatpush.bf16.msrb.mxu2 %v5056_v34  ;;  %v3223_v34 = vld [vmem:[%s7096_s0 + $0x20] sm:$0xf] }
  0x2e   :  { %468 = vmatpush.bf16.msrb.mxu3 %v5068_v38  ;;  %396 = vmatpush.bf16.msrb.mxu0 %v5041_v29  ;;  %v4644_v29 = vld [vmem:[%s7095_s1 + $0xf4] sm:$0xf]  ;;  %v5310_v38 = vor.u32 %v4628_v21, %v3477_v25  ;;  %v3367_v25 = vld [vmem:[%s7096_s0 + $0x38] sm:$0xf0] }
  0x2f   :  { %420 = vmatpush.bf16.msrb.mxu1 %v5054_v33  ;;  %v3541_v33 = vld [vmem:[%s7095_s1 + $0xf8] sm:$0xf0]  ;;  %v4602_v21 = vld [vmem:[%s7096_s0 + $0x34] sm:$0xf] }
  0x31   :  { %445 = vmatpush.bf16.msrb.mxu2 %v5092_v46  ;;  %v4569_v46 = vld [vmem:[%s7096_s0 + $0x24] sm:$0xf0] }
  0x32   :  { %469 = vmatpush.bf16.msrb.mxu3 %v5104_v50  ;;  %397 = vmatpush.bf16.msrb.mxu0 %v5086_v44  ;;  %v3475_v44 = vld [vmem:[%s7095_s1 + $0x70] sm:$0xf]  ;;  %v5321_v50 = vor.u32 %v4644_v29, %v3541_v33  ;;  %v5494_v33 = vor.u32 %v4636_v52, %v3509_v8  ;;  %v4631_v52 = vld [vmem:[%s7095_s1 + $0x84] sm:$0xf0]  ;;  %v3373_v8 = vld [vmem:[%s7096_s0 + $0x40] sm:$0xf] }
  0x33   :  { %421 = vmatpush.bf16.msrb.mxu1 %v5090_v45  ;;  %274 = vmatmul.bf16.gmra.mxu0 %v3216_v16  ;;  %v4629_v45 = vld [vmem:[%s7095_s1 + $0x74] sm:$0xf0] }
  0x34   :  { %298 = vmatmul.bf16.gmra.mxu1 %v3220_v17  ;;  %322 = vmatmul.bf16.gmra.mxu2 %v3216_v16  ;;  %v3507_v16 = vld [vmem:[%s7095_s1 + $0xb0] sm:$0xf] }
  0x35   :  { %446 = vmatpush.bf16.msrb.mxu2 %v5128_v58  ;;  %346 = vmatmul.bf16.gmra.mxu3 %v3220_v17  ;;  %v5338_v58 = vor.u32 %v4629_v45, %v3475_v44  ;;  %v4637_v17 = vld [vmem:[%s7095_s1 + $0xb4] sm:$0xf0]  ;;  %v4618_v44 = vld [vmem:[%s7095_s1 + $0x24] sm:$0xf]  ;;  %v3437_v45 = vld [vmem:[%s7095_s1 + $0x28] sm:$0xf0] }
  0x36   :  { %470 = vmatpush.bf16.msrb.mxu3 %v5140_v62  ;;  %398 = vmatpush.bf16.msrb.mxu0 %v5122_v56  ;;  %v4568_v56 = vld [vmem:[%s7096_s0 + $0x24] sm:$0xf]  ;;  %v3224_v62 = vor.u32 %v4569_v46, %v3223_v34  ;;  %v5496_v34 = vor.u32 %v4621_v7, %v3443_v3  ;;  %v5505_v54 = vor.u32 %v4637_v17, %v3507_v16  ;;  %v4605_v3 = vld [vmem:[%s7096_s0 + $0x44] sm:$0xf0]  ;;  %v3375_v16 = vld [vmem:[%s7096_s0 + $0x48] sm:$0xf0] }
  0x37   :  { %422 = vmatpush.bf16.msrb.mxu1 %v5126_v57  ;;  %v3225_v57 = vld [vmem:[%s7096_s0 + $0x28] sm:$0xf0] }
  0x38   :  { %v3228_v4 = vor.u32 %v4568_v56, %v3225_v57  ;;  %v3501_v56 = vld [vmem:[%s7095_s1 + $0xa8] sm:$0xf0]  ;;  %v3370_v57 = vor.u32 %v4602_v21, %v3367_v25  ;;  %v3374_v21 = vor.u32 %v4605_v3, %v3373_v8  ;;  %v3561_v8 = vld [vmem:[%s7096_s0 + $0xa0] sm:$0xf]  ;;  %v4649_v3 = vld [vmem:[%s7096_s0 + $0xa4] sm:$0xf0] }
  0x39   :  { %447 = vmatpush.bf16.msrb.mxu2 %v5164_v9  ;;  %v5370_v9 = vor.u32 %v4626_v59, %v3469_v60  ;;  %v5514_v59 = vor.u32 %v4618_v44, %v3437_v45  ;;  %v5518_v60 = vor.u32 %v4634_v55, %v3501_v56  ;;  %v4613_v44 = vld [vmem:[%s7096_s0 + $0x84] sm:$0xf0]  ;;  %v4612_v45 = vld [vmem:[%s7096_s0 + $0x84] sm:$0xf] }
  0x3a   :  { %471 = vmatpush.bf16.msrb.mxu3 %v5176_v14  ;;  %399 = vmatpush.bf16.msrb.mxu0 %v5158_v5  ;;  %v3531_v5 = vld [vmem:[%s7095_s1 + $0xe0] sm:$0xf]  ;;  %v3461_v14 = vld [vmem:[%s7095_s1 + $0x58] sm:$0xf0] }
  0x3b   :  { %423 = vmatpush.bf16.msrb.mxu1 %v5162_v6  ;;  %v4643_v6 = vld [vmem:[%s7095_s1 + $0xe4] sm:$0xf0]  ;;  %v5394_v20 = vor.u32 %v4624_v13, %v3461_v14  ;;  %v4632_v14 = vld [vmem:[%s7095_s1 + $0x94] sm:$0xf] }
  0x3c   :  { %v5385_v15 = vor.u32 %v4643_v6, %v3531_v5  ;;  %v3429_v5 = vld [vmem:[%s7095_s1 + $0x18] sm:$0xf0]  ;;  %v5543_v6 = vor.u32 %v4635_v2, %v3499_v0  ;;  %v3553_v0 = vld [vmem:[%s7096_s0 + $0x90] sm:$0xf]  ;;  %v4646_v2 = vld [vmem:[%s7096_s0 + $0x94] sm:$0xf] }
  0x3d   :  { %448 = vmatpush.bf16.msrb.mxu2 %v5200_v26  ;;  %v5407_v26 = vor.u32 %v4640_v18, %v3525_v19  ;;  %v3493_v18 = vld [vmem:[%s7095_s1 + $0x98] sm:$0xf0]  ;;  %v3427_v19 = vld [vmem:[%s7095_s1 + $0x10] sm:$0xf] }
  0x3e   :  { %472 = vmatpush.bf16.msrb.mxu3 %v5212_v31  ;;  %400 = vmatpush.bf16.msrb.mxu0 %v5194_v23  ;;  %v4625_v23 = vld [vmem:[%s7095_s1 + $0x54] sm:$0xf0]  ;;  %v3453_v31 = vld [vmem:[%s7095_s1 + $0x48] sm:$0xf0] }
  0x3f   :  { %424 = vmatpush.bf16.msrb.mxu1 %v5198_v24  ;;  %v3523_v24 = vld [vmem:[%s7095_s1 + $0xd0] sm:$0xf]  ;;  %v5409_v27 = vor.u32 %v4625_v23, %v3459_v22  ;;  %v5442_v42 = vor.u32 %v4622_v30, %v3453_v31  ;;  %v5557_v22 = vor.u32 %v4632_v14, %v3493_v18  ;;  %v4617_v23 = vld [vmem:[%s7095_s1 + $0x14] sm:$0xf0] }
  0x40   :  { %v5421_v32 = vor.u32 %v4641_v28, %v3523_v24  ;;  %v3491_v24 = vld [vmem:[%s7095_s1 + $0x90] sm:$0xf]  ;;  %v4633_v28 = vld [vmem:[%s7095_s1 + $0x94] sm:$0xf0]  ;;  %v5570_v30 = vor.u32 %v4617_v23, %v3427_v19 }
  0x41   :  { %449 = vmatpush.bf16.msrb.mxu2 %v5242_v47  ;;  %v5449_v47 = vor.u32 %v4638_v35, %v3517_v36  ;;  %v5572_v31 = vor.u32 %v4633_v28, %v3491_v24  ;;  %v4614_v35 = vld [vmem:[%s7095_s1 + $0x4] sm:$0xf]  ;;  %v3421_v36 = vld [vmem:[%s7095_s1 + $0x8] sm:$0xf0]  ;;  %v4669_v23 = vld [vmem:[%s7097_s3 + $0x74] sm:$0xf0] }
  0x42   :  { %473 = vmatpush.bf16.msrb.mxu3 %v5251_v51  ;;  %401 = vmatpush.bf16.msrb.mxu0 %v5230_v40  ;;  %v3515_v40 = vld [vmem:[%s7095_s1 + $0xc0] sm:$0xf]  ;;  %v3445_v51 = vld [vmem:[%s7095_s1 + $0x38] sm:$0xf0]  ;;  %v3424_v39 = vor.u32 %v4614_v35, %v3421_v36  ;;  %v4668_v28 = vld [vmem:[%s7097_s3 + $0x74] sm:$0xf] }
  0x43   :  { %425 = vmatpush.bf16.msrb.mxu1 %v5240_v43  ;;  %279 = vmatmul.bf16.gmra.mxu0 %v3224_v62  ;;  %v3365_v43 = vld [vmem:[%s7096_s0 + $0x30] sm:$0xf]  ;;  %v5463_v53 = vor.u32 %v4639_v41, %v3515_v40  ;;  %v5490_v29 = vor.u32 %v4620_v49, %v3445_v51  ;;  %v3485_v40 = vld [vmem:[%s7095_s1 + $0x88] sm:$0xf0]  ;;  %v3419_v41 = vld [vmem:[%s7095_s1] sm:$0xf] }
  0x44   :  { %303 = vmatmul.bf16.gmra.mxu1 %v3228_v4  ;;  %327 = vmatmul.bf16.gmra.mxu2 %v3224_v62  ;;  %v3366_v46 = vor.u32 %v4603_v12, %v3365_v43  ;;  %v4619_v62 = vld [vmem:[%s7095_s1 + $0x24] sm:$0xf0]  ;;  %v3488_v49 = vor.u32 %v4630_v37, %v3485_v40  ;;  %v3483_v51 = vld [vmem:[%s7095_s1 + $0x80] sm:$0xf]  ;;  %v4604_v12 = vld [vmem:[%s7096_s0 + $0x44] sm:$0xf] }
  0x45   :  { %821 = vmatpush.bf16.msra.mxu2 %v5310_v38  ;;  %351 = vmatmul.bf16.gmra.mxu3 %v3228_v4  ;;  %v5532_v1 = vor.u32 %v4619_v62, %v3435_v61  ;;  %v4616_v4 = vld [vmem:[%s7095_s1 + $0x14] sm:$0xf]  ;;  %v4615_v43 = vld [vmem:[%s7095_s1 + $0x4] sm:$0xf0]  ;;  %v3484_v17 = vor.u32 %v4631_v52, %v3483_v51  ;;  %v3378_v25 = vor.u32 %v4604_v12, %v3375_v16  ;;  %v3635_v51 = vld [vmem:[%s7097_s3 + $0x68] sm:$0xf0] }
  0x46   :  { %845 = vmatpush.bf16.msra.mxu3 %v5321_v50  ;;  %773 = vmatpush.bf16.msra.mxu0 %v5338_v58  ;;  %v5545_v13 = vor.u32 %v4616_v4, %v3429_v5  ;;  %v3420_v7 = vor.u32 %v4615_v43, %v3419_v41  ;;  %v3555_v4 = vld [vmem:[%s7096_s0 + $0x98] sm:$0xf0]  ;;  %v4667_v40 = vld [vmem:[%s7097_s3 + $0x64] sm:$0xf0]  ;;  %v4666_v41 = vld [vmem:[%s7097_s3 + $0x64] sm:$0xf] }
  0x47   :  { %797 = vmatpush.bf16.msra.mxu1 %v5351_v63  ;;  %v3558_v18 = vor.u32 %v4646_v2, %v3555_v4  ;;  %v3638_v52 = vor.u32 %v4666_v41, %v3635_v51  ;;  %v4665_v12 = vld [vmem:[%s7097_s3 + $0x54] sm:$0xf0]  ;;  %v4664_v16 = vld [vmem:[%s7097_s3 + $0x54] sm:$0xf]  ;;  %v3595_v41 = vld [vmem:[%s7097_s3 + $0x18] sm:$0xf0] }
  0x49   :  { %822 = vmatpush.bf16.msra.mxu2 %v5370_v9 }
  0x4a   :  { %846 = vmatpush.bf16.msra.mxu3 %v5374_v10  ;;  %774 = vmatpush.bf16.msra.mxu0 %v5376_v11 }
  0x4b   :  { %798 = vmatpush.bf16.msra.mxu1 %v5385_v15 }
  0x4d   :  { %823 = vmatpush.bf16.msra.mxu2 %v5394_v20 }
  0x4e   :  { %847 = vmatpush.bf16.msra.mxu3 %v5407_v26  ;;  %775 = vmatpush.bf16.msra.mxu0 %v5409_v27 }
  0x4f   :  { %799 = vmatpush.bf16.msra.mxu1 %v5421_v32 }
  0x51   :  { %824 = vmatpush.bf16.msra.mxu2 %v5442_v42 }
  0x52   :  { %848 = vmatpush.bf16.msra.mxu3 %v5449_v47  ;;  %776 = vmatpush.bf16.msra.mxu0 %v5451_v48 }
  0x53   :  { %800 = vmatpush.bf16.msra.mxu1 %v5463_v53  ;;  %402 = vmatmul.bf16.vlgmr.msrb.gmra.mxu0 %v3366_v46 }
  0x54   :  { %426 = vmatmul.bf16.vlgmr.msrb.gmra.mxu1 %v3370_v57  ;;  %450 = vmatmul.bf16.vlgmr.msrb.gmra.mxu2 %v3366_v46  ;;  %v3413_v46 = vld [vmem:[%s7096_s0 + $0x88] sm:$0xf0] }
  0x55   :  { %825 = vmatpush.bf16.msra.mxu2 %v5490_v29  ;;  %474 = vmatmul.bf16.vlgmr.msrb.gmra.mxu3 %v3370_v57  ;;  %v3416_v56 = vor.u32 %v4612_v45, %v3413_v46 }
  0x56   :  { %849 = vmatpush.bf16.msra.mxu3 %v5494_v33  ;;  %777 = vmatpush.bf16.msra.mxu0 %v5496_v34 }
  0x57   :  { %801 = vmatpush.bf16.msra.mxu1 %v5505_v54 }
  0x59   :  { %826 = vmatpush.bf16.msra.mxu2 %v5514_v59 }
  0x5a   :  { %850 = vmatpush.bf16.msra.mxu3 %v5518_v60  ;;  %778 = vmatpush.bf16.msra.mxu0 %v5532_v1 }
  0x5b   :  { %802 = vmatpush.bf16.msra.mxu1 %v5543_v6 }
  0x5d   :  { %827 = vmatpush.bf16.msra.mxu2 %v5545_v13 }
  0x5e   :  { %851 = vmatpush.bf16.msra.mxu3 %v5557_v22  ;;  %779 = vmatpush.bf16.msra.mxu0 %v5570_v30 }
  0x5f   :  { %803 = vmatpush.bf16.msra.mxu1 %v5572_v31 }
  0x61   :  { %828 = vmatpush.bf16.msra.mxu2 %v3424_v39 }
  0x62   :  { %852 = vmatpush.bf16.msra.mxu3 %v3488_v49  ;;  %780 = vmatpush.bf16.msra.mxu0 %v3420_v7 }
  0x63   :  { %804 = vmatpush.bf16.msra.mxu1 %v3484_v17  ;;  %407 = vmatmul.bf16.gmra.mxu0 %v3374_v21 }
  0x64   :  { %431 = vmatmul.bf16.gmra.mxu1 %v3378_v25  ;;  %455 = vmatmul.bf16.gmra.mxu2 %v3374_v21  ;;  %v3563_v21 = vld [vmem:[%s7096_s0 + $0xa8] sm:$0xf0] }
  0x65   :  { %954 = vmatpush.bf16.msrb.mxu2 %v5310_v38  ;;  %479 = vmatmul.bf16.gmra.mxu3 %v3378_v25  ;;  %v3381_v38 = vld [vmem:[%s7096_s0 + $0x50] sm:$0xf] }
  0x66   :  { %978 = vmatpush.bf16.msrb.mxu3 %v5321_v50  ;;  %906 = vmatpush.bf16.msrb.mxu0 %v5338_v58  ;;  %v4607_v50 = vld [vmem:[%s7096_s0 + $0x54] sm:$0xf0]  ;;  %v4606_v58 = vld [vmem:[%s7096_s0 + $0x54] sm:$0xf] }
  0x67   :  { %930 = vmatpush.bf16.msrb.mxu1 %v5351_v63  ;;  %v3383_v63 = vld [vmem:[%s7096_s0 + $0x58] sm:$0xf0] }
  0x69   :  { %955 = vmatpush.bf16.msrb.mxu2 %v5370_v9  ;;  %v3382_v9 = vor.u32 %v4607_v50, %v3381_v38  ;;  %v3627_v38 = vld [vmem:[%s7097_s3 + $0x58] sm:$0xf0] }
  0x6a   :  { %979 = vmatpush.bf16.msrb.mxu3 %v5374_v10  ;;  %907 = vmatpush.bf16.msrb.mxu0 %v5376_v11  ;;  %v3386_v10 = vor.u32 %v4606_v58, %v3383_v63  ;;  %v3395_v11 = vld [vmem:[%s7096_s0 + $0x60] sm:$0xf]  ;;  %v3630_v50 = vor.u32 %v4664_v16, %v3627_v38  ;;  %v3562_v63 = vor.u32 %v4649_v3, %v3561_v8  ;;  %v4655_v16 = vld [vmem:[%s7097_s3 + $0x4] sm:$0xf0]  ;;  %v3587_v38 = vld [vmem:[%s7097_s3 + $0x8] sm:$0xf0] }
  0x6b   :  { %931 = vmatpush.bf16.msrb.mxu1 %v5385_v15  ;;  %v4609_v15 = vld [vmem:[%s7096_s0 + $0x64] sm:$0xf0] }
  0x6d   :  { %956 = vmatpush.bf16.msrb.mxu2 %v5394_v20  ;;  %v4608_v20 = vld [vmem:[%s7096_s0 + $0x64] sm:$0xf] }
  0x6e   :  { %980 = vmatpush.bf16.msrb.mxu3 %v5407_v26  ;;  %908 = vmatpush.bf16.msrb.mxu0 %v5409_v27  ;;  %v3397_v26 = vld [vmem:[%s7096_s0 + $0x68] sm:$0xf0]  ;;  %v3396_v27 = vor.u32 %v4609_v15, %v3395_v11  ;;  %v3617_v15 = vld [vmem:[%s7097_s3 + $0x40] sm:$0xf] }
  0x6f   :  { %932 = vmatpush.bf16.msrb.mxu1 %v5421_v32  ;;  %v3400_v32 = vor.u32 %v4608_v20, %v3397_v26  ;;  %v4663_v20 = vld [vmem:[%s7097_s3 + $0x44] sm:$0xf0]  ;;  %v4662_v26 = vld [vmem:[%s7097_s3 + $0x44] sm:$0xf] }
  0x71   :  { %957 = vmatpush.bf16.msrb.mxu2 %v5442_v42  ;;  %v3403_v42 = vld [vmem:[%s7096_s0 + $0x70] sm:$0xf] }
  0x72   :  { %981 = vmatpush.bf16.msrb.mxu3 %v5449_v47  ;;  %909 = vmatpush.bf16.msrb.mxu0 %v5451_v48  ;;  %v4611_v47 = vld [vmem:[%s7096_s0 + $0x74] sm:$0xf0]  ;;  %v4610_v48 = vld [vmem:[%s7096_s0 + $0x74] sm:$0xf] }
  0x73   :  { %933 = vmatpush.bf16.msrb.mxu1 %v5463_v53  ;;  %412 = vmatmul.bf16.gmra.mxu0 %v3382_v9  ;;  %v3405_v53 = vld [vmem:[%s7096_s0 + $0x78] sm:$0xf0] }
  0x74   :  { %436 = vmatmul.bf16.gmra.mxu1 %v3386_v10  ;;  %460 = vmatmul.bf16.gmra.mxu2 %v3382_v9 }
  0x75   :  { %958 = vmatpush.bf16.msrb.mxu2 %v5490_v29  ;;  %484 = vmatmul.bf16.gmra.mxu3 %v3386_v10  ;;  %v3404_v29 = vor.u32 %v4611_v47, %v3403_v42  ;;  %v3619_v42 = vld [vmem:[%s7097_s3 + $0x48] sm:$0xf0] }
  0x76   :  { %982 = vmatpush.bf16.msrb.mxu3 %v5494_v33  ;;  %910 = vmatpush.bf16.msrb.mxu0 %v5496_v34  ;;  %v3408_v33 = vor.u32 %v4610_v48, %v3405_v53  ;;  %v3411_v34 = vld [vmem:[%s7096_s0 + $0x80] sm:$0xf]  ;;  %v3622_v47 = vor.u32 %v4662_v26, %v3619_v42  ;;  %v3609_v48 = vld [vmem:[%s7097_s3 + $0x30] sm:$0xf]  ;;  %v4661_v53 = vld [vmem:[%s7097_s3 + $0x34] sm:$0xf0] }
  0x77   :  { %934 = vmatpush.bf16.msrb.mxu1 %v5505_v54  ;;  %v3412_v54 = vor.u32 %v4613_v44, %v3411_v34  ;;  %v3611_v34 = vld [vmem:[%s7097_s3 + $0x38] sm:$0xf0] }
  0x78   :  { %v3819_v26 = vld [vmem:[%s7097_s3 + $0x178] sm:$0xf0] }
  0x79   :  { %959 = vmatpush.bf16.msrb.mxu2 %v5514_v59 }
  0x7a   :  { %983 = vmatpush.bf16.msrb.mxu3 %v5518_v60  ;;  %911 = vmatpush.bf16.msrb.mxu0 %v5532_v1  ;;  %v4647_v1 = vld [vmem:[%s7096_s0 + $0x94] sm:$0xf0] }
  0x7b   :  { %935 = vmatpush.bf16.msrb.mxu1 %v5543_v6  ;;  %v3554_v6 = vor.u32 %v4647_v1, %v3553_v0  ;;  %v4659_v0 = vld [vmem:[%s7097_s3 + $0x24] sm:$0xf0]  ;;  %v4658_v1 = vld [vmem:[%s7097_s3 + $0x24] sm:$0xf] }
  0x7d   :  { %960 = vmatpush.bf16.msrb.mxu2 %v5545_v13 }
  0x7e   :  { %984 = vmatpush.bf16.msrb.mxu3 %v5557_v22  ;;  %912 = vmatpush.bf16.msrb.mxu0 %v5570_v30  ;;  %v3641_v22 = vld [vmem:[%s7097_s3 + $0x70] sm:$0xf]  ;;  %v3643_v30 = vld [vmem:[%s7097_s3 + $0x78] sm:$0xf0] }
  0x7f   :  { %936 = vmatpush.bf16.msrb.mxu1 %v5572_v31  ;;  %v3642_v24 = vor.u32 %v4669_v23, %v3641_v22  ;;  %v3646_v31 = vor.u32 %v4668_v28, %v3643_v30  ;;  %v3569_v22 = vld [vmem:[%s7096_s0 + $0xb0] sm:$0xf]  ;;  %v4651_v23 = vld [vmem:[%s7096_s0 + $0xb4] sm:$0xf0]  ;;  %v4656_v30 = vld [vmem:[%s7097_s3 + $0x14] sm:$0xf] }
  0x80   :  { %v4657_v28 = vld [vmem:[%s7097_s3 + $0x14] sm:$0xf0] }
  0x81   :  { %961 = vmatpush.bf16.msrb.mxu2 %v3424_v39  ;;  %v3633_v39 = vld [vmem:[%s7097_s3 + $0x60] sm:$0xf] }
  0x82   :  { %985 = vmatpush.bf16.msrb.mxu3 %v3488_v49  ;;  %913 = vmatpush.bf16.msrb.mxu0 %v3420_v7  ;;  %v3634_v49 = vor.u32 %v4667_v40, %v3633_v39  ;;  %v3625_v7 = vld [vmem:[%s7097_s3 + $0x50] sm:$0xf]  ;;  %v3571_v39 = vld [vmem:[%s7096_s0 + $0xb8] sm:$0xf0] }
  0x83   :  { %937 = vmatpush.bf16.msrb.mxu1 %v3484_v17  ;;  %781 = vmatmul.bf16.vlgmr.msra.gmra.mxu0 %v3396_v27  ;;  %v4648_v17 = vld [vmem:[%s7096_s0 + $0xa4] sm:$0xf]  ;;  %v3626_v25 = vor.u32 %v4665_v12, %v3625_v7  ;;  %v3585_v12 = vld [vmem:[%s7097_s3] sm:$0xf] }
  0x84   :  { %805 = vmatmul.bf16.vlgmr.msra.gmra.mxu1 %v3400_v32  ;;  %829 = vmatmul.bf16.vlgmr.msra.gmra.mxu2 %v3396_v27  ;;  %v3566_v11 = vor.u32 %v4648_v17, %v3563_v21  ;;  %v4654_v17 = vld [vmem:[%s7097_s3 + $0x4] sm:$0xf] }
  0x85   :  { %853 = vmatmul.bf16.vlgmr.msra.gmra.mxu3 %v3400_v32  ;;  %v3618_v32 = vor.u32 %v4663_v20, %v3617_v15  ;;  %v4704_v15 = vld [vmem:[%s7097_s3 + $0x174] sm:$0xf] }
  0x86   :  { %1169 = vmatpush.bf16.msra.mxu0 %v3642_v24  ;;  %v3593_v24 = vld [vmem:[%s7097_s3 + $0x10] sm:$0xf] }
  0x87   :  { %1188 = vmatpush.bf16.msra.mxu1 %v3646_v31  ;;  %v4650_v31 = vld [vmem:[%s7096_s0 + $0xb4] sm:$0xf]  ;;  %v3594_v40 = vor.u32 %v4657_v28, %v3593_v24  ;;  %v4701_v24 = vld [vmem:[%s7097_s3 + $0x154] sm:$0xf0] }
  0x88   :  { %v3574_v7 = vor.u32 %v4650_v31, %v3571_v39 }
  0x8a   :  { %1170 = vmatpush.bf16.msra.mxu0 %v3634_v49  ;;  %v3598_v49 = vor.u32 %v4656_v30, %v3595_v41 }
  0x8b   :  { %1189 = vmatpush.bf16.msra.mxu1 %v3638_v52  ;;  %v3570_v52 = vor.u32 %v4651_v23, %v3569_v22  ;;  %v3801_v23 = vld [vmem:[%s7097_s3 + $0x150] sm:$0xf] }
  0x8c   :  { %v3802_v31 = vor.u32 %v4701_v24, %v3801_v23  ;;  %v3779_v24 = vld [vmem:[%s7097_s3 + $0x128] sm:$0xf0] }
  0x8e   :  { %1171 = vmatpush.bf16.msra.mxu0 %v3626_v25  ;;  %v3586_v25 = vor.u32 %v4655_v16, %v3585_v12  ;;  %v3793_v12 = vld [vmem:[%s7097_s3 + $0x140] sm:$0xf]  ;;  %v4699_v16 = vld [vmem:[%s7097_s3 + $0x144] sm:$0xf0] }
  0x8f   :  { %1190 = vmatpush.bf16.msra.mxu1 %v3630_v50  ;;  %v3590_v50 = vor.u32 %v4654_v17, %v3587_v38 }
  0x92   :  { %1172 = vmatpush.bf16.msra.mxu0 %v3618_v32  ;;  %v3822_v32 = vor.u32 %v4704_v15, %v3819_v26  ;;  %v4697_v15 = vld [vmem:[%s7097_s3 + $0x134] sm:$0xf0] }
  0x93   :  { %786 = vmatmul.bf16.gmra.mxu0 %v3404_v29  ;;  %1191 = vmatpush.bf16.msra.mxu1 %v3622_v47 }
  0x94   :  { %810 = vmatmul.bf16.gmra.mxu1 %v3408_v33  ;;  %834 = vmatmul.bf16.gmra.mxu2 %v3404_v29  ;;  %v4660_v29 = vld [vmem:[%s7097_s3 + $0x34] sm:$0xf] }
  0x95   :  { %858 = vmatmul.bf16.gmra.mxu3 %v3408_v33  ;;  %v3610_v33 = vor.u32 %v4661_v53, %v3609_v48  ;;  %v3614_v44 = vor.u32 %v4660_v29, %v3611_v34  ;;  %v3809_v53 = vld [vmem:[%s7097_s3 + $0x160] sm:$0xf]  ;;  %v4703_v29 = vld [vmem:[%s7097_s3 + $0x164] sm:$0xf0] }
  0x97   :  { %1173 = vmatpush.bf16.msra.mxu0 %v3610_v33  ;;  %1192 = vmatpush.bf16.msra.mxu1 %v3614_v44  ;;  %v4702_v33 = vld [vmem:[%s7097_s3 + $0x164] sm:$0xf] }
  0xa0   :  { %v5689_v55 = vpop.f32.mrf.mxu0 }
  0xa1   :  { %v5691_v57 = vpop.f32.mrf.mxu1 }
  0xa2   :  { %v295_v22 = vadd.f32 %v5691_v57, %v5689_v55  ;;  %v3803_v55 = vld [vmem:[%s7097_s3 + $0x158] sm:$0xf0] }
  0xa3   :  { %791 = vmatmul.bf16.gmra.mxu0 %v3412_v54 }
  0xa4   :  { %815 = vmatmul.bf16.gmra.mxu1 %v3416_v56  ;;  %839 = vmatmul.bf16.gmra.mxu2 %v3412_v54 }
  0xa5   :  { %863 = vmatmul.bf16.gmra.mxu3 %v3416_v56  ;;  %v3601_v56 = vld [vmem:[%s7097_s3 + $0x20] sm:$0xf] }
  0xa6   :  { %v3602_v4 = vor.u32 %v4659_v0, %v3601_v56  ;;  %v3810_v56 = vor.u32 %v4703_v29, %v3809_v53  ;;  %v3811_v0 = vld [vmem:[%s7097_s3 + $0x168] sm:$0xf0] }
  0xa7   :  { %v5693_v59 = vpop.f32.mrf.mxu2 }
  0xa8   :  { %v5695_v60 = vpop.f32.mrf.mxu3  ;;  %v5697_v61 = vpop.f32.mrf.mxu0  ;;  %1174 = vmatpush.bf16.msra.mxu0 %v3602_v4 }
  0xa9   :  { %v5699_v62 = vpop.f32.mrf.mxu1  ;;  %v343_v4 = vadd.f32 %v5695_v60, %v5693_v59  ;;  %v4700_v59 = vld [vmem:[%s7097_s3 + $0x154] sm:$0xf] }
  0xaa   :  { %v3806_v57 = vor.u32 %v4700_v59, %v3803_v55  ;;  %v297_v39 = vadd.f32 %v5699_v62, %v5697_v61  ;;  %v4698_v61 = vld [vmem:[%s7097_s3 + $0x144] sm:$0xf]  ;;  %v3769_v55 = vld [vmem:[%s7097_s3 + $0x110] sm:$0xf] }
  0xac   :  { %1175 = vmatpush.bf16.msra.mxu0 %v3594_v40 }
  0xaf   :  { %v5713_v5 = vpop.f32.mrf.mxu2 }
  0xb0   :  { %v5715_v13 = vpop.f32.mrf.mxu3  ;;  %v5717_v14 = vpop.f32.mrf.mxu0  ;;  %1176 = vmatpush.bf16.msra.mxu0 %v3586_v25  ;;  %v3795_v25 = vld [vmem:[%s7097_s3 + $0x148] sm:$0xf0] }
  0xb1   :  { %v5719_v19 = vpop.f32.mrf.mxu1  ;;  %v3798_v38 = vor.u32 %v4698_v61, %v3795_v25 }
  0xb3   :  { %914 = vmatmul.bf16.vlgmr.msrb.gmra.mxu0 %v3554_v6 }
  0xb4   :  { %938 = vmatmul.bf16.vlgmr.msrb.gmra.mxu1 %v3558_v18  ;;  %962 = vmatmul.bf16.vlgmr.msrb.gmra.mxu2 %v3554_v6  ;;  %v3603_v6 = vld [vmem:[%s7097_s3 + $0x28] sm:$0xf0] }
  0xb5   :  { %986 = vmatmul.bf16.vlgmr.msrb.gmra.mxu3 %v3558_v18  ;;  %v3606_v18 = vor.u32 %v4658_v1, %v3603_v6  ;;  %v3814_v1 = vor.u32 %v4702_v33, %v3811_v0  ;;  %v4695_v0 = vld [vmem:[%s7097_s3 + $0x124] sm:$0xf0] }
  0xb7   :  { %v5733_v35 = vpop.f32.mrf.mxu2  ;;  %1193 = vmatpush.bf16.msra.mxu1 %v3606_v18  ;;  %v502_v18 = vld [vmem:[%s7098_s2] sm:$0x3] }
  0xb8   :  { %v5735_v36 = vpop.f32.mrf.mxu3  ;;  %v5737_v37 = vpop.f32.mrf.mxu0  ;;  %v5909_v28 = vperm.slane %v502_v18, 1  ;;  %v5916_v41 = vperm.slane %v502_v18, 0 }
  0xb9   :  { %v5748_v43 = vpop.f32.mrf.mxu1 }
  0xbb   :  { %1194 = vmatpush.bf16.msra.mxu1 %v3598_v49 }
  0xbf   :  { %v5777_v58 = vpop.f32.mrf.mxu2  ;;  %1195 = vmatpush.bf16.msra.mxu1 %v3590_v50 }
  0xc0   :  { %v5779_v9 = vpop.f32.mrf.mxu3  ;;  %v5781_v10 = vpop.f32.mrf.mxu0 }
  0xc1   :  { %v5792_v27 = vpop.f32.mrf.mxu1  ;;  %v350_v61 = vadd.f32 %v5779_v9, %v5777_v58 }
  0xc3   :  { %919 = vmatmul.bf16.gmra.mxu0 %v3562_v63  ;;  %1522 = vmatpush.bf16.msrb.mxu1 %v3822_v32 }
  0xc4   :  { %943 = vmatmul.bf16.gmra.mxu1 %v3566_v11  ;;  %967 = vmatmul.bf16.gmra.mxu2 %v3562_v63  ;;  %v3817_v63 = vld [vmem:[%s7097_s3 + $0x170] sm:$0xf] }
  0xc5   :  { %991 = vmatmul.bf16.gmra.mxu3 %v3566_v11  ;;  %v4705_v11 = vld [vmem:[%s7097_s3 + $0x174] sm:$0xf0] }
  0xc6   :  { %v3818_v20 = vor.u32 %v4705_v11, %v3817_v63  ;;  %v3785_v11 = vld [vmem:[%s7097_s3 + $0x130] sm:$0xf] }
  0xc7   :  { %v5809_v45 = vpop.f32.mrf.mxu2  ;;  %1523 = vmatpush.bf16.msrb.mxu1 %v3814_v1  ;;  %v4694_v1 = vld [vmem:[%s7097_s3 + $0x124] sm:$0xf] }
  0xc8   :  { %v5811_v46 = vpop.f32.mrf.mxu3  ;;  %v5813_v54 = vpop.f32.mrf.mxu0  ;;  %1503 = vmatpush.bf16.msrb.mxu0 %v3818_v20  ;;  %v4696_v20 = vld [vmem:[%s7097_s3 + $0x134] sm:$0xf]  ;;  %v3782_v59 = vor.u32 %v4694_v1, %v3779_v24  ;;  %v4738_v1 = vld [vmem:[%s7097_s3 + $0x264] sm:$0xf]  ;;  %v3987_v24 = vld [vmem:[%s7097_s3 + $0x268] sm:$0xf0] }
  0xc9   :  { %v5824_v2 = vpop.f32.mrf.mxu1 }
  0xcb   :  { %1524 = vmatpush.bf16.msrb.mxu1 %v3806_v57  ;;  %v4693_v57 = vld [vmem:[%s7097_s3 + $0x114] sm:$0xf0] }
  0xcc   :  { %1504 = vmatpush.bf16.msrb.mxu0 %v3810_v56  ;;  %v3777_v56 = vld [vmem:[%s7097_s3 + $0x120] sm:$0xf] }
  0xcd   :  { %v3778_v23 = vor.u32 %v4695_v0, %v3777_v56  ;;  %v3985_v56 = vld [vmem:[%s7097_s3 + $0x260] sm:$0xf]  ;;  %v4739_v0 = vld [vmem:[%s7097_s3 + $0x264] sm:$0xf0] }
  0xcf   :  { %v5853_v51 = vpop.f32.mrf.mxu2  ;;  %1525 = vmatpush.bf16.msrb.mxu1 %v3798_v38 }
  0xd0   :  { %v5855_v8 = vpop.f32.mrf.mxu3  ;;  %v403_v3 = vpop.f32.mrf.mxu0  ;;  %1505 = vmatpush.bf16.msrb.mxu0 %v3802_v31 }
  0xd1   :  { %v427_v21 = vpop.f32.mrf.mxu1 }
  0xd2   :  { %v428_v6 = vadd.f32 %v427_v21, %v403_v3 }
  0xd3   :  { %924 = vmatmul.bf16.gmra.mxu0 %v3570_v52 }
  0xd4   :  { %948 = vmatmul.bf16.gmra.mxu1 %v3574_v7  ;;  %972 = vmatmul.bf16.gmra.mxu2 %v3570_v52  ;;  %v490_v40 = vmax.f32 %v295_v22, %v428_v6  ;;  %v345_v52 = vadd.f32 %v5715_v13, %v5713_v5  ;;  %v3794_v13 = vor.u32 %v4699_v16, %v3793_v12 }
  0xd5   :  { %996 = vmatmul.bf16.gmra.mxu3 %v3574_v7 }
  0xd6   :  { %v508_v50 = vadd.f32 %v5916_v41, %v490_v40  ;;  %1506 = vmatpush.bf16.msrb.mxu0 %v3794_v13  ;;  %v300_v40 = vadd.f32 %v5719_v19, %v5717_v14  ;;  %v3761_v19 = vld [vmem:[%s7097_s3 + $0x100] sm:$0xf]  ;;  %v3763_v13 = vld [vmem:[%s7097_s3 + $0x108] sm:$0xf0] }
  0xd7   :  { %v451_v42 = vpop.f32.mrf.mxu2 }
  0xd8   :  { %v475_v47 = vpop.f32.mrf.mxu3  ;;  %v405_v48 = vpop.f32.mrf.mxu0 }
  0xd9   :  { %v476_v34 = vadd.f32 %v475_v47, %v451_v42  ;;  %v429_v44 = vpop.f32.mrf.mxu1  ;;  %v3786_v47 = vor.u32 %v4697_v15, %v3785_v11  ;;  %v3993_v11 = vld [vmem:[%s7097_s3 + $0x270] sm:$0xf]  ;;  %v4741_v15 = vld [vmem:[%s7097_s3 + $0x274] sm:$0xf0] }
  0xda   :  { %v430_v30 = vadd.f32 %v429_v44, %v405_v48  ;;  %v3787_v48 = vld [vmem:[%s7097_s3 + $0x138] sm:$0xf0] }
  0xdb   :  { %v491_v60 = vmax.f32 %v343_v4, %v476_v34  ;;  %v3790_v53 = vor.u32 %v4696_v20, %v3787_v48  ;;  %1507 = vmatpush.bf16.msrb.mxu0 %v3786_v47  ;;  %v4740_v47 = vld [vmem:[%s7097_s3 + $0x274] sm:$0xf]  ;;  %v3995_v48 = vld [vmem:[%s7097_s3 + $0x278] sm:$0xf0] }
  0xdc   :  { %v492_v17 = vmax.f32 %v297_v39, %v430_v30  ;;  %v4692_v39 = vld [vmem:[%s7097_s3 + $0x114] sm:$0xf] }
  0xdd   :  { %v509_v62 = vadd.f32 %v5909_v28, %v491_v60  ;;  %1526 = vmatpush.bf16.msrb.mxu1 %v3790_v53  ;;  %v348_v60 = vadd.f32 %v5735_v36, %v5733_v35  ;;  %v3998_v53 = vor.u32 %v4740_v47, %v3995_v48 }
  0xde   :  { %v510_v32 = vadd.f32 %v5916_v41, %v492_v17  ;;  %v4691_v17 = vld [vmem:[%s7097_s3 + $0x104] sm:$0xf0] }
  0xdf   :  { %v453_v49 = vpop.f32.mrf.mxu2  ;;  %v520_v26 = vmax.f32 %v508_v50, %v509_v62  ;;  %1508 = vmatpush.bf16.msrb.mxu0 %v3778_v23  ;;  %v3762_v9 = vor.u32 %v4691_v17, %v3761_v19  ;;  %v3986_v23 = vor.u32 %v4739_v0, %v3985_v56  ;;  %v3971_v19 = vld [vmem:[%s7097_s3 + $0x248] sm:$0xf0] }
  0xe0   :  { %v477_v3 = vpop.f32.mrf.mxu3  ;;  %v408_v7 = vpop.f32.mrf.mxu0 }
  0xe1   :  { %v478_v21 = vadd.f32 %v477_v3, %v453_v49  ;;  %v432_v5 = vpop.f32.mrf.mxu1  ;;  %v526_v4 = vmax.f32 %v520_v26, 0.0  ;;  %1527 = vmatpush.bf16.msrb.mxu1 %v3782_v59  ;;  %v3770_v49 = vor.u32 %v4693_v57, %v3769_v55  ;;  %v3990_v59 = vor.u32 %v4738_v1, %v3987_v24  ;;  %v3977_v55 = vld [vmem:[%s7097_s3 + $0x250] sm:$0xf]  ;;  %v4737_v57 = vld [vmem:[%s7097_s3 + $0x254] sm:$0xf0] }
  0xe2   :  { %v433_v31 = vadd.f32 %v432_v5, %v408_v7  ;;  %v302_v7 = vadd.f32 %v5748_v43, %v5737_v37  ;;  %v4690_v37 = vld [vmem:[%s7097_s3 + $0x104] sm:$0xf] }
  0xe3   :  { %v493_v63 = vmax.f32 %v345_v52, %v478_v21  ;;  %v3771_v52 = vld [vmem:[%s7097_s3 + $0x118] sm:$0xf0]  ;;  %1509 = vmatpush.bf16.msrb.mxu0 %v3770_v49  ;;  %v3766_v25 = vor.u32 %v4690_v37, %v3763_v13  ;;  %v3729_v37 = vld [vmem:[%s7097_s3 + $0xf0] sm:$0xf] }
  0xe4   :  { %v3774_v3 = vor.u32 %v4692_v39, %v3771_v52  ;;  %v494_v12 = vmax.f32 %v300_v40, %v433_v31  ;;  %v4736_v39 = vld [vmem:[%s7097_s3 + $0x254] sm:$0xf]  ;;  %v305_v40 = vadd.f32 %v5792_v27, %v5781_v10  ;;  %v307_v52 = vadd.f32 %v5824_v2, %v5813_v54  ;;  %v3969_v27 = vld [vmem:[%s7097_s3 + $0x240] sm:$0xf]  ;;  %v4734_v54 = vld [vmem:[%s7097_s3 + $0x244] sm:$0xf] }
  0xe5   :  { %v511_v42 = vadd.f32 %v5909_v28, %v493_v63  ;;  %v3974_v17 = vor.u32 %v4734_v54, %v3971_v19  ;;  %v3731_v13 = vld [vmem:[%s7097_s3 + $0xf8] sm:$0xf0]  ;;  %v3713_v54 = vld [vmem:[%s7097_s3 + $0xd0] sm:$0xf] }
  0xe6   :  { %1528 = vmatpush.bf16.msrb.mxu1 %v3774_v3  ;;  %v512_v38 = vadd.f32 %v5916_v41, %v494_v12  ;;  %v355_v12 = vadd.f32 %v5855_v8, %v5853_v51  ;;  %v3715_v19 = vld [vmem:[%s7097_s3 + $0xd8] sm:$0xf0] }
  0xe7   :  { %v521_v29 = vmax.f32 %v510_v32, %v511_v42  ;;  %v456_v33 = vpop.f32.mrf.mxu2  ;;  %1510 = vmatpush.bf16.msrb.mxu0 %v3762_v9  ;;  %v3994_v42 = vor.u32 %v4741_v15, %v3993_v11 }
  0xe8   :  { %v480_v34 = vpop.f32.mrf.mxu3  ;;  %v410_v44 = vpop.f32.mrf.mxu0 }
  0xe9   :  { %v527_v6 = vmax.f32 %v521_v29, 0.0  ;;  %v481_v18 = vadd.f32 %v480_v34, %v456_v33  ;;  %v434_v22 = vpop.f32.mrf.mxu1 }
  0xea   :  { %v435_v36 = vadd.f32 %v434_v22, %v410_v44  ;;  %1529 = vmatpush.bf16.msrb.mxu1 %v3766_v25 }
  0xeb   :  { %v4870_v30 = vpack.c.bf16 %v527_v6, %v526_v4  ;;  %v495_v35 = vmax.f32 %v348_v60, %v481_v18  ;;  %v353_v60 = vadd.f32 %v5811_v46, %v5809_v45 }
  0xec   :  { %v496_v21 = vmax.f32 %v302_v7, %v435_v36  ;;  %v3979_v36 = vld [vmem:[%s7097_s3 + $0x258] sm:$0xf0] }
  0xed   :  { %4871 = vst [vmem:[#allocation2] sm:$0xff] %v4870_v30   ;;  %v513_v43 = vadd.f32 %v5909_v28, %v495_v35  ;;  %v3978_v35 = vor.u32 %v4737_v57, %v3977_v55  ;;  %v3982_v49 = vor.u32 %v4736_v39, %v3979_v36  ;;  %v4729_v55 = vld [vmem:[%s7097_s3 + $0x214] sm:$0xf0]  ;;  %v4728_v57 = vld [vmem:[%s7097_s3 + $0x214] sm:$0xf] }
  0xee   :  { %v514_v26 = vadd.f32 %v5916_v41, %v496_v21  ;;  %v4686_v21 = vld [vmem:[%s7097_s3 + $0xf4] sm:$0xf] }
  0xef   :  { %v458_v16 = vpop.f32.mrf.mxu2  ;;  %v522_v20 = vmax.f32 %v512_v38, %v513_v43  ;;  %v4687_v43 = vld [vmem:[%s7097_s3 + $0xf4] sm:$0xf0]  ;;  %v3734_v38 = vor.u32 %v4686_v21, %v3731_v13  ;;  %v4155_v13 = vld [vmem:[%s7097_s3 + $0xf8] sm:$0xf0] }
  0xf0   :  { %v482_v62 = vpop.f32.mrf.mxu3  ;;  %v413_v14 = vpop.f32.mrf.mxu0  ;;  %v3730_v9 = vor.u32 %v4687_v43, %v3729_v37  ;;  %v4777_v37 = vld [vmem:[%s7097_s3 + $0xf4] sm:$0xf0] }
  0xf1   :  { %v483_v5 = vadd.f32 %v482_v62, %v458_v16  ;;  %v437_v58 = vpop.f32.mrf.mxu1  ;;  %v528_v4 = vmax.f32 %v522_v20, 0.0  ;;  %v4733_v20 = vld [vmem:[%s7097_s3 + $0x234] sm:$0xf0]  ;;  %1347 = vmatpush.bf16.msra.mxu3 %v3734_v38 }
  0xf2   :  { %v438_v31 = vadd.f32 %v437_v58, %v413_v14  ;;  %1328 = vmatpush.bf16.msra.mxu2 %v3730_v9  ;;  %v4776_v9 = vld [vmem:[%s7097_s3 + $0xf4] sm:$0xf] }
  0xf3   :  { %v497_v50 = vmax.f32 %v350_v61, %v483_v5  ;;  %v4735_v61 = vld [vmem:[%s7097_s3 + $0x244] sm:$0xf0]  ;;  %v4158_v38 = vor.u32 %v4776_v9, %v4155_v13  ;;  %v4676_v9 = vld [vmem:[%s7097_s3 + $0xa4] sm:$0xf] }
  0xf4   :  { %v4652_v63 = vld [vmem:[#allocation2] sm:$0xff]  ;;  %v498_v3 = vmax.f32 %v305_v40, %v438_v31  ;;  %v3970_v14 = vor.u32 %v4735_v61, %v3969_v27  ;;  %v3945_v31 = vld [vmem:[%s7097_s3 + $0x210] sm:$0xf]  ;;  %v3947_v40 = vld [vmem:[%s7097_s3 + $0x218] sm:$0xf0] }
  0xf5   :  { %v515_v32 = vadd.f32 %v5909_v28, %v497_v50  ;;  %1177 = vmatmul.bf16.vlgmr.msra.gmra.mxu0 %v4652_v63  ;;  %1196 = vmatmul.bf16.vlgmr.msra.gmra.mxu1 %v4652_v63  ;;  %v3961_v50 = vld [vmem:[%s7097_s3 + $0x230] sm:$0xf]  ;;  %v3946_v39 = vor.u32 %v4729_v55, %v3945_v31  ;;  %v4678_v31 = vld [vmem:[%s7097_s3 + $0xb4] sm:$0xf]  ;;  %v3699_v55 = vld [vmem:[%s7097_s3 + $0xb8] sm:$0xf0] }
  0xf6   :  { %1853 = vmatpush.bf16.msra.mxu0 %v3994_v42  ;;  %1872 = vmatpush.bf16.msra.mxu1 %v3998_v53  ;;  %v516_v5 = vadd.f32 %v5916_v41, %v498_v3  ;;  %v3962_v42 = vor.u32 %v4733_v20, %v3961_v50  ;;  %v4726_v3 = vld [vmem:[%s7097_s3 + $0x204] sm:$0xf]  ;;  %v4145_v50 = vld [vmem:[%s7097_s3 + $0xe0] sm:$0xf]  ;;  %v4147_v20 = vld [vmem:[%s7097_s3 + $0xe8] sm:$0xf0] }
  0xf7   :  { %v523_v29 = vmax.f32 %v514_v26, %v515_v32  ;;  %v461_v33 = vpop.f32.mrf.mxu2  ;;  %v4732_v26 = vld [vmem:[%s7097_s3 + $0x234] sm:$0xf]  ;;  %v3963_v32 = vld [vmem:[%s7097_s3 + $0x238] sm:$0xf0] }
  0xf8   :  { %v485_v34 = vpop.f32.mrf.mxu3  ;;  %v415_v44 = vpop.f32.mrf.mxu0  ;;  %v3966_v47 = vor.u32 %v4732_v26, %v3963_v32  ;;  %v4137_v32 = vld [vmem:[%s7097_s3 + $0xd0] sm:$0xf] }
  0xf9   :  { %v529_v6 = vmax.f32 %v523_v29, 0.0  ;;  %v486_v18 = vadd.f32 %v485_v34, %v461_v33  ;;  %v439_v22 = vpop.f32.mrf.mxu1  ;;  %v3953_v29 = vld [vmem:[%s7097_s3 + $0x220] sm:$0xf]  ;;  %v4731_v33 = vld [vmem:[%s7097_s3 + $0x224] sm:$0xf0] }
  0xfa   :  { %1854 = vmatpush.bf16.msra.mxu0 %v3986_v23  ;;  %1873 = vmatpush.bf16.msra.mxu1 %v3990_v59  ;;  %v440_v46 = vadd.f32 %v439_v22, %v415_v44  ;;  %v4730_v34 = vld [vmem:[%s7097_s3 + $0x224] sm:$0xf]  ;;  %v3954_v1 = vor.u32 %v4731_v33, %v3953_v29  ;;  %v4685_v22 = vld [vmem:[%s7097_s3 + $0xe4] sm:$0xf0]  ;;  %v4139_v33 = vld [vmem:[%s7097_s3 + $0xd8] sm:$0xf0] }
  0xfb   :  { %v4875_v30 = vpack.c.bf16 %v529_v6, %v528_v4  ;;  %v499_v45 = vmax.f32 %v353_v60, %v486_v18  ;;  %v3955_v4 = vld [vmem:[%s7097_s3 + $0x228] sm:$0xf0]  ;;  %v3721_v18 = vld [vmem:[%s7097_s3 + $0xe0] sm:$0xf]  ;;  %v4684_v23 = vld [vmem:[%s7097_s3 + $0xe4] sm:$0xf] }
  0xfc   :  { %v500_v62 = vmax.f32 %v307_v52, %v440_v46  ;;  %v3958_v6 = vor.u32 %v4730_v34, %v3955_v4  ;;  %v3722_v59 = vor.u32 %v4685_v22, %v3721_v18  ;;  %v3723_v60 = vld [vmem:[%s7097_s3 + $0xe8] sm:$0xf0]  ;;  %v4727_v52 = vld [vmem:[%s7097_s3 + $0x204] sm:$0xf0]  ;;  %v3705_v4 = vld [vmem:[%s7097_s3 + $0xc0] sm:$0xf] }
  0xfd   :  { %4897 = vst [vmem:[#allocation2 + $0x8] sm:$0xff] %v4875_v30   ;;  %v517_v2 = vadd.f32 %v5909_v28, %v499_v45  ;;  %v3726_v30 = vor.u32 %v4684_v23, %v3723_v60  ;;  %v3950_v45 = vor.u32 %v4728_v57, %v3947_v40  ;;  %v4680_v18 = vld [vmem:[%s7097_s3 + $0xc4] sm:$0xf]  ;;  %v4679_v60 = vld [vmem:[%s7097_s3 + $0xb4] sm:$0xf0] }
  0xfe   :  { %1855 = vmatpush.bf16.msra.mxu0 %v3978_v35  ;;  %1874 = vmatpush.bf16.msra.mxu1 %v3982_v49  ;;  %v518_v11 = vadd.f32 %v5916_v41, %v500_v62  ;;  %v3937_v49 = vld [vmem:[%s7097_s3 + $0x200] sm:$0xf]  ;;  %v4682_v62 = vld [vmem:[%s7097_s3 + $0xd4] sm:$0xf]  ;;  %v4771_v40 = vld [vmem:[%s7097_s3 + $0xc4] sm:$0xf0] }
  0xff   :  { %v463_v7 = vpop.f32.mrf.mxu2  ;;  %v524_v63 = vmax.f32 %v516_v5, %v517_v2  ;;  %1329 = vmatpush.bf16.msra.mxu2 %v3722_v59  ;;  %1348 = vmatpush.bf16.msra.mxu3 %v3726_v30  ;;  %v4683_v2 = vld [vmem:[%s7097_s3 + $0xd4] sm:$0xf0]  ;;  %v3718_v5 = vor.u32 %v4682_v62, %v3715_v19  ;;  %v3697_v59 = vld [vmem:[%s7097_s3 + $0xb0] sm:$0xf]  ;;  %v4129_v57 = vld [vmem:[%s7097_s3 + $0xc0] sm:$0xf] }
 0x100   :  { %v487_v16 = vpop.f32.mrf.mxu3  ;;  %v6040_v10 = vpop.f32.mrf.mxu0  ;;  %v4123_v62 = vld [vmem:[%s7097_s3 + $0xb8] sm:$0xf0] }
 0x101   :  { %v488_v51 = vadd.f32 %v487_v16, %v463_v7  ;;  %v6052_v8 = vpop.f32.mrf.mxu1  ;;  %v530_v44 = vmax.f32 %v524_v63, 0.0  ;;  %v3939_v16 = vld [vmem:[%s7097_s3 + $0x208] sm:$0xf0]  ;;  %v4775_v63 = vld [vmem:[%s7097_s3 + $0xe4] sm:$0xf0] }
 0x102   :  { %1856 = vmatpush.bf16.msra.mxu0 %v3970_v14  ;;  %1875 = vmatpush.bf16.msra.mxu1 %v3974_v17  ;;  %v3942_v27 = vor.u32 %v4726_v3, %v3939_v16  ;;  %v3714_v14 = vor.u32 %v4683_v2, %v3713_v54  ;;  %v4153_v17 = vld [vmem:[%s7097_s3 + $0xf0] sm:$0xf]  ;;  %v4130_v3 = vor.u32 %v4771_v40, %v4129_v57  ;;  %v3673_v57 = vld [vmem:[%s7097_s3 + $0x80] sm:$0xf]  ;;  %v4672_v40 = vld [vmem:[%s7097_s3 + $0x84] sm:$0xf] }
 0x103   :  { %v501_v58 = vmax.f32 %v355_v12, %v488_v51  ;;  %v3938_v12 = vor.u32 %v4727_v52, %v3937_v49  ;;  %1349 = vmatpush.bf16.msra.mxu3 %v3718_v5  ;;  %v4131_v49 = vld [vmem:[%s7097_s3 + $0xc8] sm:$0xf0]  ;;  %v3702_v52 = vor.u32 %v4678_v31, %v3699_v55  ;;  %v4121_v16 = vld [vmem:[%s7097_s3 + $0xb0] sm:$0xf]  ;;  %v3689_v5 = vld [vmem:[%s7097_s3 + $0xa0] sm:$0xf] }
 0x104   :  { %v4653_v25 = vld [vmem:[#allocation2 + $0x8] sm:$0xff]  ;;  %1330 = vmatpush.bf16.msra.mxu2 %v3714_v14 }
 0x105   :  { %v519_v15 = vadd.f32 %v5909_v28, %v501_v58  ;;  %1182 = vmatmul.bf16.gmra.mxu0 %v4653_v25  ;;  %1201 = vmatmul.bf16.gmra.mxu1 %v4653_v25  ;;  %v4688_v61 = vld [vmem:[#allocation2 + $0x4] sm:$0xff]  ;;  %v4154_v58 = vor.u32 %v4777_v37, %v4153_v17 }
 0x106   :  { %1857 = vmatpush.bf16.msra.mxu0 %v3962_v42  ;;  %1876 = vmatpush.bf16.msra.mxu1 %v3966_v47  ;;  %v4773_v42 = vld [vmem:[%s7097_s3 + $0xd4] sm:$0xf0]  ;;  %v4772_v47 = vld [vmem:[%s7097_s3 + $0xd4] sm:$0xf] }
 0x107   :  { %v525_v41 = vmax.f32 %v518_v11, %v519_v15  ;;  %v6084_v48 = vpop.f32.mrf.mxu2  ;;  %v4774_v11 = vld [vmem:[%s7097_s3 + $0xe4] sm:$0xf]  ;;  %v4146_v15 = vor.u32 %v4775_v63, %v4145_v50  ;;  %v4138_v29 = vor.u32 %v4773_v42, %v4137_v32  ;;  %v4113_v50 = vld [vmem:[%s7097_s3 + $0xa0] sm:$0xf]  ;;  %v4767_v63 = vld [vmem:[%s7097_s3 + $0xa4] sm:$0xf0] }
 0x108   :  { %v6086_v28 = vpop.f32.mrf.mxu3  ;;  %v6088_v53 = vpop.f32.mrf.mxu0  ;;  %v4150_v26 = vor.u32 %v4774_v11, %v4147_v20  ;;  %v4766_v20 = vld [vmem:[%s7097_s3 + $0xa4] sm:$0xf]  ;;  %v3681_v42 = vld [vmem:[%s7097_s3 + $0x90] sm:$0xf] }
 0x109   :  { %v531_v56 = vmax.f32 %v525_v41, 0.0  ;;  %v6099_v0 = vpop.f32.mrf.mxu1 }
 0x10a   :  { %1858 = vmatpush.bf16.msra.mxu0 %v3954_v1  ;;  %1877 = vmatpush.bf16.msra.mxu1 %v3958_v6  ;;  %v4681_v6 = vld [vmem:[%s7097_s3 + $0xc4] sm:$0xf0] }
 0x10b   :  { %v4880_v24 = vpack.c.bf16 %v531_v56, %v530_v44  ;;  %v4142_v56 = vor.u32 %v4772_v47, %v4139_v33  ;;  %v3706_v23 = vor.u32 %v4681_v6, %v3705_v4  ;;  %v4675_v47 = vld [vmem:[%s7097_s3 + $0x94] sm:$0xf0]  ;;  %v3683_v4 = vld [vmem:[%s7097_s3 + $0x98] sm:$0xf0]  ;;  %v4105_v6 = vld [vmem:[%s7097_s3 + $0x90] sm:$0xf] }
 0x10d   :  { %4898 = vst [vmem:[#allocation2 + $0x10] sm:$0xff] %v4880_v24   ;;  %v3707_v24 = vld [vmem:[%s7097_s3 + $0xc8] sm:$0xf0]  ;;  %1331 = vmatpush.bf16.msra.mxu2 %v3706_v23 }
 0x10e   :  { %1859 = vmatpush.bf16.msra.mxu0 %v3946_v39  ;;  %1878 = vmatpush.bf16.msra.mxu1 %v3950_v45  ;;  %v3710_v30 = vor.u32 %v4680_v18, %v3707_v24  ;;  %v3698_v39 = vor.u32 %v4679_v60, %v3697_v59  ;;  %v4770_v45 = vld [vmem:[%s7097_s3 + $0xc4] sm:$0xf]  ;;  %v4765_v18 = vld [vmem:[%s7097_s3 + $0x94] sm:$0xf0]  ;;  %v4764_v60 = vld [vmem:[%s7097_s3 + $0x94] sm:$0xf] }
 0x10f   :  { %v6128_v46 = vpop.f32.mrf.mxu2  ;;  %v4106_v59 = vor.u32 %v4765_v18, %v4105_v6  ;;  %v3897_v6 = vld [vmem:[%s7097_s3 + $0x1e0] sm:$0xf]  ;;  %v4721_v18 = vld [vmem:[%s7097_s3 + $0x1e4] sm:$0xf0] }
 0x110   :  { %v6130_v35 = vpop.f32.mrf.mxu3  ;;  %v6132_v36 = vpop.f32.mrf.mxu0  ;;  %1350 = vmatpush.bf16.msra.mxu3 %v3710_v30  ;;  %v4107_v30 = vld [vmem:[%s7097_s3 + $0x98] sm:$0xf0] }
 0x111   :  { %v6143_v7 = vpop.f32.mrf.mxu1  ;;  %1332 = vmatpush.bf16.msra.mxu2 %v3698_v39  ;;  %v4110_v55 = vor.u32 %v4764_v60, %v4107_v30  ;;  %v4673_v39 = vld [vmem:[%s7097_s3 + $0x84] sm:$0xf0]  ;;  %v3898_v30 = vor.u32 %v4721_v18, %v3897_v6  ;;  %v4305_v6 = vld [vmem:[%s7097_s3 + $0x1c0] sm:$0xf] }
 0x112   :  { %1860 = vmatpush.bf16.msra.mxu0 %v3938_v12  ;;  %1879 = vmatpush.bf16.msra.mxu1 %v3942_v27  ;;  %v4134_v12 = vor.u32 %v4770_v45, %v4131_v49  ;;  %v4769_v27 = vld [vmem:[%s7097_s3 + $0xb4] sm:$0xf0]  ;;  %v3674_v45 = vor.u32 %v4673_v39, %v3673_v57  ;;  %v3675_v49 = vld [vmem:[%s7097_s3 + $0x88] sm:$0xf0]  ;;  %v4321_v57 = vld [vmem:[%s7097_s3 + $0x1e0] sm:$0xf] }
 0x113   :  { %v4122_v2 = vor.u32 %v4769_v27, %v4121_v16  ;;  %v3678_v16 = vor.u32 %v4672_v40, %v3675_v49  ;;  %v4811_v39 = vld [vmem:[%s7097_s3 + $0x1e4] sm:$0xf0]  ;;  %v807_v40 = vadd.f32 %v6052_v8, %v6040_v10  ;;  %v3889_v10 = vld [vmem:[%s7097_s3 + $0x1d0] sm:$0xf]  ;;  %v4719_v8 = vld [vmem:[%s7097_s3 + $0x1d4] sm:$0xf0] }
 0x114   :  { %v4689_v22 = vld [vmem:[#allocation2 + $0xc] sm:$0xff]  ;;  %1351 = vmatpush.bf16.msra.mxu3 %v3702_v52  ;;  %v4097_v52 = vld [vmem:[%s7097_s3 + $0x80] sm:$0xf]  ;;  %v4807_v18 = vld [vmem:[%s7097_s3 + $0x1c4] sm:$0xf0] }
 0x115   :  { %1511 = vmatmul.bf16.vlgmr.msrb.gmra.mxu0 %v4688_v61  ;;  %1530 = vmatmul.bf16.vlgmr.msrb.gmra.mxu1 %v4688_v61  ;;  %v4768_v61 = vld [vmem:[%s7097_s3 + $0xb4] sm:$0xf] }
 0x116   :  { %2186 = vmatpush.bf16.msrb.mxu0 %v4154_v58  ;;  %2205 = vmatpush.bf16.msrb.mxu1 %v4158_v38  ;;  %v4126_v17 = vor.u32 %v4768_v61, %v4123_v62  ;;  %v4677_v58 = vld [vmem:[%s7097_s3 + $0xa4] sm:$0xf0]  ;;  %v3691_v38 = vld [vmem:[%s7097_s3 + $0xa8] sm:$0xf0]  ;;  %v4762_v61 = vld [vmem:[%s7097_s3 + $0x84] sm:$0xf] }
 0x117   :  { %v6157_v51 = vpop.f32.mrf.mxu2  ;;  %v3690_v13 = vor.u32 %v4677_v58, %v3689_v5  ;;  %v3694_v11 = vor.u32 %v4676_v9, %v3691_v38  ;;  %v4723_v5 = vld [vmem:[%s7097_s3 + $0x1f4] sm:$0xf0]  ;;  %v4722_v58 = vld [vmem:[%s7097_s3 + $0x1f4] sm:$0xf]  ;;  %v3907_v38 = vld [vmem:[%s7097_s3 + $0x1f8] sm:$0xf0] }
 0x118   :  { %v6168_v43 = vpop.f32.mrf.mxu3  ;;  %v6170_v21 = vpop.f32.mrf.mxu0 }
 0x119   :  { %v6178_v25 = vpop.f32.mrf.mxu1  ;;  %1333 = vmatpush.bf16.msra.mxu2 %v3690_v13  ;;  %1352 = vmatpush.bf16.msra.mxu3 %v3694_v11 }
 0x11a   :  { %2187 = vmatpush.bf16.msrb.mxu0 %v4146_v15  ;;  %2206 = vmatpush.bf16.msrb.mxu1 %v4150_v26  ;;  %v4114_v15 = vor.u32 %v4767_v63, %v4113_v50  ;;  %v4115_v26 = vld [vmem:[%s7097_s3 + $0xa8] sm:$0xf0]  ;;  %v4329_v50 = vld [vmem:[%s7097_s3 + $0x1f0] sm:$0xf]  ;;  %v4813_v63 = vld [vmem:[%s7097_s3 + $0x1f4] sm:$0xf0] }
 0x11b   :  { %v4118_v32 = vor.u32 %v4766_v20, %v4115_v26  ;;  %v3910_v20 = vor.u32 %v4722_v58, %v3907_v38  ;;  %v4330_v26 = vor.u32 %v4813_v63, %v4329_v50  ;;  %v4809_v58 = vld [vmem:[%s7097_s3 + $0x1d4] sm:$0xf0]  ;;  %v4808_v50 = vld [vmem:[%s7097_s3 + $0x1d4] sm:$0xf]  ;;  %v4315_v63 = vld [vmem:[%s7097_s3 + $0x1d8] sm:$0xf0] }
 0x11e   :  { %2188 = vmatpush.bf16.msrb.mxu0 %v4138_v29  ;;  %2207 = vmatpush.bf16.msrb.mxu1 %v4142_v56  ;;  %v4674_v29 = vld [vmem:[%s7097_s3 + $0x94] sm:$0xf]  ;;  %v3682_v56 = vor.u32 %v4675_v47, %v3681_v42  ;;  %v4331_v42 = vld [vmem:[%s7097_s3 + $0x1f8] sm:$0xf0]  ;;  %v1014_v47 = vld [vmem:[%s7098_s2] sm:$0x3] }
 0x11f   :  { %v6201_v41 = vpop.f32.mrf.mxu2  ;;  %v3686_v24 = vor.u32 %v4674_v29, %v3683_v4 }
 0x120   :  { %v6206_v34 = vpop.f32.mrf.mxu3  ;;  %v6208_v44 = vpop.f32.mrf.mxu0  ;;  %1334 = vmatpush.bf16.msra.mxu2 %v3682_v56 }
 0x121   :  { %v6210_v1 = vpop.f32.mrf.mxu1  ;;  %1353 = vmatpush.bf16.msra.mxu3 %v3686_v24  ;;  %v4720_v24 = vld [vmem:[%s7097_s3 + $0x1e4] sm:$0xf] }
 0x122   :  { %2189 = vmatpush.bf16.msrb.mxu0 %v4130_v3  ;;  %2208 = vmatpush.bf16.msrb.mxu1 %v4134_v12  ;;  %v4763_v3 = vld [vmem:[%s7097_s3 + $0x84] sm:$0xf0] }
 0x123   :  { %v4724_v12 = vld [vmem:[#allocation2 + $0x8] sm:$0xff]  ;;  %v4098_v27 = vor.u32 %v4763_v3, %v4097_v52  ;;  %v6401_v52 = vperm.slane %v1014_v47, 1 }
 0x124   :  { %1335 = vmatpush.bf16.msra.mxu2 %v3674_v45  ;;  %v6393_v45 = vperm.slane %v1014_v47, 0 }
 0x125   :  { %1516 = vmatmul.bf16.gmra.mxu0 %v4689_v22  ;;  %1535 = vmatmul.bf16.gmra.mxu1 %v4689_v22 }
 0x126   :  { %2190 = vmatpush.bf16.msrb.mxu0 %v4122_v2  ;;  %2209 = vmatpush.bf16.msrb.mxu1 %v4126_v17  ;;  %v4099_v2 = vld [vmem:[%s7097_s3 + $0x88] sm:$0xf0]  ;;  %v3905_v17 = vld [vmem:[%s7097_s3 + $0x1f0] sm:$0xf] }
 0x127   :  { %v6257_v54 = vpop.f32.mrf.mxu2  ;;  %v4102_v62 = vor.u32 %v4762_v61, %v4099_v2  ;;  %1354 = vmatpush.bf16.msra.mxu3 %v3678_v16  ;;  %v3906_v13 = vor.u32 %v4723_v5, %v3905_v17  ;;  %v4718_v16 = vld [vmem:[%s7097_s3 + $0x1d4] sm:$0xf]  ;;  %v3891_v17 = vld [vmem:[%s7097_s3 + $0x1d8] sm:$0xf0]  ;;  %v4313_v5 = vld [vmem:[%s7097_s3 + $0x1d0] sm:$0xf] }
 0x128   :  { %v6262_v14 = vpop.f32.mrf.mxu3  ;;  %v6264_v19 = vpop.f32.mrf.mxu0  ;;  %v4314_v38 = vor.u32 %v4809_v58, %v4313_v5  ;;  %v4299_v5 = vld [vmem:[%s7097_s3 + $0x1b8] sm:$0xf0] }
 0x129   :  { %v6266_v37 = vpop.f32.mrf.mxu1  ;;  %1678 = vmatpush.bf16.msrb.mxu2 %v3906_v13  ;;  %v3894_v13 = vor.u32 %v4718_v16, %v3891_v17  ;;  %v4805_v16 = vld [vmem:[%s7097_s3 + $0x1b4] sm:$0xf0]  ;;  %v4804_v17 = vld [vmem:[%s7097_s3 + $0x1b4] sm:$0xf] }
 0x12a   :  { %2191 = vmatpush.bf16.msrb.mxu0 %v4114_v15  ;;  %2210 = vmatpush.bf16.msrb.mxu1 %v4118_v32  ;;  %v4812_v32 = vld [vmem:[%s7097_s3 + $0x1f4] sm:$0xf] }
 0x12b   :  { %v4334_v4 = vor.u32 %v4812_v32, %v4331_v42  ;;  %1697 = vmatpush.bf16.msrb.mxu3 %v3910_v20  ;;  %v4717_v32 = vld [vmem:[%s7097_s3 + $0x1c4] sm:$0xf0]  ;;  %v4716_v42 = vld [vmem:[%s7097_s3 + $0x1c4] sm:$0xf] }
 0x12d   :  { %1679 = vmatpush.bf16.msrb.mxu2 %v3898_v30  ;;  %v4806_v30 = vld [vmem:[%s7097_s3 + $0x1c4] sm:$0xf] }
 0x12e   :  { %2192 = vmatpush.bf16.msrb.mxu0 %v4106_v59  ;;  %2211 = vmatpush.bf16.msrb.mxu1 %v4110_v55  ;;  %v855_v59 = vadd.f32 %v6086_v28, %v6084_v48  ;;  %v3899_v55 = vld [vmem:[%s7097_s3 + $0x1e8] sm:$0xf0]  ;;  %v4322_v28 = vor.u32 %v4811_v39, %v4321_v57 }
 0x12f   :  { %v6301_v33 = vpop.f32.mrf.mxu2  ;;  %v3902_v48 = vor.u32 %v4720_v24, %v3899_v55  ;;  %v4725_v24 = vld [vmem:[#allocation2 + $0x10] sm:$0xff]  ;;  %v4307_v55 = vld [vmem:[%s7097_s3 + $0x1c8] sm:$0xf0] }
 0x130   :  { %v6312_v22 = vpop.f32.mrf.mxu3  ;;  %v915_v23 = vpop.f32.mrf.mxu0 }
 0x131   :  { %v939_v31 = vpop.f32.mrf.mxu1  ;;  %1698 = vmatpush.bf16.msrb.mxu3 %v3902_v48  ;;  %v4310_v48 = vor.u32 %v4806_v30, %v4307_v55  ;;  %v814_v30 = vadd.f32 %v6178_v25, %v6170_v21  ;;  %v862_v21 = vadd.f32 %v6206_v34, %v6201_v41  ;;  %v4708_v34 = vld [vmem:[%s7097_s3 + $0x184] sm:$0xf] }
 0x132   :  { %2193 = vmatpush.bf16.msrb.mxu0 %v4098_v27  ;;  %2212 = vmatpush.bf16.msrb.mxu1 %v4102_v62  ;;  %v940_v60 = vadd.f32 %v939_v31, %v915_v23  ;;  %v4810_v23 = vld [vmem:[%s7097_s3 + $0x1e4] sm:$0xf]  ;;  %v4323_v31 = vld [vmem:[%s7097_s3 + $0x1e8] sm:$0xf0]  ;;  %v809_v27 = vadd.f32 %v6099_v0, %v6088_v53  ;;  %v3890_v62 = vor.u32 %v4719_v8, %v3889_v10  ;;  %v3875_v10 = vld [vmem:[%s7097_s3 + $0x1b8] sm:$0xf0] }
 0x133   :  { %v4297_v8 = vld [vmem:[%s7097_s3 + $0x1b0] sm:$0xf] }
 0x134   :  { %v1002_v61 = vmax.f32 %v807_v40, %v940_v60  ;;  %1680 = vmatpush.bf16.msrb.mxu2 %v3890_v62  ;;  %v4306_v60 = vor.u32 %v4807_v18, %v4305_v6  ;;  %v4298_v62 = vor.u32 %v4805_v16, %v4297_v8 }
 0x135   :  { %1861 = vmatmul.bf16.vlgmr.msra.gmra.mxu0 %v4724_v12  ;;  %1880 = vmatmul.bf16.vlgmr.msra.gmra.mxu1 %v4724_v12  ;;  %v4326_v12 = vor.u32 %v4810_v23, %v4323_v31  ;;  %v4715_v23 = vld [vmem:[%s7097_s3 + $0x1b4] sm:$0xf0]  ;;  %v4714_v31 = vld [vmem:[%s7097_s3 + $0x1b4] sm:$0xf] }
 0x136   :  { %2534 = vmatpush.bf16.msra.mxu0 %v4330_v26  ;;  %2553 = vmatpush.bf16.msra.mxu1 %v4334_v4  ;;  %v1020_v47 = vadd.f32 %v6393_v45, %v1002_v61  ;;  %v3883_v4 = vld [vmem:[%s7097_s3 + $0x1c8] sm:$0xf0] }
 0x137   :  { %v963_v9 = vpop.f32.mrf.mxu2  ;;  %1699 = vmatpush.bf16.msrb.mxu3 %v3894_v13 }
 0x138   :  { %v987_v11 = vpop.f32.mrf.mxu3  ;;  %v917_v15 = vpop.f32.mrf.mxu0 }
 0x139   :  { %v988_v29 = vadd.f32 %v987_v11, %v963_v9  ;;  %v941_v56 = vpop.f32.mrf.mxu1  ;;  %v857_v9 = vadd.f32 %v6130_v35, %v6128_v46  ;;  %v4318_v46 = vor.u32 %v4808_v50, %v4315_v63  ;;  %v3881_v35 = vld [vmem:[%s7097_s3 + $0x1c0] sm:$0xf]  ;;  %v860_v50 = vadd.f32 %v6168_v43, %v6157_v51  ;;  %v3867_v51 = vld [vmem:[%s7097_s3 + $0x1a8] sm:$0xf0] }
 0x13a   :  { %v942_v3 = vadd.f32 %v941_v56, %v917_v15  ;;  %2535 = vmatpush.bf16.msra.mxu0 %v4322_v28  ;;  %2554 = vmatpush.bf16.msra.mxu1 %v4326_v12  ;;  %v3882_v56 = vor.u32 %v4717_v32, %v3881_v35  ;;  %v3873_v28 = vld [vmem:[%s7097_s3 + $0x1b0] sm:$0xf]  ;;  %v3865_v63 = vld [vmem:[%s7097_s3 + $0x1a0] sm:$0xf]  ;;  %v4803_v32 = vld [vmem:[%s7097_s3 + $0x1a4] sm:$0xf0] }
 0x13b   :  { %v1003_v49 = vmax.f32 %v855_v59, %v988_v29  ;;  %v3886_v59 = vor.u32 %v4716_v42, %v3883_v4  ;;  %v3874_v12 = vor.u32 %v4715_v23, %v3873_v28  ;;  %v4289_v43 = vld [vmem:[%s7097_s3 + $0x1a0] sm:$0xf]  ;;  %v812_v42 = vadd.f32 %v6143_v7, %v6132_v36  ;;  %v3857_v36 = vld [vmem:[%s7097_s3 + $0x190] sm:$0xf]  ;;  %v4711_v7 = vld [vmem:[%s7097_s3 + $0x194] sm:$0xf0] }
 0x13c   :  { %v1004_v15 = vmax.f32 %v809_v27, %v942_v3  ;;  %1681 = vmatpush.bf16.msrb.mxu2 %v3882_v56  ;;  %v3858_v18 = vor.u32 %v4711_v7, %v3857_v36  ;;  %v4283_v28 = vld [vmem:[%s7097_s3 + $0x198] sm:$0xf0] }
 0x13d   :  { %v1021_v11 = vadd.f32 %v6401_v52, %v1003_v49  ;;  %1700 = vmatpush.bf16.msrb.mxu3 %v3886_v59  ;;  %v3859_v59 = vld [vmem:[%s7097_s3 + $0x198] sm:$0xf0] }
 0x13e   :  { %2536 = vmatpush.bf16.msra.mxu0 %v4314_v38  ;;  %2555 = vmatpush.bf16.msra.mxu1 %v4318_v46  ;;  %v1022_v39 = vadd.f32 %v6393_v45, %v1004_v15  ;;  %v4302_v38 = vor.u32 %v4804_v17, %v4299_v5  ;;  %v4712_v15 = vld [vmem:[%s7097_s3 + $0x1a4] sm:$0xf] }
 0x13f   :  { %v965_v2 = vpop.f32.mrf.mxu2  ;;  %v1032_v57 = vmax.f32 %v1020_v47, %v1021_v11  ;;  %v4713_v11 = vld [vmem:[%s7097_s3 + $0x1a4] sm:$0xf0]  ;;  %v4802_v47 = vld [vmem:[%s7097_s3 + $0x1a4] sm:$0xf] }
 0x140   :  { %v989_v53 = vpop.f32.mrf.mxu3  ;;  %v6425_v0 = vpop.f32.mrf.mxu0  ;;  %1682 = vmatpush.bf16.msrb.mxu2 %v3874_v12  ;;  %v3866_v35 = vor.u32 %v4713_v11, %v3865_v63  ;;  %v4709_v12 = vld [vmem:[%s7097_s3 + $0x184] sm:$0xf0]  ;;  %v4798_v17 = vld [vmem:[%s7097_s3 + $0x184] sm:$0xf] }
 0x141   :  { %v990_v20 = vadd.f32 %v989_v53, %v965_v2  ;;  %v944_v26 = vpop.f32.mrf.mxu1  ;;  %v3878_v2 = vor.u32 %v4714_v31, %v3875_v10  ;;  %v1038_v58 = vmax.f32 %v1032_v57, 0.0 }
 0x142   :  { %2537 = vmatpush.bf16.msra.mxu0 %v4306_v60  ;;  %2556 = vmatpush.bf16.msra.mxu1 %v4310_v48  ;;  %v945_v46 = vadd.f32 %v944_v26, %v6425_v0  ;;  %v3870_v0 = vor.u32 %v4712_v15, %v3867_v51  ;;  %v4290_v26 = vor.u32 %v4803_v32, %v4289_v43  ;;  %v4281_v60 = vld [vmem:[%s7097_s3 + $0x190] sm:$0xf]  ;;  %v4800_v48 = vld [vmem:[%s7097_s3 + $0x194] sm:$0xf]  ;;  %v4760_v15 = vld [vmem:[#allocation2 + $0x4] sm:$0xff] }
 0x143   :  { %v1005_v29 = vmax.f32 %v857_v9, %v990_v20  ;;  %1701 = vmatpush.bf16.msrb.mxu3 %v3878_v2  ;;  %v4273_v2 = vld [vmem:[%s7097_s3 + $0x180] sm:$0xf]  ;;  %v4758_v51 = vld [vmem:[%s7097_s3 + $0x74] sm:$0xf] }
 0x144   :  { %1683 = vmatpush.bf16.msrb.mxu2 %v3866_v35  ;;  %v1006_v55 = vmax.f32 %v812_v42, %v945_v46  ;;  %v4065_v46 = vld [vmem:[%s7097_s3 + $0x70] sm:$0xf]  ;;  %v4759_v35 = vld [vmem:[%s7097_s3 + $0x74] sm:$0xf0] }
 0x145   :  { %v1023_v40 = vadd.f32 %v6401_v52, %v1005_v29  ;;  %1866 = vmatmul.bf16.gmra.mxu0 %v4725_v24  ;;  %1885 = vmatmul.bf16.gmra.mxu1 %v4725_v24  ;;  %v4291_v29 = vld [vmem:[%s7097_s3 + $0x1a8] sm:$0xf0]  ;;  %v4710_v24 = vld [vmem:[%s7097_s3 + $0x194] sm:$0xf]  ;;  %v4066_v42 = vor.u32 %v4759_v35, %v4065_v46  ;;  %v4748_v35 = vld [vmem:[%s7097_s3 + $0x24] sm:$0xf] }
 0x146   :  { %2538 = vmatpush.bf16.msra.mxu0 %v4298_v62  ;;  %2557 = vmatpush.bf16.msra.mxu1 %v4302_v38  ;;  %v4294_v6 = vor.u32 %v4802_v47, %v4291_v29  ;;  %v4799_v62 = vld [vmem:[%s7097_s3 + $0x184] sm:$0xf0]  ;;  %v1024_v5 = vadd.f32 %v6393_v45, %v1006_v55  ;;  %v865_v55 = vadd.f32 %v6262_v14, %v6257_v54  ;;  %v4051_v54 = vld [vmem:[%s7097_s3 + $0x58] sm:$0xf0] }
 0x147   :  { %v1033_v49 = vmax.f32 %v1022_v39, %v1023_v40  ;;  %v968_v3 = vpop.f32.mrf.mxu2  ;;  %1702 = vmatpush.bf16.msrb.mxu3 %v3870_v0  ;;  %v3862_v39 = vor.u32 %v4710_v24, %v3859_v59  ;;  %v4801_v40 = vld [vmem:[%s7097_s3 + $0x194] sm:$0xf0]  ;;  %v4274_v38 = vor.u32 %v4799_v62, %v4273_v2  ;;  %v4067_v0 = vld [vmem:[%s7097_s3 + $0x78] sm:$0xf0]  ;;  %v4757_v47 = vld [vmem:[%s7097_s3 + $0x64] sm:$0xf0] }
 0x148   :  { %v992_v27 = vpop.f32.mrf.mxu3  ;;  %v922_v61 = vpop.f32.mrf.mxu0  ;;  %v4282_v31 = vor.u32 %v4801_v40, %v4281_v60  ;;  %1684 = vmatpush.bf16.msrb.mxu2 %v3858_v18  ;;  %v4049_v40 = vld [vmem:[%s7097_s3 + $0x50] sm:$0xf] }
 0x149   :  { %v1039_v9 = vmax.f32 %v1033_v49, 0.0  ;;  %v993_v53 = vadd.f32 %v992_v27, %v968_v3  ;;  %v946_v13 = vpop.f32.mrf.mxu1  ;;  %v4286_v49 = vor.u32 %v4800_v48, %v4283_v28  ;;  %v3849_v3 = vld [vmem:[%s7097_s3 + $0x180] sm:$0xf]  ;;  %v4755_v48 = vld [vmem:[%s7097_s3 + $0x54] sm:$0xf0] }
 0x14a   :  { %v947_v4 = vadd.f32 %v946_v13, %v922_v61  ;;  %2539 = vmatpush.bf16.msra.mxu0 %v4290_v26  ;;  %2558 = vmatpush.bf16.msra.mxu1 %v4294_v6  ;;  %v3850_v41 = vor.u32 %v4709_v12, %v3849_v3  ;;  %v3851_v61 = vld [vmem:[%s7097_s3 + $0x188] sm:$0xf0]  ;;  %v4057_v26 = vld [vmem:[%s7097_s3 + $0x60] sm:$0xf]  ;;  %v4754_v28 = vld [vmem:[%s7097_s3 + $0x54] sm:$0xf] }
 0x14b   :  { %v4885_v20 = vpack.c.bf16 %v1039_v9, %v1038_v58  ;;  %v1007_v56 = vmax.f32 %v860_v50, %v993_v53  ;;  %1703 = vmatpush.bf16.msrb.mxu3 %v3862_v39  ;;  %v4275_v9 = vld [vmem:[%s7097_s3 + $0x188] sm:$0xf0]  ;;  %v3854_v13 = vor.u32 %v4708_v34, %v3851_v61  ;;  %v4058_v24 = vor.u32 %v4757_v47, %v4057_v26  ;;  %v4753_v3 = vld [vmem:[%s7097_s3 + $0x44] sm:$0xf0]  ;;  %v4752_v61 = vld [vmem:[%s7097_s3 + $0x44] sm:$0xf] }
 0x14c   :  { %v1008_v8 = vmax.f32 %v814_v30, %v947_v4  ;;  %1685 = vmatpush.bf16.msrb.mxu2 %v3850_v41  ;;  %v4756_v4 = vld [vmem:[%s7097_s3 + $0x64] sm:$0xf]  ;;  %v4059_v6 = vld [vmem:[%s7097_s3 + $0x68] sm:$0xf0]  ;;  %v4746_v47 = vld [vmem:[%s7097_s3 + $0x14] sm:$0xf] }
 0x14d   :  { %4886 = vst [vmem:[#allocation2 + $0x18] sm:$0xff] %v4885_v20   ;;  %v1025_v10 = vadd.f32 %v6401_v52, %v1007_v56  ;;  %v4278_v20 = vor.u32 %v4798_v17, %v4275_v9  ;;  %v4070_v56 = vor.u32 %v4758_v51, %v4067_v0  ;;  %v4062_v30 = vor.u32 %v4756_v4, %v4059_v6  ;;  %v4033_v9 = vld [vmem:[%s7097_s3 + $0x30] sm:$0xf]  ;;  %v4027_v51 = vld [vmem:[%s7097_s3 + $0x28] sm:$0xf0] }
 0x14e   :  { %2540 = vmatpush.bf16.msra.mxu0 %v4282_v31  ;;  %2559 = vmatpush.bf16.msra.mxu1 %v4286_v49  ;;  %v1026_v63 = vadd.f32 %v6393_v45, %v1008_v8  ;;  %v4054_v31 = vor.u32 %v4754_v28, %v4051_v54  ;;  %v4041_v49 = vld [vmem:[%s7097_s3 + $0x40] sm:$0xf]  ;;  %v4030_v0 = vor.u32 %v4748_v35, %v4027_v51  ;;  %v4745_v4 = vld [vmem:[%s7097_s3 + $0x4] sm:$0xf0]  ;;  %v4792_v54 = vld [vmem:[%s7097_s3 + $0x164] sm:$0xf] }
 0x14f   :  { %v970_v57 = vpop.f32.mrf.mxu2  ;;  %v1034_v50 = vmax.f32 %v1024_v5, %v1025_v10  ;;  %1704 = vmatpush.bf16.msrb.mxu3 %v3854_v13  ;;  %v867_v10 = vadd.f32 %v6312_v22, %v6301_v33  ;;  %v4042_v34 = vor.u32 %v4753_v3, %v4041_v49  ;;  %v4750_v13 = vld [vmem:[%s7097_s3 + $0x34] sm:$0xf]  ;;  %v4793_v28 = vld [vmem:[%s7097_s3 + $0x164] sm:$0xf0]  ;;  %v4791_v49 = vld [vmem:[%s7097_s3 + $0x154] sm:$0xf0] }
 0x150   :  { %v994_v25 = vpop.f32.mrf.mxu3  ;;  %v6542_v23 = vpop.f32.mrf.mxu0  ;;  %v4790_v3 = vld [vmem:[%s7097_s3 + $0x154] sm:$0xf]  ;;  %v4780_v51 = vld [vmem:[%s7097_s3 + $0x104] sm:$0xf] }
 0x151   :  { %v995_v16 = vadd.f32 %v994_v25, %v970_v57  ;;  %v949_v27 = vpop.f32.mrf.mxu1  ;;  %v1040_v36 = vmax.f32 %v1034_v50, 0.0  ;;  %v4025_v50 = vld [vmem:[%s7097_s3 + $0x20] sm:$0xf] }
 0x152   :  { %2541 = vmatpush.bf16.msra.mxu0 %v4274_v38  ;;  %2560 = vmatpush.bf16.msra.mxu1 %v4278_v20  ;;  %v950_v39 = vadd.f32 %v949_v27, %v6542_v23  ;;  %v4050_v23 = vor.u32 %v4755_v48, %v4049_v40  ;;  %v4243_v40 = vld [vmem:[%s7097_s3 + $0x178] sm:$0xf0]  ;;  %v4233_v48 = vld [vmem:[%s7097_s3 + $0x160] sm:$0xf] }
 0x153   :  { %v1009_v58 = vmax.f32 %v862_v21, %v995_v16  ;;  %v817_v21 = vadd.f32 %v6210_v1, %v6208_v44  ;;  %v819_v44 = vadd.f32 %v6266_v37, %v6264_v19  ;;  %v4043_v19 = vld [vmem:[%s7097_s3 + $0x48] sm:$0xf0] }
 0x154   :  { %v4670_v53 = vld [vmem:[#allocation2 + $0x18] sm:$0xff]  ;;  %v4046_v22 = vor.u32 %v4752_v61, %v4043_v19  ;;  %v4797_v19 = vld [vmem:[#allocation2 + $0x10] sm:$0xff] }
 0x155   :  { %v1027_v11 = vadd.f32 %v6401_v52, %v1009_v58  ;;  %1336 = vmatmul.bf16.vlgmr.msra.gmra.mxu2 %v4670_v53  ;;  %1355 = vmatmul.bf16.vlgmr.msra.gmra.mxu3 %v4670_v53  ;;  %v1010_v1 = vmax.f32 %v817_v21, %v950_v39  ;;  %v4761_v58 = vld [vmem:[#allocation2 + $0xc] sm:$0xff]  ;;  %v4751_v53 = vld [vmem:[%s7097_s3 + $0x34] sm:$0xf0] }
 0x156   :  { %2194 = vmatmul.bf16.vlgmr.msrb.gmra.mxu0 %v4760_v15  ;;  %2213 = vmatmul.bf16.vlgmr.msrb.gmra.mxu1 %v4760_v15 }
 0x157   :  { %v1035_v43 = vmax.f32 %v1026_v63, %v1027_v11  ;;  %v973_v32 = vpop.f32.mrf.mxu2  ;;  %2027 = vmatpush.bf16.msra.mxu2 %v4066_v42  ;;  %2046 = vmatpush.bf16.msra.mxu3 %v4070_v56  ;;  %v1028_v37 = vadd.f32 %v6393_v45, %v1010_v1  ;;  %v4749_v63 = vld [vmem:[%s7097_s3 + $0x24] sm:$0xf0]  ;;  %v4747_v42 = vld [vmem:[%s7097_s3 + $0x14] sm:$0xf0]  ;;  %v4009_v56 = vld [vmem:[%s7097_s3] sm:$0xf] }
 0x158   :  { %v997_v29 = vpop.f32.mrf.mxu3  ;;  %v927_v59 = vpop.f32.mrf.mxu0  ;;  %v4026_v46 = vor.u32 %v4749_v63, %v4025_v50  ;;  %v4782_v63 = vld [vmem:[%s7097_s3 + $0x114] sm:$0xf] }
 0x159   :  { %v1041_v7 = vmax.f32 %v1035_v43, 0.0  ;;  %v998_v18 = vadd.f32 %v997_v29, %v973_v32  ;;  %v951_v60 = vpop.f32.mrf.mxu1  ;;  %v4017_v32 = vld [vmem:[%s7097_s3 + $0x10] sm:$0xf]  ;;  %v4019_v29 = vld [vmem:[%s7097_s3 + $0x18] sm:$0xf0] }
 0x15a   :  { %v952_v25 = vadd.f32 %v951_v60, %v927_v59  ;;  %v4018_v26 = vor.u32 %v4747_v42, %v4017_v32  ;;  %v4022_v6 = vor.u32 %v4746_v47, %v4019_v29  ;;  %v4796_v60 = vld [vmem:[#allocation2 + $0x8] sm:$0xff]  ;;  %v4742_v32 = vld [vmem:[#allocation2 + $0x18] sm:$0xff]  ;;  %v4830_v47 = vld [vmem:[%s7097_s3 + $0x274] sm:$0xf] }
 0x15b   :  { %v4890_v57 = vpack.c.bf16 %v1041_v7, %v1040_v36  ;;  %v1011_v14 = vmax.f32 %v865_v55, %v998_v18  ;;  %2028 = vmatpush.bf16.msra.mxu2 %v4058_v24  ;;  %2047 = vmatpush.bf16.msra.mxu3 %v4062_v30  ;;  %v4010_v36 = vor.u32 %v4745_v4, %v4009_v56  ;;  %v4744_v7 = vld [vmem:[%s7097_s3 + $0x4] sm:$0xf]  ;;  %v4011_v18 = vld [vmem:[%s7097_s3 + $0x8] sm:$0xf0]  ;;  %v4241_v30 = vld [vmem:[%s7097_s3 + $0x170] sm:$0xf] }
 0x15c   :  { %v1012_v27 = vmax.f32 %v819_v44, %v952_v25  ;;  %v4014_v59 = vor.u32 %v4744_v7, %v4011_v18  ;;  %v4795_v55 = vld [vmem:[%s7097_s3 + $0x174] sm:$0xf0]  ;;  %v4234_v25 = vor.u32 %v4793_v28, %v4233_v48  ;;  %v4227_v44 = vld [vmem:[%s7097_s3 + $0x158] sm:$0xf0]  ;;  %v4409_v4 = vld [vmem:[%s7097_s3 + $0x260] sm:$0xf] }
 0x15d   :  { %4899 = vst [vmem:[#allocation2 + $0x20] sm:$0xff] %v4890_v57   ;;  %v1029_v16 = vadd.f32 %v6401_v52, %v1011_v14  ;;  %v4794_v57 = vld [vmem:[%s7097_s3 + $0x174] sm:$0xf]  ;;  %v4242_v39 = vor.u32 %v4795_v55, %v4241_v30  ;;  %v4235_v14 = vld [vmem:[%s7097_s3 + $0x168] sm:$0xf0] }
 0x15e   :  { %v1030_v17 = vadd.f32 %v6393_v45, %v1012_v27  ;;  %v4034_v45 = vor.u32 %v4751_v53, %v4033_v9  ;;  %v4246_v21 = vor.u32 %v4794_v57, %v4243_v40  ;;  %v4788_v27 = vld [vmem:[%s7097_s3 + $0x144] sm:$0xf]  ;;  %v4419_v56 = vld [vmem:[%s7097_s3 + $0x278] sm:$0xf0]  ;;  %v4411_v18 = vld [vmem:[%s7097_s3 + $0x268] sm:$0xf0] }
 0x15f   :  { %v975_v12 = vpop.f32.mrf.mxu2  ;;  %2029 = vmatpush.bf16.msra.mxu2 %v4050_v23  ;;  %2048 = vmatpush.bf16.msra.mxu3 %v4054_v31  ;;  %v1036_v62 = vmax.f32 %v1028_v37, %v1029_v16  ;;  %v4238_v23 = vor.u32 %v4792_v54, %v4235_v14  ;;  %v4225_v31 = vld [vmem:[%s7097_s3 + $0x150] sm:$0xf]  ;;  %v4784_v53 = vld [vmem:[%s7097_s3 + $0x124] sm:$0xf]  ;;  %v4827_v30 = vld [vmem:[%s7097_s3 + $0x254] sm:$0xf0] }
 0x160   :  { %v999_v8 = vpop.f32.mrf.mxu3  ;;  %v4226_v1 = vor.u32 %v4791_v49, %v4225_v31  ;;  %v4209_v37 = vld [vmem:[%s7097_s3 + $0x130] sm:$0xf]  ;;  %v4828_v7 = vld [vmem:[%s7097_s3 + $0x264] sm:$0xf]  ;;  %v4826_v55 = vld [vmem:[%s7097_s3 + $0x254] sm:$0xf] }
 0x161   :  { %v1000_v41 = vadd.f32 %v999_v8, %v975_v12  ;;  %v1042_v15 = vmax.f32 %v1036_v62, 0.0  ;;  %v4230_v12 = vor.u32 %v4790_v3, %v4227_v44  ;;  %v4789_v8 = vld [vmem:[%s7097_s3 + $0x144] sm:$0xf0]  ;;  %v4211_v62 = vld [vmem:[%s7097_s3 + $0x138] sm:$0xf0] }
 0x162   :  { %v4403_v57 = vld [vmem:[%s7097_s3 + $0x258] sm:$0xf0]  ;;  %v4393_v48 = vld [vmem:[%s7097_s3 + $0x240] sm:$0xf]  ;;  %v4825_v28 = vld [vmem:[%s7097_s3 + $0x244] sm:$0xf0] }
 0x163   :  { %v1013_v2 = vmax.f32 %v867_v10, %v1000_v41  ;;  %2030 = vmatpush.bf16.msra.mxu2 %v4042_v34  ;;  %2049 = vmatpush.bf16.msra.mxu3 %v4046_v22  ;;  %v4217_v10 = vld [vmem:[%s7097_s3 + $0x140] sm:$0xf]  ;;  %v4219_v41 = vld [vmem:[%s7097_s3 + $0x148] sm:$0xf0]  ;;  %v4406_v40 = vor.u32 %v4826_v55, %v4403_v57  ;;  %v4394_v14 = vor.u32 %v4825_v28, %v4393_v48  ;;  %v4385_v3 = vld [vmem:[%s7097_s3 + $0x230] sm:$0xf] }
 0x164   :  { %v4671_v33 = vld [vmem:[#allocation2 + $0x20] sm:$0xff]  ;;  %v4218_v16 = vor.u32 %v4789_v8, %v4217_v10  ;;  %v4222_v61 = vor.u32 %v4788_v27, %v4219_v41  ;;  %v4395_v54 = vld [vmem:[%s7097_s3 + $0x248] sm:$0xf0]  ;;  %v4823_v44 = vld [vmem:[%s7097_s3 + $0x234] sm:$0xf0] }
 0x165   :  { %v1031_v5 = vadd.f32 %v6401_v52, %v1013_v2  ;;  %1341 = vmatmul.bf16.gmra.mxu2 %v4671_v33  ;;  %1360 = vmatmul.bf16.gmra.mxu3 %v4671_v33  ;;  %v4035_v52 = vld [vmem:[%s7097_s3 + $0x38] sm:$0xf0]  ;;  %v4787_v2 = vld [vmem:[%s7097_s3 + $0x134] sm:$0xf0]  ;;  %v4786_v33 = vld [vmem:[%s7097_s3 + $0x134] sm:$0xf] }
 0x166   :  { %2199 = vmatmul.bf16.gmra.mxu0 %v4761_v58  ;;  %2218 = vmatmul.bf16.gmra.mxu1 %v4761_v58  ;;  %v4038_v11 = vor.u32 %v4750_v13, %v4035_v52  ;;  %v4706_v24 = vld [vmem:[#allocation2 + $0x1c] sm:$0xff]  ;;  %v4210_v22 = vor.u32 %v4787_v2, %v4209_v37  ;;  %v4214_v58 = vor.u32 %v4786_v33, %v4211_v62  ;;  %v4203_v13 = vld [vmem:[%s7097_s3 + $0x128] sm:$0xf0]  ;;  %v4820_v41 = vld [vmem:[%s7097_s3 + $0x224] sm:$0xf] }
 0x167   :  { %v1037_v38 = vmax.f32 %v1030_v17, %v1031_v5  ;;  %2031 = vmatpush.bf16.msra.mxu2 %v4034_v45  ;;  %v4201_v17 = vld [vmem:[%s7097_s3 + $0x120] sm:$0xf]  ;;  %v4785_v5 = vld [vmem:[%s7097_s3 + $0x124] sm:$0xf0]  ;;  %v4783_v45 = vld [vmem:[%s7097_s3 + $0x114] sm:$0xf0]  ;;  %v4206_v52 = vor.u32 %v4784_v53, %v4203_v13 }
 0x168   :  { %2050 = vmatpush.bf16.msra.mxu3 %v4038_v11  ;;  %v4202_v9 = vor.u32 %v4785_v5, %v4201_v17  ;;  %v4195_v11 = vld [vmem:[%s7097_s3 + $0x118] sm:$0xf0]  ;;  %v4743_v49 = vld [vmem:[#allocation2 + $0x20] sm:$0xff]  ;;  %v4369_v37 = vld [vmem:[%s7097_s3 + $0x210] sm:$0xf] }
 0x169   :  { %v1043_v20 = vmax.f32 %v1037_v38, 0.0  ;;  %v4193_v38 = vld [vmem:[%s7097_s3 + $0x110] sm:$0xf]  ;;  %v4387_v10 = vld [vmem:[%s7097_s3 + $0x238] sm:$0xf0] }
 0x16a   :  { %v4194_v50 = vor.u32 %v4783_v45, %v4193_v38  ;;  %v4377_v8 = vld [vmem:[%s7097_s3 + $0x220] sm:$0xf]  ;;  %v4819_v2 = vld [vmem:[%s7097_s3 + $0x214] sm:$0xf0]  ;;  %v4818_v33 = vld [vmem:[%s7097_s3 + $0x214] sm:$0xf] }
 0x16b   :  { %v4895_v43 = vpack.c.bf16 %v1043_v20, %v1042_v15  ;;  %2032 = vmatpush.bf16.msra.mxu2 %v4026_v46  ;;  %v4185_v15 = vld [vmem:[%s7097_s3 + $0x100] sm:$0xf]  ;;  %v4781_v20 = vld [vmem:[%s7097_s3 + $0x104] sm:$0xf0]  ;;  %v4198_v46 = vor.u32 %v4782_v63, %v4195_v11  ;;  %v4370_v62 = vor.u32 %v4819_v2, %v4369_v37  ;;  %v4816_v13 = vld [vmem:[%s7097_s3 + $0x204] sm:$0xf] }
 0x16c   :  { %2051 = vmatpush.bf16.msra.mxu3 %v4030_v0  ;;  %v4186_v35 = vor.u32 %v4781_v20, %v4185_v15  ;;  %v4417_v0 = vld [vmem:[%s7097_s3 + $0x270] sm:$0xf]  ;;  %v4363_v38 = vld [vmem:[%s7097_s3 + $0x208] sm:$0xf0] }
 0x16d   :  { %4900 = vst [vmem:[#allocation2 + $0x28] sm:$0xff] %v4895_v43   ;;  %v4187_v43 = vld [vmem:[%s7097_s3 + $0x108] sm:$0xf0] }
 0x16e   :  { %v4190_v42 = vor.u32 %v4780_v51, %v4187_v43  ;;  %v4814_v43 = vld [vmem:[#allocation2 + $0x20] sm:$0xff] }
 0x16f   :  { %2033 = vmatpush.bf16.msra.mxu2 %v4018_v26  ;;  %v4831_v26 = vld [vmem:[%s7097_s3 + $0x274] sm:$0xf0] }
 0x170   :  { %2052 = vmatpush.bf16.msra.mxu3 %v4022_v6  ;;  %v4418_v29 = vor.u32 %v4831_v26, %v4417_v0  ;;  %v4829_v6 = vld [vmem:[%s7097_s3 + $0x264] sm:$0xf0] }
 0x172   :  { %v6827_v31 = vpop.f32.mrf.mxu1 }
 0x173   :  { %2034 = vmatpush.bf16.msra.mxu2 %v4010_v36  ;;  %v4422_v36 = vor.u32 %v4830_v47, %v4419_v56 }
 0x174   :  { %2053 = vmatpush.bf16.msra.mxu3 %v4014_v59  ;;  %v4707_v34 = vld [vmem:[#allocation2 + $0x24] sm:$0xff]  ;;  %v4414_v59 = vor.u32 %v4828_v7, %v4411_v18 }
 0x175   :  { %1686 = vmatmul.bf16.vlgmr.msrb.gmra.mxu2 %v4706_v24  ;;  %1705 = vmatmul.bf16.vlgmr.msrb.gmra.mxu3 %v4706_v24  ;;  %v4410_v24 = vor.u32 %v4829_v6, %v4409_v4  ;;  %v4815_v6 = vld [vmem:[#allocation2 + $0x28] sm:$0xff] }
 0x176   :  { %2542 = vmatmul.bf16.vlgmr.msra.gmra.mxu0 %v4796_v60  ;;  %2561 = vmatmul.bf16.vlgmr.msra.gmra.mxu1 %v4796_v60  ;;  %v4401_v60 = vld [vmem:[%s7097_s3 + $0x250] sm:$0xf] }
 0x177   :  { %2360 = vmatpush.bf16.msrb.mxu2 %v4242_v39  ;;  %v4402_v39 = vor.u32 %v4827_v30, %v4401_v60 }
 0x178   :  { %2379 = vmatpush.bf16.msrb.mxu3 %v4246_v21  ;;  %v4824_v21 = vld [vmem:[%s7097_s3 + $0x244] sm:$0xf] }
 0x17a   :  { %v1199_v5 = vpop.f32.mrf.mxu1 }
 0x17b   :  { %2361 = vmatpush.bf16.msrb.mxu2 %v4234_v25  ;;  %v4398_v25 = vor.u32 %v4824_v21, %v4395_v54 }
 0x17c   :  { %2380 = vmatpush.bf16.msrb.mxu3 %v4238_v23  ;;  %v6825_v23 = vpop.f32.mrf.mxu0 }
 0x17f   :  { %2362 = vmatpush.bf16.msrb.mxu2 %v4226_v1  ;;  %v4822_v1 = vld [vmem:[%s7097_s3 + $0x234] sm:$0xf] }
 0x180   :  { %2381 = vmatpush.bf16.msrb.mxu3 %v4230_v12  ;;  %v4386_v12 = vor.u32 %v4823_v44, %v4385_v3  ;;  %v4390_v27 = vor.u32 %v4822_v1, %v4387_v10 }
 0x182   :  { %v1202_v11 = vpop.f32.mrf.mxu1 }
 0x183   :  { %2363 = vmatpush.bf16.msrb.mxu2 %v4218_v16  ;;  %v4821_v16 = vld [vmem:[%s7097_s3 + $0x224] sm:$0xf0] }
 0x184   :  { %2382 = vmatpush.bf16.msrb.mxu3 %v4222_v61  ;;  %v4378_v61 = vor.u32 %v4821_v16, %v4377_v8  ;;  %v1180_v17 = vpop.f32.mrf.mxu0 }
 0x185   :  { %1691 = vmatmul.bf16.gmra.mxu2 %v4707_v34  ;;  %1710 = vmatmul.bf16.gmra.mxu3 %v4707_v34  ;;  %v4379_v34 = vld [vmem:[%s7097_s3 + $0x228] sm:$0xf0] }
 0x186   :  { %2547 = vmatmul.bf16.gmra.mxu0 %v4797_v19  ;;  %2566 = vmatmul.bf16.gmra.mxu1 %v4797_v19  ;;  %v4382_v19 = vor.u32 %v4820_v41, %v4379_v34 }
 0x187   :  { %2364 = vmatpush.bf16.msrb.mxu2 %v4210_v22  ;;  %v4371_v22 = vld [vmem:[%s7097_s3 + $0x218] sm:$0xf0] }
 0x188   :  { %2383 = vmatpush.bf16.msrb.mxu3 %v4214_v58  ;;  %v4361_v58 = vld [vmem:[%s7097_s3 + $0x200] sm:$0xf]  ;;  %v4374_v53 = vor.u32 %v4818_v33, %v4371_v22 }
 0x18a   :  { %v1204_v20 = vpop.f32.mrf.mxu1 }
 0x18b   :  { %2365 = vmatpush.bf16.msrb.mxu2 %v4202_v9  ;;  %v4817_v9 = vld [vmem:[%s7097_s3 + $0x204] sm:$0xf0] }
 0x18c   :  { %2384 = vmatpush.bf16.msrb.mxu3 %v4206_v52  ;;  %v4362_v45 = vor.u32 %v4817_v9, %v4361_v58  ;;  %v4366_v52 = vor.u32 %v4816_v13, %v4363_v38  ;;  %v1183_v63 = vpop.f32.mrf.mxu0 }
 0x18f   :  { %2366 = vmatpush.bf16.msrb.mxu2 %v4194_v50  ;;  %v4778_v50 = vld [vmem:[#allocation2 + $0x1c] sm:$0xff] }
 0x190   :  { %2385 = vmatpush.bf16.msrb.mxu3 %v4198_v46  ;;  %v4779_v46 = vld [vmem:[#allocation2 + $0x24] sm:$0xff] }
 0x192   :  { %v1531_v51 = vpop.f32.mrf.mxu1 }
 0x193   :  { %2367 = vmatpush.bf16.msrb.mxu2 %v4186_v35 }
 0x194   :  { %2386 = vmatpush.bf16.msrb.mxu3 %v4190_v42  ;;  %v1185_v15 = vpop.f32.mrf.mxu0 }
 0x195   :  { %2035 = vmatmul.bf16.vlgmr.msra.gmra.mxu2 %v4742_v32  ;;  %2054 = vmatmul.bf16.vlgmr.msra.gmra.mxu3 %v4742_v32 }
 0x197   :  { %2708 = vmatpush.bf16.msra.mxu2 %v4418_v29 }
 0x198   :  { %2727 = vmatpush.bf16.msra.mxu3 %v4422_v36 }
 0x19a   :  { %v1533_v42 = vpop.f32.mrf.mxu1 }
 0x19b   :  { %2709 = vmatpush.bf16.msra.mxu2 %v4410_v24 }
 0x19c   :  { %2728 = vmatpush.bf16.msra.mxu3 %v4414_v59  ;;  %v1512_v35 = vpop.f32.mrf.mxu0 }
 0x19f   :  { %2710 = vmatpush.bf16.msra.mxu2 %v4402_v39 }
 0x1a0   :  { %2729 = vmatpush.bf16.msra.mxu3 %v4406_v40 }
 0x1a2   :  { %v1536_v29 = vpop.f32.mrf.mxu1 }
 0x1a3   :  { %2711 = vmatpush.bf16.msra.mxu2 %v4394_v14 }
 0x1a4   :  { %2730 = vmatpush.bf16.msra.mxu3 %v4398_v25  ;;  %v1514_v32 = vpop.f32.mrf.mxu0 }
 0x1a5   :  { %2040 = vmatmul.bf16.gmra.mxu2 %v4743_v49  ;;  %2059 = vmatmul.bf16.gmra.mxu3 %v4743_v49 }
 0x1a7   :  { %2712 = vmatpush.bf16.msra.mxu2 %v4386_v12 }
 0x1a8   :  { %2731 = vmatpush.bf16.msra.mxu3 %v4390_v27 }
 0x1aa   :  { %v1538_v24 = vpop.f32.mrf.mxu1 }
 0x1ab   :  { %2713 = vmatpush.bf16.msra.mxu2 %v4378_v61 }
 0x1ac   :  { %2732 = vmatpush.bf16.msra.mxu3 %v4382_v19  ;;  %v1517_v47 = vpop.f32.mrf.mxu0 }
 0x1af   :  { %2714 = vmatpush.bf16.msra.mxu2 %v4370_v62 }
 0x1b0   :  { %2733 = vmatpush.bf16.msra.mxu3 %v4374_v53 }
 0x1b2   :  { %v1881_v55 = vpop.f32.mrf.mxu1 }
 0x1b3   :  { %2715 = vmatpush.bf16.msra.mxu2 %v4362_v45 }
 0x1b4   :  { %2734 = vmatpush.bf16.msra.mxu3 %v4366_v52  ;;  %v1519_v18 = vpop.f32.mrf.mxu0 }
 0x1b5   :  { %2368 = vmatmul.bf16.vlgmr.msrb.gmra.mxu2 %v4778_v50  ;;  %2387 = vmatmul.bf16.vlgmr.msrb.gmra.mxu3 %v4778_v50 }
 0x1ba   :  { %v1883_v12 = vpop.f32.mrf.mxu1 }
 0x1bc   :  { %v1862_v30 = vpop.f32.mrf.mxu0 }
 0x1c2   :  { %v1886_v2 = vpop.f32.mrf.mxu1 }
 0x1c4   :  { %v1864_v1 = vpop.f32.mrf.mxu0 }
 0x1c5   :  { %2373 = vmatmul.bf16.gmra.mxu2 %v4779_v46  ;;  %2392 = vmatmul.bf16.gmra.mxu3 %v4779_v46 }
 0x1cc   :  { %v1867_v37 = vpop.f32.mrf.mxu0 }
 0x1d5   :  { %2716 = vmatmul.bf16.vlgmr.msra.gmra.mxu2 %v4814_v43  ;;  %2735 = vmatmul.bf16.vlgmr.msra.gmra.mxu3 %v4814_v43 }
 0x1d8   :  { %v1337_v0 = vpop.f32.mrf.mxu2  ;;  %v1356_v26 = vpop.f32.mrf.mxu3 }
 0x1d9   :  { %v1374_v57 = vadd.f32 %v1337_v0, %v6825_v23  ;;  %v1375_v39 = vadd.f32 %v1356_v26, %v6827_v31  ;;  %v4839_v26 = vld [vmem:[%s7099_s5 + $0x38] sm:$0xff] }
 0x1da   :  { %2961 = vmatpush.bf16.msrb.mxu1 %v4839_v26  ;;  %v4858_v26 = vld [vmem:[%s7099_s5 + $0xd0] sm:$0xff] }
 0x1db   :  { %v1549_v40 = vadd.f32 %v1512_v35, %v1374_v57  ;;  %v1550_v48 = vadd.f32 %v1531_v51, %v1375_v39  ;;  %v1869_v35 = vpop.f32.mrf.mxu0  ;;  %v1888_v51 = vpop.f32.mrf.mxu1  ;;  %v4855_v57 = vld [vmem:[%s7099_s5 + $0xb8] sm:$0xff]  ;;  %v4845_v39 = vld [vmem:[%s7099_s5 + $0x68] sm:$0xff] }
 0x1dc   :  { %3038 = vmatpush.bf16.msrb.mxu2 %v4855_v57 }
 0x1e0   :  { %v1339_v56 = vpop.f32.mrf.mxu2  ;;  %v1358_v4 = vpop.f32.mrf.mxu3 }
 0x1e1   :  { %v1376_v25 = vadd.f32 %v1339_v56, %v1180_v17  ;;  %v1377_v49 = vadd.f32 %v1358_v4, %v1199_v5 }
 0x1e3   :  { %v1551_v10 = vadd.f32 %v1514_v32, %v1376_v25  ;;  %v1552_v8 = vadd.f32 %v1533_v42, %v1377_v49 }
 0x1e5   :  { %2721 = vmatmul.bf16.gmra.mxu2 %v4815_v6  ;;  %2740 = vmatmul.bf16.gmra.mxu3 %v4815_v6  ;;  %v4838_v6 = vld [vmem:[%s7099_s5 + $0x30] sm:$0xff] }
 0x1e6   :  { %2962 = vmatpush.bf16.msrb.mxu1 %v4838_v6  ;;  %v4848_v6 = vld [vmem:[%s7099_s5 + $0x80] sm:$0xff] }
 0x1e8   :  { %v1342_v36 = vpop.f32.mrf.mxu2  ;;  %v1361_v7 = vpop.f32.mrf.mxu3 }
 0x1e9   :  { %v1378_v41 = vadd.f32 %v1342_v36, %v1183_v63  ;;  %v1379_v34 = vadd.f32 %v1361_v7, %v1202_v11  ;;  %v4847_v36 = vld [vmem:[%s7099_s5 + $0x78] sm:$0xff]  ;;  %v4837_v7 = vld [vmem:[%s7099_s5 + $0x28] sm:$0xff] }
 0x1ea   :  { %2900 = vmatpush.bf16.msrb.mxu0 %v4847_v36  ;;  %2963 = vmatpush.bf16.msrb.mxu1 %v4837_v7 }
 0x1eb   :  { %v1553_v33 = vadd.f32 %v1517_v47, %v1378_v41  ;;  %v1554_v22 = vadd.f32 %v1536_v29, %v1379_v34  ;;  %v6906_v47 = vpop.f32.mrf.mxu0  ;;  %v6908_v29 = vpop.f32.mrf.mxu1  ;;  %v4832_v41 = vld [vmem:[%s7099_s5] sm:$0xff] }
 0x1ec   :  { %v4852_v34 = vld [vmem:[%s7099_s5 + $0xa0] sm:$0xff] }
 0x1f0   :  { %v1344_v59 = vpop.f32.mrf.mxu2  ;;  %v1363_v60 = vpop.f32.mrf.mxu3 }
 0x1f1   :  { %v1380_v9 = vadd.f32 %v1344_v59, %v1185_v15  ;;  %v1381_v53 = vadd.f32 %v1363_v60, %v1204_v20 }
 0x1f3   :  { %v1555_v45 = vadd.f32 %v1519_v18, %v1380_v9  ;;  %v1556_v52 = vadd.f32 %v1538_v24, %v1381_v53  ;;  %v6927_v59 = vpop.f32.mrf.mxu0  ;;  %v6929_v60 = vpop.f32.mrf.mxu1  ;;  %v4840_v9 = vld [vmem:[%s7099_s5 + $0x40] sm:$0xff]  ;;  %v4850_v53 = vld [vmem:[%s7099_s5 + $0x90] sm:$0xff] }
 0x1f8   :  { %v1687_v28 = vpop.f32.mrf.mxu2  ;;  %v1706_v21 = vpop.f32.mrf.mxu3 }
 0x1f9   :  { %v1724_v54 = vadd.f32 %v1687_v28, %v1549_v40  ;;  %v1725_v14 = vadd.f32 %v1706_v21, %v1550_v48  ;;  %v4835_v40 = vld [vmem:[%s7099_s5 + $0x18] sm:$0xff]  ;;  %v4844_v21 = vld [vmem:[%s7099_s5 + $0x60] sm:$0xff] }
 0x1fb   :  { %v6879_v3 = vadd.f32 %v1862_v30, %v1724_v54  ;;  %v6881_v44 = vadd.f32 %v1881_v55, %v1725_v14  ;;  %v4846_v30 = vld [vmem:[%s7099_s5 + $0x70] sm:$0xff]  ;;  %v4836_v55 = vld [vmem:[%s7099_s5 + $0x20] sm:$0xff]  ;;  %v6955_v25 = vpop.f32.mrf.mxu0  ;;  %v6957_v49 = vpop.f32.mrf.mxu1 }
 0x1fc   :  { %2901 = vmatpush.bf16.msrb.mxu0 %v4846_v30  ;;  %2964 = vmatpush.bf16.msrb.mxu1 %v4836_v55  ;;  %v4834_v54 = vld [vmem:[%s7099_s5 + $0x10] sm:$0xff] }
 0x1fd   :  { %v4854_v14 = vld [vmem:[%s7099_s5 + $0xb0] sm:$0xff] }
 0x1fe   :  { %3039 = vmatpush.bf16.msrb.mxu2 %v4854_v14 }
 0x200   :  { %v1689_v16 = vpop.f32.mrf.mxu2  ;;  %v1708_v23 = vpop.f32.mrf.mxu3  ;;  %2902 = vmatpush.bf16.msrb.mxu0 %v4845_v39  ;;  %2965 = vmatpush.bf16.msrb.mxu1 %v4835_v40 }
 0x201   :  { %v1726_v27 = vadd.f32 %v1689_v16, %v1551_v10  ;;  %v1727_v31 = vadd.f32 %v1708_v23, %v1552_v8  ;;  %v4833_v10 = vld [vmem:[%s7099_s5 + $0x8] sm:$0xff] }
 0x202   :  { %v4853_v8 = vld [vmem:[%s7099_s5 + $0xa8] sm:$0xff] }
 0x203   :  { %v6883_v61 = vadd.f32 %v1864_v1, %v1726_v27  ;;  %v6885_v19 = vadd.f32 %v1883_v12, %v1727_v31  ;;  %v4863_v1 = vld [vmem:[%s7099_s5 + $0xf8] sm:$0xff]  ;;  %3040 = vmatpush.bf16.msrb.mxu2 %v4853_v8  ;;  %v4862_v27 = vld [vmem:[%s7099_s5 + $0xf0] sm:$0xff] }
 0x204   :  { %2903 = vmatpush.bf16.msrb.mxu0 %v4844_v21  ;;  %2966 = vmatpush.bf16.msrb.mxu1 %v4834_v54  ;;  %v4843_v12 = vld [vmem:[%s7099_s5 + $0x58] sm:$0xff]  ;;  %v4842_v31 = vld [vmem:[%s7099_s5 + $0x50] sm:$0xff] }
 0x205   :  { %3116 = vmatpush.bf16.msrb.mxu3 %v4863_v1  ;;  %v4856_v1 = vld [vmem:[%s7099_s5 + $0xc0] sm:$0xff] }
 0x207   :  { %3041 = vmatpush.bf16.msrb.mxu2 %v4852_v34 }
 0x208   :  { %v1692_v62 = vpop.f32.mrf.mxu2  ;;  %v1711_v17 = vpop.f32.mrf.mxu3  ;;  %2904 = vmatpush.bf16.msrb.mxu0 %v4843_v12  ;;  %2967 = vmatpush.bf16.msrb.mxu1 %v4833_v10 }
 0x209   :  { %v1728_v5 = vadd.f32 %v1692_v62, %v1553_v33  ;;  %v1729_v58 = vadd.f32 %v1711_v17, %v1554_v22  ;;  %3117 = vmatpush.bf16.msrb.mxu3 %v4862_v27  ;;  %v4861_v33 = vld [vmem:[%s7099_s5 + $0xe8] sm:$0xff]  ;;  %v4851_v62 = vld [vmem:[%s7099_s5 + $0x98] sm:$0xff] }
 0x20a   :  { %v4841_v22 = vld [vmem:[%s7099_s5 + $0x48] sm:$0xff] }
 0x20b   :  { %v6887_v13 = vadd.f32 %v1867_v37, %v1728_v5  ;;  %v6889_v38 = vadd.f32 %v1886_v2, %v1729_v58  ;;  %v6987_v37 = vpop.f32.mrf.mxu0  ;;  %v6989_v2 = vpop.f32.mrf.mxu1  ;;  %3042 = vmatpush.bf16.msrb.mxu2 %v4851_v62  ;;  %v4860_v58 = vld [vmem:[%s7099_s5 + $0xe0] sm:$0xff] }
 0x20c   :  { %2905 = vmatpush.bf16.msrb.mxu0 %v4842_v31  ;;  %2968 = vmatpush.bf16.msrb.mxu1 %v4832_v41 }
 0x20d   :  { %3118 = vmatpush.bf16.msrb.mxu3 %v4861_v33 }
 0x20f   :  { %3043 = vmatpush.bf16.msrb.mxu2 %v4850_v53 }
 0x210   :  { %v1694_v50 = vpop.f32.mrf.mxu2  ;;  %v1713_v63 = vpop.f32.mrf.mxu3  ;;  %2906 = vmatpush.bf16.msrb.mxu0 %v4841_v22 }
 0x211   :  { %v1730_v11 = vadd.f32 %v1694_v50, %v1555_v45  ;;  %v1731_v46 = vadd.f32 %v1713_v63, %v1556_v52  ;;  %3119 = vmatpush.bf16.msrb.mxu3 %v4860_v58  ;;  %v4859_v45 = vld [vmem:[%s7099_s5 + $0xd8] sm:$0xff]  ;;  %v4849_v52 = vld [vmem:[%s7099_s5 + $0x88] sm:$0xff] }
 0x213   :  { %v6891_v43 = vadd.f32 %v1869_v35, %v1730_v11  ;;  %v6893_v32 = vadd.f32 %v1888_v51, %v1731_v46  ;;  %v2543_v50 = vpop.f32.mrf.mxu0  ;;  %v2562_v63 = vpop.f32.mrf.mxu1  ;;  %3044 = vmatpush.bf16.msrb.mxu2 %v4849_v52 }
 0x214   :  { %2907 = vmatpush.bf16.msrb.mxu0 %v4840_v9 }
 0x215   :  { %3120 = vmatpush.bf16.msrb.mxu3 %v4859_v45 }
 0x217   :  { %3045 = vmatpush.bf16.msrb.mxu2 %v4848_v6 }
 0x218   :  { %v6895_v42 = vpop.f32.mrf.mxu2  ;;  %v6897_v15 = vpop.f32.mrf.mxu3 }
 0x219   :  { %v2232_v35 = vadd.f32 %v6906_v47, %v6895_v42  ;;  %v2233_v51 = vadd.f32 %v6908_v29, %v6897_v15  ;;  %3121 = vmatpush.bf16.msrb.mxu3 %v4858_v26  ;;  %v2794_v42 = vld [vmem:[%s7100_s4] sm:$0x3]  ;;  %v4857_v15 = vld [vmem:[%s7099_s5 + $0xc8] sm:$0xff] }
 0x21a   :  { %v7041_v21 = vperm.slane %v2794_v42, 1 }
 0x21b   :  { %v2545_v54 = vpop.f32.mrf.mxu0  ;;  %v2564_v14 = vpop.f32.mrf.mxu1 }
 0x21d   :  { %3122 = vmatpush.bf16.msrb.mxu3 %v4857_v15 }
 0x220   :  { %v6899_v20 = vpop.f32.mrf.mxu2  ;;  %v6901_v0 = vpop.f32.mrf.mxu3 }
 0x221   :  { %v2234_v30 = vadd.f32 %v6927_v59, %v6899_v20  ;;  %v2235_v55 = vadd.f32 %v6929_v60, %v6901_v0  ;;  %3123 = vmatpush.bf16.msrb.mxu3 %v4856_v1 }
 0x223   :  { %v2548_v45 = vpop.f32.mrf.mxu0  ;;  %v2567_v52 = vpop.f32.mrf.mxu1 }
 0x228   :  { %v6910_v56 = vpop.f32.mrf.mxu2  ;;  %v6912_v4 = vpop.f32.mrf.mxu3 }
 0x229   :  { %v2236_v41 = vadd.f32 %v6955_v25, %v6910_v56 }
 0x230   :  { %v6923_v18 = vpop.f32.mrf.mxu2  ;;  %v6925_v24 = vpop.f32.mrf.mxu3 }
 0x238   :  { %v2369_v48 = vpop.f32.mrf.mxu2  ;;  %v2388_v28 = vpop.f32.mrf.mxu3 }
 0x239   :  { %v2406_v36 = vadd.f32 %v2369_v48, %v2232_v35  ;;  %v2407_v7 = vadd.f32 %v2388_v28, %v2233_v51  ;;  %v7039_v48 = vperm.slane %v2794_v42, 0 }
 0x23b   :  { %v2580_v47 = vadd.f32 %v2543_v50, %v2406_v36  ;;  %v2581_v29 = vadd.f32 %v2562_v63, %v2407_v7 }
 0x240   :  { %v6971_v16 = vpop.f32.mrf.mxu2  ;;  %v6973_v23 = vpop.f32.mrf.mxu3 }
 0x241   :  { %v2408_v20 = vadd.f32 %v6971_v16, %v2234_v30  ;;  %v2409_v59 = vadd.f32 %v6973_v23, %v2235_v55  ;;  %v2237_v16 = vadd.f32 %v6957_v49, %v6912_v4  ;;  %v2238_v49 = vadd.f32 %v6987_v37, %v6923_v18  ;;  %v2550_v37 = vpop.f32.mrf.mxu0 }
 0x243   :  { %v2582_v27 = vadd.f32 %v2545_v54, %v2408_v20  ;;  %v2583_v31 = vadd.f32 %v2564_v14, %v2409_v59  ;;  %v3143_v20 = vld [vmem:[%s7103_s7 + $0x18] sm:$0x1] }
 0x244   :  { %v3161_v59 = vunpack.c.l.b16 %v3143_v20 }
 0x248   :  { %v2374_v17 = vpop.f32.mrf.mxu2  ;;  %v2393_v5 = vpop.f32.mrf.mxu3 }
 0x249   :  { %v2411_v62 = vadd.f32 %v2393_v5, %v2237_v16 }
 0x24b   :  { %v2585_v4 = vadd.f32 %v2567_v52, %v2411_v62 }
 0x250   :  { %v7015_v11 = vpop.f32.mrf.mxu2  ;;  %v7017_v46 = vpop.f32.mrf.mxu3 }
 0x251   :  { %v2412_v26 = vadd.f32 %v7015_v11, %v2238_v49 }
 0x258   :  { %v2717_v57 = vpop.f32.mrf.mxu2  ;;  %v2736_v39 = vpop.f32.mrf.mxu3 }
 0x259   :  { %v2754_v40 = vadd.f32 %v2717_v57, %v2580_v47  ;;  %v2755_v28 = vadd.f32 %v2736_v39, %v2581_v29  ;;  %v2569_v47 = vpop.f32.mrf.mxu1 }
 0x25b   :  { %v2786_v0 = vmax.f32 %v6879_v3, %v2754_v40  ;;  %v2787_v60 = vmax.f32 %v6881_v44, %v2755_v28  ;;  %v2410_v44 = vadd.f32 %v2374_v17, %v2236_v41 }
 0x25d   :  { %v2800_v12 = vadd.f32 %v7039_v48, %v2786_v0  ;;  %v2801_v10 = vadd.f32 %v7041_v21, %v2787_v60  ;;  %v2584_v63 = vadd.f32 %v2548_v45, %v2410_v44  ;;  %v3165_v0 = vpack.c.b16 %v3161_v59, %v3161_v59 }
 0x25f   :  { %v2808_v8 = vmax.f32 %v2800_v12, %v2801_v10  ;;  %v3175_v60 = vsel %vm3173_vm0, %v3165_v0, 0 }
 0x260   :  { %v2719_v34 = vpop.f32.mrf.mxu2  ;;  %v2738_v33 = vpop.f32.mrf.mxu3  ;;  %3181 = vmatpush.bf16.msra.mxu0 %v3175_v60 }
 0x261   :  { %v2812_v23 = vmax.f32 %v2808_v8, 0.0  ;;  %v2756_v3 = vadd.f32 %v2719_v34, %v2582_v27  ;;  %v2757_v22 = vadd.f32 %v2738_v33, %v2583_v31  ;;  %v4901_v34 = vld [vmem:[%s7101_s6] ss:$0 sm:$0xff] }
 0x263   :  { %v2816_v58 = vpack.c.bf16 %v2812_v23, %v2812_v23  ;;  %v2788_v9 = vmax.f32 %v6883_v61, %v2756_v3  ;;  %v2789_v53 = vmax.f32 %v6885_v19, %v2757_v22  ;;  %v2239_v61 = vadd.f32 %v6989_v2, %v6925_v24 }
 0x264   :  { %v2586_v2 = vadd.f32 %v2550_v37, %v2412_v26 }
 0x265   :  { %v2802_v50 = vadd.f32 %v7039_v48, %v2788_v9  ;;  %v2803_v56 = vadd.f32 %v7041_v21, %v2789_v53  ;;  %2969 = vmatmul.bf16.vlgmr.msrb.gmra.mxu1 %v2816_v58  ;;  %v2413_v6 = vadd.f32 %v7017_v46, %v2239_v61  ;;  %v4902_v58 = vld [vmem:[%s7102_s8] ss:$0 sm:$0xff] }
 0x267   :  { %v2809_v25 = vmax.f32 %v2802_v50, %v2803_v56  ;;  %v2587_v29 = vadd.f32 %v2569_v47, %v2413_v6 }
 0x268   :  { %v2722_v17 = vpop.f32.mrf.mxu2  ;;  %v2741_v5 = vpop.f32.mrf.mxu3 }
 0x269   :  { %v2813_v35 = vmax.f32 %v2809_v25, 0.0  ;;  %v2758_v19 = vadd.f32 %v2722_v17, %v2584_v63  ;;  %v2759_v51 = vadd.f32 %v2741_v5, %v2585_v4 }
 0x26b   :  { %v2817_v36 = vpack.c.bf16 %v2813_v35, %v2813_v35  ;;  %v2790_v7 = vmax.f32 %v6887_v13, %v2758_v19  ;;  %v2791_v42 = vmax.f32 %v6889_v38, %v2759_v51 }
 0x26d   :  { %v2804_v15 = vadd.f32 %v7039_v48, %v2790_v7  ;;  %v2805_v18 = vadd.f32 %v7041_v21, %v2791_v42  ;;  %2908 = vmatmul.bf16.vlgmr.msrb.gmra.mxu0 %v2817_v36 }
 0x26f   :  { %v2810_v24 = vmax.f32 %v2804_v15, %v2805_v18 }
 0x270   :  { %v2724_v30 = vpop.f32.mrf.mxu2  ;;  %v2743_v55 = vpop.f32.mrf.mxu3 }
 0x271   :  { %v2814_v11 = vmax.f32 %v2810_v24, 0.0  ;;  %v2760_v57 = vadd.f32 %v2724_v30, %v2586_v2  ;;  %v2761_v46 = vadd.f32 %v2743_v55, %v2587_v29 }
 0x273   :  { %v2818_v39 = vpack.c.bf16 %v2814_v11, %v2814_v11  ;;  %v2792_v13 = vmax.f32 %v6891_v43, %v2760_v57  ;;  %v2793_v38 = vmax.f32 %v6893_v32, %v2761_v46  ;;  %v4866_v43 = vld [vmem:[%s7103_s7 + $0x10] sm:$0xff] }
 0x274   :  { %3182 = vmatpush.bf16.msra.mxu0 %v4866_v43 }
 0x275   :  { %v2806_v40 = vadd.f32 %v7039_v48, %v2792_v13  ;;  %v2807_v28 = vadd.f32 %v7041_v21, %v2793_v38  ;;  %3046 = vmatmul.bf16.vlgmr.msrb.gmra.mxu2 %v2818_v39  ;;  %v4865_v48 = vld [vmem:[%s7103_s7 + $0x8] sm:$0xff]  ;;  %v4864_v21 = vld [vmem:[%s7103_s7] sm:$0xff] }
 0x277   :  { %v2811_v54 = vmax.f32 %v2806_v40, %v2807_v28 }
 0x278   :  { %3183 = vmatpush.bf16.msra.mxu0 %v4865_v48 }
 0x279   :  { %v2815_v14 = vmax.f32 %v2811_v54, 0.0 }
 0x27b   :  { %v2819_v1 = vpack.c.bf16 %v2815_v14, %v2815_v14 }
 0x27c   :  { %3184 = vmatpush.bf16.msra.mxu0 %v4864_v21 }
 0x27d   :  { %3124 = vmatmul.bf16.vlgmr.msrb.gmra.mxu3 %v2819_v1 }
 0x2e2   :  { %v2970_v32 = vpop.f32.mrf.mxu1 }
 0x2ea   :  { %v2909_v12 = vpop.f32.mrf.mxu0  ;;  %v2972_v10 = vpop.f32.mrf.mxu1 }
 0x2eb   :  { %v2971_v31 = vadd.f32 %v2970_v32, %v2909_v12 }
 0x2f2   :  { %v2911_v8 = vpop.f32.mrf.mxu0 }
 0x2f8   :  { %v3047_v27 = vpop.f32.mrf.mxu2 }
 0x2f9   :  { %v3051_v41 = vadd.f32 %v3047_v27, %v2971_v31 }
 0x300   :  { %v3049_v33 = vpop.f32.mrf.mxu2  ;;  %v3125_v16 = vpop.f32.mrf.mxu3 }
 0x301   :  { %v3129_v23 = vadd.f32 %v3125_v16, %v3051_v41 }
 0x303   :  { %v3134_v3 = vadd.f32 %v4901_v34, %v3129_v23 }
 0x305   :  { %v3135_v22 = vmax.f32 %v3134_v3, 0.0 }
 0x307   :  { %v3136_v44 = vpack.c.bf16 %v3135_v22, %v3135_v22 }
 0x308   :  { %v3127_v62 = vpop.f32.mrf.mxu3 }
 0x309   :  { %4563 = vmatmul.msk.bf16.vlgmr.msra.gmra.mxu0 %vm3169_vm1, %v3136_v44 }
 0x386   :  { %v3186_v9 = vpop.f32.mrf.mxu0 }
 0x387   :  { %v3187_v53 = vadd.f32 %v4902_v58, %v3186_v9 }
 0x389   :  { %3190 = vmax.xlane.f32.xlu0 %v3187_v53 }
 0x38e   :  { %v3188_v45 = vpop.f32.mrf.mxu0 }
 0x3fc   :  { %v3191_v52 = vpop.xlane.xlu0 %3190 }
 0x3fd   :  { %v3192_v50 = vsub.f32 %v3187_v53, %v3191_v52 }
 0x3ff   :  { %v3193_v56 = vmul.f32 1.442695, %v3192_v50 }
 0x401   :  { %4903 = vpow2.f32 %v3193_v56 }
 0x407   :  { %v4904_v25 = vpop.eup %4903 }
 0x408   :  { %3195 = vadd.xlane.f32.xlu0 %v4904_v25 }
 0x47b   :  { %v3196_v63 = vpop.xlane.xlu0 %3195 }
 0x47c   :  { %4905 = vlog2.f32 %v3196_v63 }
 0x482   :  { %v4906_v4 = vpop.eup %4905 }
 0x483   :  { %v3198_v49 = vmul.f32 0.6931472, %v4906_v4 }
 0x485   :  { %v3199_v17 = vsub.f32 %v3192_v50, %v3198_v49 }
 0x487   :  { %3200 = vst [vmem:[%s7104_s9] sm:$0xff] %v3199_v17 }

</bundles_post_ra>
